<compile_context>
chip_gen: v5e
topology: v5e:2x2
jax: 0.10.0
libtpu: 0.0.40
codegen_flags: <defaults>
</compile_context>

<pallas_src>
import jax
import jax.numpy as jnp
from jax.experimental import pallas as pl
from jax.experimental.pallas import tpu as pltpu

# ----- configuration (mirrors MySAINT.__init__ / SAINT hard-coded sizes) -----
F_CONT   = 4                 # n_cont_features
DIM      = 32                # dim
DEPTH    = 2                 # depth
HEADS    = 4                 # heads
DIM_HEAD = 16                # dim_head (fixed to 16 by MySAINT)
INNER    = HEADS * DIM_HEAD  # 64
Y_DIM    = 1
MLP1_HID = 100               # simple_MLP([1, 100, dim])
MLP1_PAD = 128               # lane-padded hidden
MLPY_HID = 1000              # simple_MLP([dim, 1000, y_dim])
MLPY_PAD = 1024              # lane-padded hidden
FF_HID   = 4 * DIM           # FeedForward mult = 4  -> 128
N_TOK    = 1 + F_CONT        # 5 tokens
LN_EPS   = 1e-5
SCALE    = DIM_HEAD ** -0.5  # folded into the Q columns of wqkv at weight-prep time
NEG_INF  = -1e30


# -------------------------- in-kernel math helpers --------------------------
def _erf(x):
    # Abramowitz & Stegun 7.1.26; max abs error 1.5e-7 (== exact erf at f32 precision)
    a1, a2, a3, a4, a5 = 0.254829592, -0.284496736, 1.421413741, -1.453152027, 1.061405429
    p = 0.3275911
    ax = jnp.abs(x)
    t = 1.0 / (1.0 + p * ax)
    poly = ((((a5 * t + a4) * t + a3) * t + a2) * t + a1) * t
    y = 1.0 - poly * jnp.exp(-ax * ax)
    return jnp.where(x >= 0.0, y, -y)


def _gelu(x):
    # Exact-erf GELU (matches F.gelu default). A tanh-approx variant would move work to the
    # EUP slot on v6e, but is only a mid-tier win and slightly changes numerics.
    return 0.5 * x * (1.0 + _erf(x * 0.7071067811865476))


def _layernorm(x, gamma, beta):
    mu = jnp.mean(x, axis=-1, keepdims=True)
    d = x - mu
    var = jnp.mean(d * d, axis=-1, keepdims=True)
    return d * jax.lax.rsqrt(var + LN_EPS) * gamma + beta


def _bdot(a, b):
    # bf16 operands on the MXU, f32 accumulation
    return jnp.dot(a.astype(jnp.bfloat16), b.astype(jnp.bfloat16),
                   preferred_element_type=jnp.float32)


# -------------------------- the fused forward kernel --------------------------
def fused_forward_kernel(*refs):
    (xc_ref, msk_ref, cat_ref,
     cw1_ref, cb1_ref, cw2_ref, cb2_ref, memb_ref) = refs[:8]
    lrefs = refs[8:8 + 11 * DEPTH]
    yw1_ref, yb1_ref, yw2_ref, yb2_ref = refs[8 + 11 * DEPTH: 12 + 11 * DEPTH]
    o_ref = refs[-2]
    xs_ref = refs[-1]            # VMEM scratch (N_TOK*TB, DIM) f32 — token slab

    TB = xc_ref.shape[0]         # batch tile (power of two, multiple of 8)
    M = N_TOK * TB               # total token rows in this tile

    # ---- token slab assembly via sliced VMEM stores (no concatenates) ----
    xs_ref[0:TB, :] = cat_ref[...]                                # categorical/CLS token
    xc = xc_ref[...]                                              # (TB, F)
    msk = msk_ref[...]                                            # (TB, F) NaN mask (1 = valid)
    for i in range(F_CONT):
        # simple_MLP[i]: Linear(1,100)+ReLU is a pure VPU broadcast; Linear(100,dim) on MXU
        h = jnp.maximum(xc[:, i:i + 1] * cw1_ref[i:i + 1, :] + cb1_ref[i:i + 1, :], 0.0)
        ci = _bdot(h, cw2_ref[i * MLP1_PAD:(i + 1) * MLP1_PAD, :]) + cb2_ref[i:i + 1, :]
        # NaN-mask embedding replacement (mask_embeds row 2*i where con_mask == 0)
        ci = jnp.where(msk[:, i:i + 1] == 0.0, memb_ref[i:i + 1, :], ci)
        xs_ref[(i + 1) * TB:(i + 2) * TB, :] = ci
    x = xs_ref[...]                                               # (M, DIM)

    # ---- same-sample additive mask bias, built ONCE per tile (TB is a power of two) ----
    rid = jax.lax.broadcasted_iota(jnp.int32, (M, 1), 0) & (TB - 1)
    cid = jax.lax.broadcasted_iota(jnp.int32, (1, M), 1) & (TB - 1)
    bias = jnp.where(rid == cid, jnp.float32(0.0), jnp.float32(NEG_INF))   # (M, M) f32

    # ---- DEPTH transformer stages (unrolled) ----
    for l in range(DEPTH):
        (g1, be1, wqkv, wo, bo, g2, be2, wf1, bf1, wf2, bf2) = lrefs[11 * l: 11 * (l + 1)]

        # PreNorm(Residual(Attention)):  out = Attn(LN(x)) + LN(x)
        xn = _layernorm(x, g1[...], be1[...])
        qkv = _bdot(xn, wqkv[...])                                # (M, 3*INNER), SCALE pre-folded
        acc = None
        for h in range(HEADS):
            q = qkv[:, h * DIM_HEAD:(h + 1) * DIM_HEAD]
            k = qkv[:, INNER + h * DIM_HEAD: INNER + (h + 1) * DIM_HEAD]
            v = qkv[:, 2 * INNER + h * DIM_HEAD: 2 * INNER + (h + 1) * DIM_HEAD]
            sim = jax.lax.dot_general(
                q.astype(jnp.bfloat16), k.astype(jnp.bfloat16),
                (((1,), (1,)), ((), ())),
                preferred_element_type=jnp.float32) + bias         # additive mask
            sim = sim - jnp.max(sim, axis=-1, keepdims=True)       # keep for stability
            p = jnp.exp(sim)                                       # masked entries underflow to 0
            o_h = _bdot(p, v)                                      # unnormalized (M, DIM_HEAD)
            # deferred softmax normalization on the tiny per-head output (EUP reciprocal)
            o_h = o_h * pl.reciprocal(jnp.sum(p, axis=-1, keepdims=True), approx=True)
            # per-head Wo slice, accumulated — avoids the (M, INNER) lane concat
            proj = _bdot(o_h, wo[h * DIM_HEAD:(h + 1) * DIM_HEAD, :])
            acc = proj if acc is None else acc + proj
        x1 = acc + bo[...] + xn                                    # residual around LN'd input

        # PreNorm(Residual(FeedForward)) with GEGLU
        x1n = _layernorm(x1, g2[...], be2[...])
        hpre = _bdot(x1n, wf1[...]) + bf1[...]                     # (M, 2*FF_HID)
        hgl = hpre[:, :FF_HID] * _gelu(hpre[:, FF_HID:])           # GEGLU
        ff = _bdot(hgl, wf2[...]) + bf2[...]
        x = ff + x1n                                               # residual around LN'd input

    # ---- mlpfory on the categorical/CLS token (rows 0..TB-1) ----
    y = x[0:TB, :]                                                 # (TB, D)
    hy = jnp.maximum(_bdot(y, yw1_ref[...]) + yb1_ref[...], 0.0)   # (TB, 1024 padded)
    out = jnp.sum(hy * yw2_ref[...], axis=-1, keepdims=True) + yb2_ref[...]
    o_ref[...] = out                                               # (TB, 1)


# -------------------------- wrapper / weight preparation --------------------------
def _choose_tb(B):
    # Masked dense attention work scales ~TB^2 while useful work scales ~TB, so keep the
    # tile small; still amortize the ~0.35us/grid-step overhead for large B, and keep
    # ntiles >= 2 whenever B allows so the "parallel" axis can use both v7x TensorCores.
    if B <= 16:
        return 8
    if B <= 512:
        return 16
    return 32


def _prep_weights(params):
    bf16 = jnp.bfloat16
    w = {}
    # continuous-embedding MLPs (first layer lane-padded 100 -> 128; padding is exact-zero)
    w["cw1"] = jnp.pad(params["cont_w1"], ((0, 0), (0, MLP1_PAD - MLP1_HID)))
    w["cb1"] = jnp.pad(params["cont_b1"], ((0, 0), (0, MLP1_PAD - MLP1_HID)))
    # per-feature second layers stacked dense: (F, 100, D) -> (F*128, D), zero-padded rows
    cw2 = jnp.pad(params["cont_w2"], ((0, 0), (0, MLP1_PAD - MLP1_HID), (0, 0)))
    w["cw2"] = cw2.reshape(F_CONT * MLP1_PAD, DIM).astype(bf16)
    w["cb2"] = params["cont_b2"]                              # (F, D)
    w["memb"] = params["mask_embeds"][0::2]                   # (F, D): rows 2*i (mask == 0)
    # transformer layers; fold dim_head^-0.5 into the Q columns of wqkv
    layers = []
    for (g1, be1, wqkv, wo, bo, g2, be2, wf1, bf1, wf2, bf2) in params["layers"]:
        wqkv_s = wqkv.at[:, :INNER].multiply(SCALE)
        layers.append((g1, be1, wqkv_s.astype(bf16), wo.astype(bf16), bo,
                       g2, be2, wf1.astype(bf16), bf1, wf2.astype(bf16), bf2))
    w["layers"] = layers
    # mlpfory (lane-padded hidden 1000 -> 1024; padding is exact-zero)
    w["yw1"] = jnp.pad(params["y_w1"], ((0, 0), (0, MLPY_PAD - MLPY_HID))).astype(bf16)
    w["yb1"] = jnp.pad(params["y_b1"], ((0, 0), (0, MLPY_PAD - MLPY_HID)))
    w["yw2"] = jnp.pad(params["y_w2"].reshape(1, MLPY_HID),
                       ((0, 0), (0, MLPY_PAD - MLPY_HID)))
    w["yb2"] = params["y_b2"]                                 # (1, 1)
    return w


def my_saint_forward(x, params):
    B = x.shape[0]
    x_cat = x[:, 0].astype(jnp.int32)                       # (B,)
    x_cont = x[:, 1:]                                       # (B, F)
    con_mask = (~jnp.isnan(x_cont)).astype(jnp.float32)     # (B, F) — streamed raw (no repeat)
    x_cont = jnp.nan_to_num(x_cont)

    # tiny categorical-embedding gather done as JAX glue feeding the fused kernel
    cat_emb = params["cat_embeds"][x_cat]                   # (B, D)
    w = _prep_weights(params)

    TB = _choose_tb(B)
    B_pad = ((B + TB - 1) // TB) * TB
    pad = B_pad - B
    if pad:
        x_cont = jnp.pad(x_cont, ((0, pad), (0, 0)))
        con_mask = jnp.pad(con_mask, ((0, pad), (0, 0)), constant_values=1.0)
        cat_emb = jnp.pad(cat_emb, ((0, pad), (0, 0)))
    ntiles = B_pad // TB

    batch_in = [x_cont, con_mask, cat_emb]
    weight_in = [w["cw1"], w["cb1"], w["cw2"], w["cb2"], w["memb"]]
    for layer in w["layers"]:
        weight_in += list(layer)
    weight_in += [w["yw1"], w["yb1"], w["yw2"], w["yb2"]]

    def bspec(a):
        return pl.BlockSpec((TB, a.shape[1]), lambda t: (t, 0))

    def wspec(a):
        return pl.BlockSpec(a.shape, lambda t: (0, 0))      # weights stay VMEM-resident

    out = pl.pallas_call(
        fused_forward_kernel,
        out_shape=jax.ShapeDtypeStruct((B_pad, 1), jnp.float32),
        grid=(ntiles,),
        in_specs=[bspec(a) for a in batch_in] + [wspec(a) for a in weight_in],
        out_specs=pl.BlockSpec((TB, 1), lambda t: (t, 0)),
        scratch_shapes=[pltpu.VMEM((N_TOK * TB, DIM), jnp.float32)],
        compiler_params=pltpu.CompilerParams(dimension_semantics=("parallel",)),
    )(*batch_in, *weight_in)

    return out[:B, 0]                                        # .squeeze() -> (B,)


# -------------------------- deterministic parameter init --------------------------
def init_params(key):
    keys = list(jax.random.split(key, 32))
    it = iter(keys)

    def dense(shape, fan_in):
        return jax.random.normal(next(it), shape, jnp.float32) / jnp.sqrt(float(fan_in))

    p = {}
    p["cont_w1"] = dense((F_CONT, MLP1_HID), 1)
    p["cont_b1"] = 0.01 * jax.random.normal(next(it), (F_CONT, MLP1_HID), jnp.float32)
    p["cont_w2"] = dense((F_CONT, MLP1_HID, DIM), MLP1_HID)
    p["cont_b2"] = 0.01 * jax.random.normal(next(it), (F_CONT, DIM), jnp.float32)
    p["mask_embeds"] = 0.02 * jax.random.normal(next(it), (2 * F_CONT, DIM), jnp.float32)
    p["cat_embeds"] = 0.02 * jax.random.normal(next(it), (1, DIM), jnp.float32)

    layers = []
    for _ in range(DEPTH):
        g1 = jnp.ones((1, DIM), jnp.float32)
        be1 = jnp.zeros((1, DIM), jnp.float32)
        wqkv = dense((DIM, 3 * INNER), DIM)
        wo = dense((INNER, DIM), INNER)
        bo = jnp.zeros((1, DIM), jnp.float32)
        g2 = jnp.ones((1, DIM), jnp.float32)
        be2 = jnp.zeros((1, DIM), jnp.float32)
        wf1 = dense((DIM, 2 * FF_HID), DIM)           # GEGLU: project to 2 * (4*D)
        bf1 = jnp.zeros((1, 2 * FF_HID), jnp.float32)
        wf2 = dense((FF_HID, DIM), FF_HID)
        bf2 = jnp.zeros((1, DIM), jnp.float32)
        layers.append((g1, be1, wqkv, wo, bo, g2, be2, wf1, bf1, wf2, bf2))
    p["layers"] = layers

    p["y_w1"] = dense((DIM, MLPY_HID), DIM)
    p["y_b1"] = jnp.zeros((1, MLPY_HID), jnp.float32)
    p["y_w2"] = dense((MLPY_HID, Y_DIM), MLPY_HID)
    p["y_b2"] = jnp.zeros((1, Y_DIM), jnp.float32)
    return p


if __name__ == "__main__":
    key = jax.random.PRNGKey(0)
    kp, kx = jax.random.split(key)
    params = init_params(kp)

    B = 16                                            # 2 batch tiles of TB=8 (exercises the grid)
    x_cont = jax.random.normal(kx, (B, F_CONT), jnp.float32)
    x_cont = x_cont.at[1, 2].set(jnp.nan)             # exercise the NaN-mask embedding path
    x_cat_col = jnp.zeros((B, 1), jnp.float32)        # single category (categories=(1,)) -> index 0
    x = jnp.concatenate([x_cat_col, x_cont], axis=1)  # (B, 1 + F_CONT)

    out = jax.jit(my_saint_forward)(x, params)
    out = jax.block_until_ready(out)
    assert out.shape == (B,) and out.dtype == jnp.float32
    assert bool(jnp.all(jnp.isfinite(out)))
    print("KERNEL_OK")
</pallas_src>

<mosaic_0001>
module attributes {stable_mosaic.version = 11 : i64} {
  func.func @fused_forward_kernel(%arg0: i32, %arg1: memref<8x4xf32, #tpu.memory_space<vmem>>, %arg2: memref<8x4xf32, #tpu.memory_space<vmem>>, %arg3: memref<8x32xf32, #tpu.memory_space<vmem>>, %arg4: memref<4x128xf32, #tpu.memory_space<vmem>>, %arg5: memref<4x128xf32, #tpu.memory_space<vmem>>, %arg6: memref<512x32xbf16, #tpu.memory_space<vmem>>, %arg7: memref<4x32xf32, #tpu.memory_space<vmem>>, %arg8: memref<4x32xf32, #tpu.memory_space<vmem>>, %arg9: memref<1x32xf32, #tpu.memory_space<vmem>>, %arg10: memref<1x32xf32, #tpu.memory_space<vmem>>, %arg11: memref<32x192xbf16, #tpu.memory_space<vmem>>, %arg12: memref<64x32xbf16, #tpu.memory_space<vmem>>, %arg13: memref<1x32xf32, #tpu.memory_space<vmem>>, %arg14: memref<1x32xf32, #tpu.memory_space<vmem>>, %arg15: memref<1x32xf32, #tpu.memory_space<vmem>>, %arg16: memref<32x256xbf16, #tpu.memory_space<vmem>>, %arg17: memref<1x256xf32, #tpu.memory_space<vmem>>, %arg18: memref<128x32xbf16, #tpu.memory_space<vmem>>, %arg19: memref<1x32xf32, #tpu.memory_space<vmem>>, %arg20: memref<1x32xf32, #tpu.memory_space<vmem>>, %arg21: memref<1x32xf32, #tpu.memory_space<vmem>>, %arg22: memref<32x192xbf16, #tpu.memory_space<vmem>>, %arg23: memref<64x32xbf16, #tpu.memory_space<vmem>>, %arg24: memref<1x32xf32, #tpu.memory_space<vmem>>, %arg25: memref<1x32xf32, #tpu.memory_space<vmem>>, %arg26: memref<1x32xf32, #tpu.memory_space<vmem>>, %arg27: memref<32x256xbf16, #tpu.memory_space<vmem>>, %arg28: memref<1x256xf32, #tpu.memory_space<vmem>>, %arg29: memref<128x32xbf16, #tpu.memory_space<vmem>>, %arg30: memref<1x32xf32, #tpu.memory_space<vmem>>, %arg31: memref<32x1024xbf16, #tpu.memory_space<vmem>>, %arg32: memref<1x1024xf32, #tpu.memory_space<vmem>>, %arg33: memref<1x1024xf32, #tpu.memory_space<vmem>>, %arg34: memref<1x1xf32, #tpu.memory_space<vmem>>, %arg35: memref<8x1xf32, #tpu.memory_space<vmem>>, %arg36: memref<40x32xf32, #tpu.memory_space<vmem>>) attributes {dimension_semantics = [#tpu.dimension_semantics<parallel>], iteration_bounds = array<i64: 2>, scalar_prefetch = 0 : i64, scratch_operands = 1 : i64, tpu.core_type = #tpu.core_type<tc>, window_params = [{transform_indices = @transform_0, window_bounds = array<i64: 8, 4>}, {transform_indices = @transform_1, window_bounds = array<i64: 8, 4>}, {transform_indices = @transform_2, window_bounds = array<i64: 8, 32>}, {pipeline_mode = #tpu.pipeline_mode<synchronous>, transform_indices = @transform_3, window_bounds = array<i64: 4, 128>}, {pipeline_mode = #tpu.pipeline_mode<synchronous>, transform_indices = @transform_4, window_bounds = array<i64: 4, 128>}, {pipeline_mode = #tpu.pipeline_mode<synchronous>, transform_indices = @transform_5, window_bounds = array<i64: 512, 32>}, {pipeline_mode = #tpu.pipeline_mode<synchronous>, transform_indices = @transform_6, window_bounds = array<i64: 4, 32>}, {pipeline_mode = #tpu.pipeline_mode<synchronous>, transform_indices = @transform_7, window_bounds = array<i64: 4, 32>}, {pipeline_mode = #tpu.pipeline_mode<synchronous>, transform_indices = @transform_8, window_bounds = array<i64: 1, 32>}, {pipeline_mode = #tpu.pipeline_mode<synchronous>, transform_indices = @transform_9, window_bounds = array<i64: 1, 32>}, {pipeline_mode = #tpu.pipeline_mode<synchronous>, transform_indices = @transform_10, window_bounds = array<i64: 32, 192>}, {pipeline_mode = #tpu.pipeline_mode<synchronous>, transform_indices = @transform_11, window_bounds = array<i64: 64, 32>}, {pipeline_mode = #tpu.pipeline_mode<synchronous>, transform_indices = @transform_12, window_bounds = array<i64: 1, 32>}, {pipeline_mode = #tpu.pipeline_mode<synchronous>, transform_indices = @transform_13, window_bounds = array<i64: 1, 32>}, {pipeline_mode = #tpu.pipeline_mode<synchronous>, transform_indices = @transform_14, window_bounds = array<i64: 1, 32>}, {pipeline_mode = #tpu.pipeline_mode<synchronous>, transform_indices = @transform_15, window_bounds = array<i64: 32, 256>}, {pipeline_mode = #tpu.pipeline_mode<synchronous>, transform_indices = @transform_16, window_bounds = array<i64: 1, 256>}, {pipeline_mode = #tpu.pipeline_mode<synchronous>, transform_indices = @transform_17, window_bounds = array<i64: 128, 32>}, {pipeline_mode = #tpu.pipeline_mode<synchronous>, transform_indices = @transform_18, window_bounds = array<i64: 1, 32>}, {pipeline_mode = #tpu.pipeline_mode<synchronous>, transform_indices = @transform_19, window_bounds = array<i64: 1, 32>}, {pipeline_mode = #tpu.pipeline_mode<synchronous>, transform_indices = @transform_20, window_bounds = array<i64: 1, 32>}, {pipeline_mode = #tpu.pipeline_mode<synchronous>, transform_indices = @transform_21, window_bounds = array<i64: 32, 192>}, {pipeline_mode = #tpu.pipeline_mode<synchronous>, transform_indices = @transform_22, window_bounds = array<i64: 64, 32>}, {pipeline_mode = #tpu.pipeline_mode<synchronous>, transform_indices = @transform_23, window_bounds = array<i64: 1, 32>}, {pipeline_mode = #tpu.pipeline_mode<synchronous>, transform_indices = @transform_24, window_bounds = array<i64: 1, 32>}, {pipeline_mode = #tpu.pipeline_mode<synchronous>, transform_indices = @transform_25, window_bounds = array<i64: 1, 32>}, {pipeline_mode = #tpu.pipeline_mode<synchronous>, transform_indices = @transform_26, window_bounds = array<i64: 32, 256>}, {pipeline_mode = #tpu.pipeline_mode<synchronous>, transform_indices = @transform_27, window_bounds = array<i64: 1, 256>}, {pipeline_mode = #tpu.pipeline_mode<synchronous>, transform_indices = @transform_28, window_bounds = array<i64: 128, 32>}, {pipeline_mode = #tpu.pipeline_mode<synchronous>, transform_indices = @transform_29, window_bounds = array<i64: 1, 32>}, {pipeline_mode = #tpu.pipeline_mode<synchronous>, transform_indices = @transform_30, window_bounds = array<i64: 32, 1024>}, {pipeline_mode = #tpu.pipeline_mode<synchronous>, transform_indices = @transform_31, window_bounds = array<i64: 1, 1024>}, {pipeline_mode = #tpu.pipeline_mode<synchronous>, transform_indices = @transform_32, window_bounds = array<i64: 1, 1024>}, {pipeline_mode = #tpu.pipeline_mode<synchronous>, transform_indices = @transform_33, window_bounds = array<i64: 1, 1>}, {transform_indices = @transform_34, window_bounds = array<i64: 8, 1>}]} {
    %c0 = arith.constant 0 : index
    %c0_0 = arith.constant 0 : index
    %0 = vector.load %arg3[%c0, %c0_0] : memref<8x32xf32, #tpu.memory_space<vmem>>, vector<8x32xf32>
    %c0_1 = arith.constant 0 : index
    %c0_2 = arith.constant 0 : index
    %1 = vector.load %arg36[%c0_1, %c0_2] : memref<40x32xf32, #tpu.memory_space<vmem>>, vector<8x32xf32>
    tpu.vector_store %arg36[%c0_1, %c0_2], %0 {strides = array<i32>} : memref<40x32xf32, #tpu.memory_space<vmem>>, vector<8x32xf32>,
    %c0_3 = arith.constant 0 : index
    %c0_4 = arith.constant 0 : index
    %2 = vector.load %arg1[%c0_3, %c0_4] : memref<8x4xf32, #tpu.memory_space<vmem>>, vector<8x4xf32>
    %c0_5 = arith.constant 0 : index
    %c0_6 = arith.constant 0 : index
    %3 = vector.load %arg2[%c0_5, %c0_6] : memref<8x4xf32, #tpu.memory_space<vmem>>, vector<8x4xf32>
    %4 = vector.extract_strided_slice %2 {offsets = [0, 0], sizes = [8, 1], strides = [1, 1]} : vector<8x4xf32> to vector<8x1xf32>
    %c0_7 = arith.constant 0 : index
    %c0_8 = arith.constant 0 : index
    %5 = vector.load %arg4[%c0_7, %c0_8] : memref<4x128xf32, #tpu.memory_space<vmem>>, vector<1x128xf32>
    %6 = vector.broadcast %4 : vector<8x1xf32> to vector<8x128xf32>
    %7 = vector.broadcast %5 : vector<1x128xf32> to vector<8x128xf32>
    %8 = arith.mulf %6, %7 : vector<8x128xf32>
    %c0_9 = arith.constant 0 : index
    %c0_10 = arith.constant 0 : index
    %9 = vector.load %arg5[%c0_9, %c0_10] : memref<4x128xf32, #tpu.memory_space<vmem>>, vector<1x128xf32>
    %10 = vector.broadcast %9 : vector<1x128xf32> to vector<8x128xf32>
    %11 = arith.addf %8, %10 : vector<8x128xf32>
    %cst = arith.constant 0.000000e+00 : f32
    %12 = vector.broadcast %cst : f32 to vector<8x128xf32>
    %13 = arith.maximumf %11, %12 : vector<8x128xf32>
    %c0_11 = arith.constant 0 : index
    %c0_12 = arith.constant 0 : index
    %14 = vector.load %arg6[%c0_11, %c0_12] : memref<512x32xbf16, #tpu.memory_space<vmem>>, vector<128x32xbf16>
    %15 = arith.truncf %13 : vector<8x128xf32> to vector<8x128xbf16>
    %cst_13 = arith.constant dense<0.000000e+00> : vector<8x32xf32>
    %16 = tpu.matmul %15, %14, %cst_13 {dimension_numbers = #tpu.dot_dimension_numbers<[1], [0], [0], [1], [0, 0, 1, 1], [], []>} : vector<8x128xbf16>, vector<128x32xbf16>, vector<8x32xf32> -> vector<8x32xf32>
    %c0_14 = arith.constant 0 : index
    %c0_15 = arith.constant 0 : index
    %17 = vector.load %arg7[%c0_14, %c0_15] : memref<4x32xf32, #tpu.memory_space<vmem>>, vector<1x32xf32>
    %18 = vector.broadcast %17 : vector<1x32xf32> to vector<8x32xf32>
    %19 = arith.addf %16, %18 : vector<8x32xf32>
    %20 = vector.extract_strided_slice %3 {offsets = [0, 0], sizes = [8, 1], strides = [1, 1]} : vector<8x4xf32> to vector<8x1xf32>
    %cst_16 = arith.constant 0.000000e+00 : f32
    %21 = vector.broadcast %cst_16 : f32 to vector<8x1xf32>
    %22 = arith.cmpf oeq, %20, %21 : vector<8x1xf32>
    %c0_17 = arith.constant 0 : index
    %c0_18 = arith.constant 0 : index
    %23 = vector.load %arg8[%c0_17, %c0_18] : memref<4x32xf32, #tpu.memory_space<vmem>>, vector<1x32xf32>
    %24 = vector.shape_cast %22 : vector<8x1xi1> to vector<8x1xi1>
    %25 = vector.broadcast %24 : vector<8x1xi1> to vector<8x32xi1>
    %26 = vector.shape_cast %23 : vector<1x32xf32> to vector<1x32xf32>
    %27 = vector.broadcast %26 : vector<1x32xf32> to vector<8x32xf32>
    %28 = arith.select %25, %27, %19 : vector<8x32xi1>, vector<8x32xf32>
    %c8 = arith.constant 8 : index
    %c0_19 = arith.constant 0 : index
    %29 = vector.load %arg36[%c8, %c0_19] : memref<40x32xf32, #tpu.memory_space<vmem>>, vector<8x32xf32>
    tpu.vector_store %arg36[%c8, %c0_19], %28 {strides = array<i32>} : memref<40x32xf32, #tpu.memory_space<vmem>>, vector<8x32xf32>,
    %30 = vector.extract_strided_slice %2 {offsets = [0, 1], sizes = [8, 1], strides = [1, 1]} : vector<8x4xf32> to vector<8x1xf32>
    %c1 = arith.constant 1 : index
    %c0_20 = arith.constant 0 : index
    %31 = vector.load %arg4[%c1, %c0_20] : memref<4x128xf32, #tpu.memory_space<vmem>>, vector<1x128xf32>
    %32 = vector.broadcast %30 : vector<8x1xf32> to vector<8x128xf32>
    %33 = vector.broadcast %31 : vector<1x128xf32> to vector<8x128xf32>
    %34 = arith.mulf %32, %33 : vector<8x128xf32>
    %c1_21 = arith.constant 1 : index
    %c0_22 = arith.constant 0 : index
    %35 = vector.load %arg5[%c1_21, %c0_22] : memref<4x128xf32, #tpu.memory_space<vmem>>, vector<1x128xf32>
    %36 = vector.broadcast %35 : vector<1x128xf32> to vector<8x128xf32>
    %37 = arith.addf %34, %36 : vector<8x128xf32>
    %cst_23 = arith.constant 0.000000e+00 : f32
    %38 = vector.broadcast %cst_23 : f32 to vector<8x128xf32>
    %39 = arith.maximumf %37, %38 : vector<8x128xf32>
    %c128 = arith.constant 128 : index
    %c0_24 = arith.constant 0 : index
    %40 = vector.load %arg6[%c128, %c0_24] : memref<512x32xbf16, #tpu.memory_space<vmem>>, vector<128x32xbf16>
    %41 = arith.truncf %39 : vector<8x128xf32> to vector<8x128xbf16>
    %cst_25 = arith.constant dense<0.000000e+00> : vector<8x32xf32>
    %42 = tpu.matmul %41, %40, %cst_25 {dimension_numbers = #tpu.dot_dimension_numbers<[1], [0], [0], [1], [0, 0, 1, 1], [], []>} : vector<8x128xbf16>, vector<128x32xbf16>, vector<8x32xf32> -> vector<8x32xf32>
    %c1_26 = arith.constant 1 : index
    %c0_27 = arith.constant 0 : index
    %43 = vector.load %arg7[%c1_26, %c0_27] : memref<4x32xf32, #tpu.memory_space<vmem>>, vector<1x32xf32>
    %44 = vector.broadcast %43 : vector<1x32xf32> to vector<8x32xf32>
    %45 = arith.addf %42, %44 : vector<8x32xf32>
    %46 = vector.extract_strided_slice %3 {offsets = [0, 1], sizes = [8, 1], strides = [1, 1]} : vector<8x4xf32> to vector<8x1xf32>
    %cst_28 = arith.constant 0.000000e+00 : f32
    %47 = vector.broadcast %cst_28 : f32 to vector<8x1xf32>
    %48 = arith.cmpf oeq, %46, %47 : vector<8x1xf32>
    %c1_29 = arith.constant 1 : index
    %c0_30 = arith.constant 0 : index
    %49 = vector.load %arg8[%c1_29, %c0_30] : memref<4x32xf32, #tpu.memory_space<vmem>>, vector<1x32xf32>
    %50 = vector.shape_cast %48 : vector<8x1xi1> to vector<8x1xi1>
    %51 = vector.broadcast %50 : vector<8x1xi1> to vector<8x32xi1>
    %52 = vector.shape_cast %49 : vector<1x32xf32> to vector<1x32xf32>
    %53 = vector.broadcast %52 : vector<1x32xf32> to vector<8x32xf32>
    %54 = arith.select %51, %53, %45 : vector<8x32xi1>, vector<8x32xf32>
    %c16 = arith.constant 16 : index
    %c0_31 = arith.constant 0 : index
    %55 = vector.load %arg36[%c16, %c0_31] : memref<40x32xf32, #tpu.memory_space<vmem>>, vector<8x32xf32>
    tpu.vector_store %arg36[%c16, %c0_31], %54 {strides = array<i32>} : memref<40x32xf32, #tpu.memory_space<vmem>>, vector<8x32xf32>,
    %56 = vector.extract_strided_slice %2 {offsets = [0, 2], sizes = [8, 1], strides = [1, 1]} : vector<8x4xf32> to vector<8x1xf32>
    %c2 = arith.constant 2 : index
    %c0_32 = arith.constant 0 : index
    %57 = vector.load %arg4[%c2, %c0_32] : memref<4x128xf32, #tpu.memory_space<vmem>>, vector<1x128xf32>
    %58 = vector.broadcast %56 : vector<8x1xf32> to vector<8x128xf32>
    %59 = vector.broadcast %57 : vector<1x128xf32> to vector<8x128xf32>
    %60 = arith.mulf %58, %59 : vector<8x128xf32>
    %c2_33 = arith.constant 2 : index
    %c0_34 = arith.constant 0 : index
    %61 = vector.load %arg5[%c2_33, %c0_34] : memref<4x128xf32, #tpu.memory_space<vmem>>, vector<1x128xf32>
    %62 = vector.broadcast %61 : vector<1x128xf32> to vector<8x128xf32>
    %63 = arith.addf %60, %62 : vector<8x128xf32>
    %cst_35 = arith.constant 0.000000e+00 : f32
    %64 = vector.broadcast %cst_35 : f32 to vector<8x128xf32>
    %65 = arith.maximumf %63, %64 : vector<8x128xf32>
    %c256 = arith.constant 256 : index
    %c0_36 = arith.constant 0 : index
    %66 = vector.load %arg6[%c256, %c0_36] : memref<512x32xbf16, #tpu.memory_space<vmem>>, vector<128x32xbf16>
    %67 = arith.truncf %65 : vector<8x128xf32> to vector<8x128xbf16>
    %cst_37 = arith.constant dense<0.000000e+00> : vector<8x32xf32>
    %68 = tpu.matmul %67, %66, %cst_37 {dimension_numbers = #tpu.dot_dimension_numbers<[1], [0], [0], [1], [0, 0, 1, 1], [], []>} : vector<8x128xbf16>, vector<128x32xbf16>, vector<8x32xf32> -> vector<8x32xf32>
    %c2_38 = arith.constant 2 : index
    %c0_39 = arith.constant 0 : index
    %69 = vector.load %arg7[%c2_38, %c0_39] : memref<4x32xf32, #tpu.memory_space<vmem>>, vector<1x32xf32>
    %70 = vector.broadcast %69 : vector<1x32xf32> to vector<8x32xf32>
    %71 = arith.addf %68, %70 : vector<8x32xf32>
    %72 = vector.extract_strided_slice %3 {offsets = [0, 2], sizes = [8, 1], strides = [1, 1]} : vector<8x4xf32> to vector<8x1xf32>
    %cst_40 = arith.constant 0.000000e+00 : f32
    %73 = vector.broadcast %cst_40 : f32 to vector<8x1xf32>
    %74 = arith.cmpf oeq, %72, %73 : vector<8x1xf32>
    %c2_41 = arith.constant 2 : index
    %c0_42 = arith.constant 0 : index
    %75 = vector.load %arg8[%c2_41, %c0_42] : memref<4x32xf32, #tpu.memory_space<vmem>>, vector<1x32xf32>
    %76 = vector.shape_cast %74 : vector<8x1xi1> to vector<8x1xi1>
    %77 = vector.broadcast %76 : vector<8x1xi1> to vector<8x32xi1>
    %78 = vector.shape_cast %75 : vector<1x32xf32> to vector<1x32xf32>
    %79 = vector.broadcast %78 : vector<1x32xf32> to vector<8x32xf32>
    %80 = arith.select %77, %79, %71 : vector<8x32xi1>, vector<8x32xf32>
    %c24 = arith.constant 24 : index
    %c0_43 = arith.constant 0 : index
    %81 = vector.load %arg36[%c24, %c0_43] : memref<40x32xf32, #tpu.memory_space<vmem>>, vector<8x32xf32>
    tpu.vector_store %arg36[%c24, %c0_43], %80 {strides = array<i32>} : memref<40x32xf32, #tpu.memory_space<vmem>>, vector<8x32xf32>,
    %82 = vector.extract_strided_slice %2 {offsets = [0, 3], sizes = [8, 1], strides = [1, 1]} : vector<8x4xf32> to vector<8x1xf32>
    %c3 = arith.constant 3 : index
    %c0_44 = arith.constant 0 : index
    %83 = vector.load %arg4[%c3, %c0_44] : memref<4x128xf32, #tpu.memory_space<vmem>>, vector<1x128xf32>
    %84 = vector.broadcast %82 : vector<8x1xf32> to vector<8x128xf32>
    %85 = vector.broadcast %83 : vector<1x128xf32> to vector<8x128xf32>
    %86 = arith.mulf %84, %85 : vector<8x128xf32>
    %c3_45 = arith.constant 3 : index
    %c0_46 = arith.constant 0 : index
    %87 = vector.load %arg5[%c3_45, %c0_46] : memref<4x128xf32, #tpu.memory_space<vmem>>, vector<1x128xf32>
    %88 = vector.broadcast %87 : vector<1x128xf32> to vector<8x128xf32>
    %89 = arith.addf %86, %88 : vector<8x128xf32>
    %cst_47 = arith.constant 0.000000e+00 : f32
    %90 = vector.broadcast %cst_47 : f32 to vector<8x128xf32>
    %91 = arith.maximumf %89, %90 : vector<8x128xf32>
    %c384 = arith.constant 384 : index
    %c0_48 = arith.constant 0 : index
    %92 = vector.load %arg6[%c384, %c0_48] : memref<512x32xbf16, #tpu.memory_space<vmem>>, vector<128x32xbf16>
    %93 = arith.truncf %91 : vector<8x128xf32> to vector<8x128xbf16>
    %cst_49 = arith.constant dense<0.000000e+00> : vector<8x32xf32>
    %94 = tpu.matmul %93, %92, %cst_49 {dimension_numbers = #tpu.dot_dimension_numbers<[1], [0], [0], [1], [0, 0, 1, 1], [], []>} : vector<8x128xbf16>, vector<128x32xbf16>, vector<8x32xf32> -> vector<8x32xf32>
    %c3_50 = arith.constant 3 : index
    %c0_51 = arith.constant 0 : index
    %95 = vector.load %arg7[%c3_50, %c0_51] : memref<4x32xf32, #tpu.memory_space<vmem>>, vector<1x32xf32>
    %96 = vector.broadcast %95 : vector<1x32xf32> to vector<8x32xf32>
    %97 = arith.addf %94, %96 : vector<8x32xf32>
    %98 = vector.extract_strided_slice %3 {offsets = [0, 3], sizes = [8, 1], strides = [1, 1]} : vector<8x4xf32> to vector<8x1xf32>
    %cst_52 = arith.constant 0.000000e+00 : f32
    %99 = vector.broadcast %cst_52 : f32 to vector<8x1xf32>
    %100 = arith.cmpf oeq, %98, %99 : vector<8x1xf32>
    %c3_53 = arith.constant 3 : index
    %c0_54 = arith.constant 0 : index
    %101 = vector.load %arg8[%c3_53, %c0_54] : memref<4x32xf32, #tpu.memory_space<vmem>>, vector<1x32xf32>
    %102 = vector.shape_cast %100 : vector<8x1xi1> to vector<8x1xi1>
    %103 = vector.broadcast %102 : vector<8x1xi1> to vector<8x32xi1>
    %104 = vector.shape_cast %101 : vector<1x32xf32> to vector<1x32xf32>
    %105 = vector.broadcast %104 : vector<1x32xf32> to vector<8x32xf32>
    %106 = arith.select %103, %105, %97 : vector<8x32xi1>, vector<8x32xf32>
    %c32 = arith.constant 32 : index
    %c0_55 = arith.constant 0 : index
    %107 = vector.load %arg36[%c32, %c0_55] : memref<40x32xf32, #tpu.memory_space<vmem>>, vector<8x32xf32>
    tpu.vector_store %arg36[%c32, %c0_55], %106 {strides = array<i32>} : memref<40x32xf32, #tpu.memory_space<vmem>>, vector<8x32xf32>,
    %c0_56 = arith.constant 0 : index
    %c0_57 = arith.constant 0 : index
    %108 = vector.load %arg36[%c0_56, %c0_57] : memref<40x32xf32, #tpu.memory_space<vmem>>, vector<40x32xf32>
    %109 = tpu.iota {dimensions = array<i32: 0>} : vector<40x1xi32>
    %c7_i32 = arith.constant 7 : i32
    %110 = vector.broadcast %c7_i32 : i32 to vector<40x1xi32>
    %111 = arith.andi %109, %110 : vector<40x1xi32>
    %112 = tpu.iota {dimensions = array<i32: 1>} : vector<1x40xi32>
    %c7_i32_58 = arith.constant 7 : i32
    %113 = vector.broadcast %c7_i32_58 : i32 to vector<1x40xi32>
    %114 = arith.andi %112, %113 : vector<1x40xi32>
    %115 = vector.broadcast %111 : vector<40x1xi32> to vector<40x40xi32>
    %116 = vector.broadcast %114 : vector<1x40xi32> to vector<40x40xi32>
    %117 = arith.cmpi eq, %115, %116 : vector<40x40xi32>
    %cst_59 = arith.constant 0.000000e+00 : f32
    %cst_60 = arith.constant -1.000000e+30 : f32
    %118 = vector.broadcast %cst_59 : f32 to vector<40x40xf32>
    %119 = vector.broadcast %cst_60 : f32 to vector<40x40xf32>
    %120 = arith.select %117, %118, %119 : vector<40x40xi1>, vector<40x40xf32>
    %c0_61 = arith.constant 0 : index
    %c0_62 = arith.constant 0 : index
    %121 = vector.load %arg9[%c0_61, %c0_62] : memref<1x32xf32, #tpu.memory_space<vmem>>, vector<1x32xf32>
    %c0_63 = arith.constant 0 : index
    %c0_64 = arith.constant 0 : index
    %122 = vector.load %arg10[%c0_63, %c0_64] : memref<1x32xf32, #tpu.memory_space<vmem>>, vector<1x32xf32>
    %cst_65 = arith.constant dense<0.000000e+00> : vector<40xf32>
    %123 = vector.multi_reduction <add>, %108, %cst_65 [1] : vector<40x32xf32> to vector<40xf32>
    %124 = vector.shape_cast %123 : vector<40xf32> to vector<40x1xf32>
    %cst_66 = arith.constant 3.200000e+01 : f32
    %125 = vector.broadcast %cst_66 : f32 to vector<40x1xf32>
    %126 = arith.divf %124, %125 : vector<40x1xf32>
    %127 = vector.broadcast %126 : vector<40x1xf32> to vector<40x32xf32>
    %128 = arith.subf %108, %127 : vector<40x32xf32>
    %129 = arith.mulf %128, %128 : vector<40x32xf32>
    %cst_67 = arith.constant dense<0.000000e+00> : vector<40xf32>
    %130 = vector.multi_reduction <add>, %129, %cst_67 [1] : vector<40x32xf32> to vector<40xf32>
    %131 = vector.shape_cast %130 : vector<40xf32> to vector<40x1xf32>
    %cst_68 = arith.constant 3.200000e+01 : f32
    %132 = vector.broadcast %cst_68 : f32 to vector<40x1xf32>
    %133 = arith.divf %131, %132 : vector<40x1xf32>
    %cst_69 = arith.constant 9.99999974E-6 : f32
    %134 = vector.broadcast %cst_69 : f32 to vector<40x1xf32>
    %135 = arith.addf %133, %134 : vector<40x1xf32>
    %136 = math.rsqrt %135 : vector<40x1xf32>
    %137 = vector.broadcast %136 : vector<40x1xf32> to vector<40x32xf32>
    %138 = arith.mulf %128, %137 : vector<40x32xf32>
    %139 = vector.broadcast %121 : vector<1x32xf32> to vector<40x32xf32>
    %140 = arith.mulf %138, %139 : vector<40x32xf32>
    %141 = vector.broadcast %122 : vector<1x32xf32> to vector<40x32xf32>
    %142 = arith.addf %140, %141 : vector<40x32xf32>
    %c0_70 = arith.constant 0 : index
    %c0_71 = arith.constant 0 : index
    %143 = vector.load %arg11[%c0_70, %c0_71] : memref<32x192xbf16, #tpu.memory_space<vmem>>, vector<32x192xbf16>
    %144 = arith.truncf %142 : vector<40x32xf32> to vector<40x32xbf16>
    %cst_72 = arith.constant dense<0.000000e+00> : vector<40x192xf32>
    %145 = tpu.matmul %144, %143, %cst_72 {dimension_numbers = #tpu.dot_dimension_numbers<[1], [0], [0], [1], [0, 0, 1, 1], [], []>} : vector<40x32xbf16>, vector<32x192xbf16>, vector<40x192xf32> -> vector<40x192xf32>
    %146 = vector.extract_strided_slice %145 {offsets = [0, 0], sizes = [40, 16], strides = [1, 1]} : vector<40x192xf32> to vector<40x16xf32>
    %147 = vector.extract_strided_slice %145 {offsets = [0, 64], sizes = [40, 16], strides = [1, 1]} : vector<40x192xf32> to vector<40x16xf32>
    %148 = vector.extract_strided_slice %145 {offsets = [0, 128], sizes = [40, 16], strides = [1, 1]} : vector<40x192xf32> to vector<40x16xf32>
    %149 = arith.truncf %146 : vector<40x16xf32> to vector<40x16xbf16>
    %150 = arith.truncf %147 : vector<40x16xf32> to vector<40x16xbf16>
    %cst_73 = arith.constant dense<0.000000e+00> : vector<40x40xf32>
    %151 = tpu.matmul %149, %150, %cst_73 {dimension_numbers = #tpu.dot_dimension_numbers<[1], [1], [0], [0], [0, 0, 1, 0], [], []>} : vector<40x16xbf16>, vector<40x16xbf16>, vector<40x40xf32> -> vector<40x40xf32>
    %152 = arith.addf %151, %120 : vector<40x40xf32>
    %cst_74 = arith.constant dense<0xFF800000> : vector<40xf32>
    %153 = vector.multi_reduction <maximumf>, %152, %cst_74 [1] : vector<40x40xf32> to vector<40xf32>
    %154 = vector.shape_cast %153 : vector<40xf32> to vector<40x1xf32>
    %155 = vector.broadcast %154 : vector<40x1xf32> to vector<40x40xf32>
    %156 = arith.subf %152, %155 : vector<40x40xf32>
    %157 = math.exp %156 : vector<40x40xf32>
    %158 = arith.truncf %157 : vector<40x40xf32> to vector<40x40xbf16>
    %159 = arith.truncf %148 : vector<40x16xf32> to vector<40x16xbf16>
    %cst_75 = arith.constant dense<0.000000e+00> : vector<40x16xf32>
    %160 = tpu.matmul %158, %159, %cst_75 {dimension_numbers = #tpu.dot_dimension_numbers<[1], [0], [0], [1], [0, 0, 1, 1], [], []>} : vector<40x40xbf16>, vector<40x16xbf16>, vector<40x16xf32> -> vector<40x16xf32>
    %cst_76 = arith.constant dense<0.000000e+00> : vector<40xf32>
    %161 = vector.multi_reduction <add>, %157, %cst_76 [1] : vector<40x40xf32> to vector<40xf32>
    %162 = vector.shape_cast %161 : vector<40xf32> to vector<40x1xf32>
    %163 = tpu.reciprocal %162 {approx = true} : vector<40x1xf32> -> vector<40x1xf32>
    %164 = vector.broadcast %163 : vector<40x1xf32> to vector<40x16xf32>
    %165 = arith.mulf %160, %164 : vector<40x16xf32>
    %c0_77 = arith.constant 0 : index
    %c0_78 = arith.constant 0 : index
    %166 = vector.load %arg12[%c0_77, %c0_78] : memref<64x32xbf16, #tpu.memory_space<vmem>>, vector<16x32xbf16>
    %167 = arith.truncf %165 : vector<40x16xf32> to vector<40x16xbf16>
    %cst_79 = arith.constant dense<0.000000e+00> : vector<40x32xf32>
    %168 = tpu.matmul %167, %166, %cst_79 {dimension_numbers = #tpu.dot_dimension_numbers<[1], [0], [0], [1], [0, 0, 1, 1], [], []>} : vector<40x16xbf16>, vector<16x32xbf16>, vector<40x32xf32> -> vector<40x32xf32>
    %169 = vector.extract_strided_slice %145 {offsets = [0, 16], sizes = [40, 16], strides = [1, 1]} : vector<40x192xf32> to vector<40x16xf32>
    %170 = vector.extract_strided_slice %145 {offsets = [0, 80], sizes = [40, 16], strides = [1, 1]} : vector<40x192xf32> to vector<40x16xf32>
    %171 = vector.extract_strided_slice %145 {offsets = [0, 144], sizes = [40, 16], strides = [1, 1]} : vector<40x192xf32> to vector<40x16xf32>
    %172 = arith.truncf %169 : vector<40x16xf32> to vector<40x16xbf16>
    %173 = arith.truncf %170 : vector<40x16xf32> to vector<40x16xbf16>
    %cst_80 = arith.constant dense<0.000000e+00> : vector<40x40xf32>
    %174 = tpu.matmul %172, %173, %cst_80 {dimension_numbers = #tpu.dot_dimension_numbers<[1], [1], [0], [0], [0, 0, 1, 0], [], []>} : vector<40x16xbf16>, vector<40x16xbf16>, vector<40x40xf32> -> vector<40x40xf32>
    %175 = arith.addf %174, %120 : vector<40x40xf32>
    %cst_81 = arith.constant dense<0xFF800000> : vector<40xf32>
    %176 = vector.multi_reduction <maximumf>, %175, %cst_81 [1] : vector<40x40xf32> to vector<40xf32>
    %177 = vector.shape_cast %176 : vector<40xf32> to vector<40x1xf32>
    %178 = vector.broadcast %177 : vector<40x1xf32> to vector<40x40xf32>
    %179 = arith.subf %175, %178 : vector<40x40xf32>
    %180 = math.exp %179 : vector<40x40xf32>
    %181 = arith.truncf %180 : vector<40x40xf32> to vector<40x40xbf16>
    %182 = arith.truncf %171 : vector<40x16xf32> to vector<40x16xbf16>
    %cst_82 = arith.constant dense<0.000000e+00> : vector<40x16xf32>
    %183 = tpu.matmul %181, %182, %cst_82 {dimension_numbers = #tpu.dot_dimension_numbers<[1], [0], [0], [1], [0, 0, 1, 1], [], []>} : vector<40x40xbf16>, vector<40x16xbf16>, vector<40x16xf32> -> vector<40x16xf32>
    %cst_83 = arith.constant dense<0.000000e+00> : vector<40xf32>
    %184 = vector.multi_reduction <add>, %180, %cst_83 [1] : vector<40x40xf32> to vector<40xf32>
    %185 = vector.shape_cast %184 : vector<40xf32> to vector<40x1xf32>
    %186 = tpu.reciprocal %185 {approx = true} : vector<40x1xf32> -> vector<40x1xf32>
    %187 = vector.broadcast %186 : vector<40x1xf32> to vector<40x16xf32>
    %188 = arith.mulf %183, %187 : vector<40x16xf32>
    %c16_84 = arith.constant 16 : index
    %c0_85 = arith.constant 0 : index
    %189 = vector.load %arg12[%c16_84, %c0_85] : memref<64x32xbf16, #tpu.memory_space<vmem>>, vector<16x32xbf16>
    %190 = arith.truncf %188 : vector<40x16xf32> to vector<40x16xbf16>
    %cst_86 = arith.constant dense<0.000000e+00> : vector<40x32xf32>
    %191 = tpu.matmul %190, %189, %cst_86 {dimension_numbers = #tpu.dot_dimension_numbers<[1], [0], [0], [1], [0, 0, 1, 1], [], []>} : vector<40x16xbf16>, vector<16x32xbf16>, vector<40x32xf32> -> vector<40x32xf32>
    %192 = arith.addf %168, %191 : vector<40x32xf32>
    %193 = vector.extract_strided_slice %145 {offsets = [0, 32], sizes = [40, 16], strides = [1, 1]} : vector<40x192xf32> to vector<40x16xf32>
    %194 = vector.extract_strided_slice %145 {offsets = [0, 96], sizes = [40, 16], strides = [1, 1]} : vector<40x192xf32> to vector<40x16xf32>
    %195 = vector.extract_strided_slice %145 {offsets = [0, 160], sizes = [40, 16], strides = [1, 1]} : vector<40x192xf32> to vector<40x16xf32>
    %196 = arith.truncf %193 : vector<40x16xf32> to vector<40x16xbf16>
    %197 = arith.truncf %194 : vector<40x16xf32> to vector<40x16xbf16>
    %cst_87 = arith.constant dense<0.000000e+00> : vector<40x40xf32>
    %198 = tpu.matmul %196, %197, %cst_87 {dimension_numbers = #tpu.dot_dimension_numbers<[1], [1], [0], [0], [0, 0, 1, 0], [], []>} : vector<40x16xbf16>, vector<40x16xbf16>, vector<40x40xf32> -> vector<40x40xf32>
    %199 = arith.addf %198, %120 : vector<40x40xf32>
    %cst_88 = arith.constant dense<0xFF800000> : vector<40xf32>
    %200 = vector.multi_reduction <maximumf>, %199, %cst_88 [1] : vector<40x40xf32> to vector<40xf32>
    %201 = vector.shape_cast %200 : vector<40xf32> to vector<40x1xf32>
    %202 = vector.broadcast %201 : vector<40x1xf32> to vector<40x40xf32>
    %203 = arith.subf %199, %202 : vector<40x40xf32>
    %204 = math.exp %203 : vector<40x40xf32>
    %205 = arith.truncf %204 : vector<40x40xf32> to vector<40x40xbf16>
    %206 = arith.truncf %195 : vector<40x16xf32> to vector<40x16xbf16>
    %cst_89 = arith.constant dense<0.000000e+00> : vector<40x16xf32>
    %207 = tpu.matmul %205, %206, %cst_89 {dimension_numbers = #tpu.dot_dimension_numbers<[1], [0], [0], [1], [0, 0, 1, 1], [], []>} : vector<40x40xbf16>, vector<40x16xbf16>, vector<40x16xf32> -> vector<40x16xf32>
    %cst_90 = arith.constant dense<0.000000e+00> : vector<40xf32>
    %208 = vector.multi_reduction <add>, %204, %cst_90 [1] : vector<40x40xf32> to vector<40xf32>
    %209 = vector.shape_cast %208 : vector<40xf32> to vector<40x1xf32>
    %210 = tpu.reciprocal %209 {approx = true} : vector<40x1xf32> -> vector<40x1xf32>
    %211 = vector.broadcast %210 : vector<40x1xf32> to vector<40x16xf32>
    %212 = arith.mulf %207, %211 : vector<40x16xf32>
    %c32_91 = arith.constant 32 : index
    %c0_92 = arith.constant 0 : index
    %213 = vector.load %arg12[%c32_91, %c0_92] : memref<64x32xbf16, #tpu.memory_space<vmem>>, vector<16x32xbf16>
    %214 = arith.truncf %212 : vector<40x16xf32> to vector<40x16xbf16>
    %cst_93 = arith.constant dense<0.000000e+00> : vector<40x32xf32>
    %215 = tpu.matmul %214, %213, %cst_93 {dimension_numbers = #tpu.dot_dimension_numbers<[1], [0], [0], [1], [0, 0, 1, 1], [], []>} : vector<40x16xbf16>, vector<16x32xbf16>, vector<40x32xf32> -> vector<40x32xf32>
    %216 = arith.addf %192, %215 : vector<40x32xf32>
    %217 = vector.extract_strided_slice %145 {offsets = [0, 48], sizes = [40, 16], strides = [1, 1]} : vector<40x192xf32> to vector<40x16xf32>
    %218 = vector.extract_strided_slice %145 {offsets = [0, 112], sizes = [40, 16], strides = [1, 1]} : vector<40x192xf32> to vector<40x16xf32>
    %219 = vector.extract_strided_slice %145 {offsets = [0, 176], sizes = [40, 16], strides = [1, 1]} : vector<40x192xf32> to vector<40x16xf32>
    %220 = arith.truncf %217 : vector<40x16xf32> to vector<40x16xbf16>
    %221 = arith.truncf %218 : vector<40x16xf32> to vector<40x16xbf16>
    %cst_94 = arith.constant dense<0.000000e+00> : vector<40x40xf32>
    %222 = tpu.matmul %220, %221, %cst_94 {dimension_numbers = #tpu.dot_dimension_numbers<[1], [1], [0], [0], [0, 0, 1, 0], [], []>} : vector<40x16xbf16>, vector<40x16xbf16>, vector<40x40xf32> -> vector<40x40xf32>
    %223 = arith.addf %222, %120 : vector<40x40xf32>
    %cst_95 = arith.constant dense<0xFF800000> : vector<40xf32>
    %224 = vector.multi_reduction <maximumf>, %223, %cst_95 [1] : vector<40x40xf32> to vector<40xf32>
    %225 = vector.shape_cast %224 : vector<40xf32> to vector<40x1xf32>
    %226 = vector.broadcast %225 : vector<40x1xf32> to vector<40x40xf32>
    %227 = arith.subf %223, %226 : vector<40x40xf32>
    %228 = math.exp %227 : vector<40x40xf32>
    %229 = arith.truncf %228 : vector<40x40xf32> to vector<40x40xbf16>
    %230 = arith.truncf %219 : vector<40x16xf32> to vector<40x16xbf16>
    %cst_96 = arith.constant dense<0.000000e+00> : vector<40x16xf32>
    %231 = tpu.matmul %229, %230, %cst_96 {dimension_numbers = #tpu.dot_dimension_numbers<[1], [0], [0], [1], [0, 0, 1, 1], [], []>} : vector<40x40xbf16>, vector<40x16xbf16>, vector<40x16xf32> -> vector<40x16xf32>
    %cst_97 = arith.constant dense<0.000000e+00> : vector<40xf32>
    %232 = vector.multi_reduction <add>, %228, %cst_97 [1] : vector<40x40xf32> to vector<40xf32>
    %233 = vector.shape_cast %232 : vector<40xf32> to vector<40x1xf32>
    %234 = tpu.reciprocal %233 {approx = true} : vector<40x1xf32> -> vector<40x1xf32>
    %235 = vector.broadcast %234 : vector<40x1xf32> to vector<40x16xf32>
    %236 = arith.mulf %231, %235 : vector<40x16xf32>
    %c48 = arith.constant 48 : index
    %c0_98 = arith.constant 0 : index
    %237 = vector.load %arg12[%c48, %c0_98] : memref<64x32xbf16, #tpu.memory_space<vmem>>, vector<16x32xbf16>
    %238 = arith.truncf %236 : vector<40x16xf32> to vector<40x16xbf16>
    %cst_99 = arith.constant dense<0.000000e+00> : vector<40x32xf32>
    %239 = tpu.matmul %238, %237, %cst_99 {dimension_numbers = #tpu.dot_dimension_numbers<[1], [0], [0], [1], [0, 0, 1, 1], [], []>} : vector<40x16xbf16>, vector<16x32xbf16>, vector<40x32xf32> -> vector<40x32xf32>
    %240 = arith.addf %216, %239 : vector<40x32xf32>
    %c0_100 = arith.constant 0 : index
    %c0_101 = arith.constant 0 : index
    %241 = vector.load %arg13[%c0_100, %c0_101] : memref<1x32xf32, #tpu.memory_space<vmem>>, vector<1x32xf32>
    %242 = vector.broadcast %241 : vector<1x32xf32> to vector<40x32xf32>
    %243 = arith.addf %240, %242 : vector<40x32xf32>
    %244 = arith.addf %243, %142 : vector<40x32xf32>
    %c0_102 = arith.constant 0 : index
    %c0_103 = arith.constant 0 : index
    %245 = vector.load %arg14[%c0_102, %c0_103] : memref<1x32xf32, #tpu.memory_space<vmem>>, vector<1x32xf32>
    %c0_104 = arith.constant 0 : index
    %c0_105 = arith.constant 0 : index
    %246 = vector.load %arg15[%c0_104, %c0_105] : memref<1x32xf32, #tpu.memory_space<vmem>>, vector<1x32xf32>
    %cst_106 = arith.constant dense<0.000000e+00> : vector<40xf32>
    %247 = vector.multi_reduction <add>, %244, %cst_106 [1] : vector<40x32xf32> to vector<40xf32>
    %248 = vector.shape_cast %247 : vector<40xf32> to vector<40x1xf32>
    %cst_107 = arith.constant 3.200000e+01 : f32
    %249 = vector.broadcast %cst_107 : f32 to vector<40x1xf32>
    %250 = arith.divf %248, %249 : vector<40x1xf32>
    %251 = vector.broadcast %250 : vector<40x1xf32> to vector<40x32xf32>
    %252 = arith.subf %244, %251 : vector<40x32xf32>
    %253 = arith.mulf %252, %252 : vector<40x32xf32>
    %cst_108 = arith.constant dense<0.000000e+00> : vector<40xf32>
    %254 = vector.multi_reduction <add>, %253, %cst_108 [1] : vector<40x32xf32> to vector<40xf32>
    %255 = vector.shape_cast %254 : vector<40xf32> to vector<40x1xf32>
    %cst_109 = arith.constant 3.200000e+01 : f32
    %256 = vector.broadcast %cst_109 : f32 to vector<40x1xf32>
    %257 = arith.divf %255, %256 : vector<40x1xf32>
    %cst_110 = arith.constant 9.99999974E-6 : f32
    %258 = vector.broadcast %cst_110 : f32 to vector<40x1xf32>
    %259 = arith.addf %257, %258 : vector<40x1xf32>
    %260 = math.rsqrt %259 : vector<40x1xf32>
    %261 = vector.broadcast %260 : vector<40x1xf32> to vector<40x32xf32>
    %262 = arith.mulf %252, %261 : vector<40x32xf32>
    %263 = vector.broadcast %245 : vector<1x32xf32> to vector<40x32xf32>
    %264 = arith.mulf %262, %263 : vector<40x32xf32>
    %265 = vector.broadcast %246 : vector<1x32xf32> to vector<40x32xf32>
    %266 = arith.addf %264, %265 : vector<40x32xf32>
    %c0_111 = arith.constant 0 : index
    %c0_112 = arith.constant 0 : index
    %267 = vector.load %arg16[%c0_111, %c0_112] : memref<32x256xbf16, #tpu.memory_space<vmem>>, vector<32x256xbf16>
    %268 = arith.truncf %266 : vector<40x32xf32> to vector<40x32xbf16>
    %cst_113 = arith.constant dense<0.000000e+00> : vector<40x256xf32>
    %269 = tpu.matmul %268, %267, %cst_113 {dimension_numbers = #tpu.dot_dimension_numbers<[1], [0], [0], [1], [0, 0, 1, 1], [], []>} : vector<40x32xbf16>, vector<32x256xbf16>, vector<40x256xf32> -> vector<40x256xf32>
    %c0_114 = arith.constant 0 : index
    %c0_115 = arith.constant 0 : index
    %270 = vector.load %arg17[%c0_114, %c0_115] : memref<1x256xf32, #tpu.memory_space<vmem>>, vector<1x256xf32>
    %271 = vector.broadcast %270 : vector<1x256xf32> to vector<40x256xf32>
    %272 = arith.addf %269, %271 : vector<40x256xf32>
    %273 = vector.extract_strided_slice %272 {offsets = [0, 0], sizes = [40, 128], strides = [1, 1]} : vector<40x256xf32> to vector<40x128xf32>
    %274 = vector.extract_strided_slice %272 {offsets = [0, 128], sizes = [40, 128], strides = [1, 1]} : vector<40x256xf32> to vector<40x128xf32>
    %cst_116 = arith.constant 5.000000e-01 : f32
    %275 = vector.broadcast %cst_116 : f32 to vector<40x128xf32>
    %276 = arith.mulf %275, %274 : vector<40x128xf32>
    %cst_117 = arith.constant 0.707106769 : f32
    %277 = vector.broadcast %cst_117 : f32 to vector<40x128xf32>
    %278 = arith.mulf %274, %277 : vector<40x128xf32>
    %279 = math.absf %278 : vector<40x128xf32>
    %cst_118 = arith.constant 0.327591091 : f32
    %280 = vector.broadcast %cst_118 : f32 to vector<40x128xf32>
    %281 = arith.mulf %280, %279 : vector<40x128xf32>
    %cst_119 = arith.constant 1.000000e+00 : f32
    %282 = vector.broadcast %cst_119 : f32 to vector<40x128xf32>
    %283 = arith.addf %282, %281 : vector<40x128xf32>
    %cst_120 = arith.constant 1.000000e+00 : f32
    %284 = vector.broadcast %cst_120 : f32 to vector<40x128xf32>
    %285 = arith.divf %284, %283 : vector<40x128xf32>
    %cst_121 = arith.constant 1.06140542 : f32
    %286 = vector.broadcast %cst_121 : f32 to vector<40x128xf32>
    %287 = arith.mulf %286, %285 : vector<40x128xf32>
    %cst_122 = arith.constant -1.45315206 : f32
    %288 = vector.broadcast %cst_122 : f32 to vector<40x128xf32>
    %289 = arith.addf %287, %288 : vector<40x128xf32>
    %290 = arith.mulf %289, %285 : vector<40x128xf32>
    %cst_123 = arith.constant 1.42141378 : f32
    %291 = vector.broadcast %cst_123 : f32 to vector<40x128xf32>
    %292 = arith.addf %290, %291 : vector<40x128xf32>
    %293 = arith.mulf %292, %285 : vector<40x128xf32>
    %cst_124 = arith.constant -0.284496725 : f32
    %294 = vector.broadcast %cst_124 : f32 to vector<40x128xf32>
    %295 = arith.addf %293, %294 : vector<40x128xf32>
    %296 = arith.mulf %295, %285 : vector<40x128xf32>
    %cst_125 = arith.constant 0.254829586 : f32
    %297 = vector.broadcast %cst_125 : f32 to vector<40x128xf32>
    %298 = arith.addf %296, %297 : vector<40x128xf32>
    %299 = arith.mulf %298, %285 : vector<40x128xf32>
    %cst_126 = arith.constant 0.000000e+00 : f32
    %300 = vector.broadcast %cst_126 : f32 to vector<40x128xf32>
    %301 = arith.subf %300, %279 : vector<40x128xf32>
    %302 = arith.mulf %301, %279 : vector<40x128xf32>
    %303 = math.exp %302 : vector<40x128xf32>
    %304 = arith.mulf %299, %303 : vector<40x128xf32>
    %cst_127 = arith.constant 1.000000e+00 : f32
    %305 = vector.broadcast %cst_127 : f32 to vector<40x128xf32>
    %306 = arith.subf %305, %304 : vector<40x128xf32>
    %cst_128 = arith.constant 0.000000e+00 : f32
    %307 = vector.broadcast %cst_128 : f32 to vector<40x128xf32>
    %308 = arith.cmpf oge, %278, %307 : vector<40x128xf32>
    %cst_129 = arith.constant 0.000000e+00 : f32
    %309 = vector.broadcast %cst_129 : f32 to vector<40x128xf32>
    %310 = arith.subf %309, %306 : vector<40x128xf32>
    %311 = arith.select %308, %306, %310 : vector<40x128xi1>, vector<40x128xf32>
    %cst_130 = arith.constant 1.000000e+00 : f32
    %312 = vector.broadcast %cst_130 : f32 to vector<40x128xf32>
    %313 = arith.addf %312, %311 : vector<40x128xf32>
    %314 = arith.mulf %276, %313 : vector<40x128xf32>
    %315 = arith.mulf %273, %314 : vector<40x128xf32>
    %c0_131 = arith.constant 0 : index
    %c0_132 = arith.constant 0 : index
    %316 = vector.load %arg18[%c0_131, %c0_132] : memref<128x32xbf16, #tpu.memory_space<vmem>>, vector<128x32xbf16>
    %317 = arith.truncf %315 : vector<40x128xf32> to vector<40x128xbf16>
    %cst_133 = arith.constant dense<0.000000e+00> : vector<40x32xf32>
    %318 = tpu.matmul %317, %316, %cst_133 {dimension_numbers = #tpu.dot_dimension_numbers<[1], [0], [0], [1], [0, 0, 1, 1], [], []>} : vector<40x128xbf16>, vector<128x32xbf16>, vector<40x32xf32> -> vector<40x32xf32>
    %c0_134 = arith.constant 0 : index
    %c0_135 = arith.constant 0 : index
    %319 = vector.load %arg19[%c0_134, %c0_135] : memref<1x32xf32, #tpu.memory_space<vmem>>, vector<1x32xf32>
    %320 = vector.broadcast %319 : vector<1x32xf32> to vector<40x32xf32>
    %321 = arith.addf %318, %320 : vector<40x32xf32>
    %322 = arith.addf %321, %266 : vector<40x32xf32>
    %c0_136 = arith.constant 0 : index
    %c0_137 = arith.constant 0 : index
    %323 = vector.load %arg20[%c0_136, %c0_137] : memref<1x32xf32, #tpu.memory_space<vmem>>, vector<1x32xf32>
    %c0_138 = arith.constant 0 : index
    %c0_139 = arith.constant 0 : index
    %324 = vector.load %arg21[%c0_138, %c0_139] : memref<1x32xf32, #tpu.memory_space<vmem>>, vector<1x32xf32>
    %cst_140 = arith.constant dense<0.000000e+00> : vector<40xf32>
    %325 = vector.multi_reduction <add>, %322, %cst_140 [1] : vector<40x32xf32> to vector<40xf32>
    %326 = vector.shape_cast %325 : vector<40xf32> to vector<40x1xf32>
    %cst_141 = arith.constant 3.200000e+01 : f32
    %327 = vector.broadcast %cst_141 : f32 to vector<40x1xf32>
    %328 = arith.divf %326, %327 : vector<40x1xf32>
    %329 = vector.broadcast %328 : vector<40x1xf32> to vector<40x32xf32>
    %330 = arith.subf %322, %329 : vector<40x32xf32>
    %331 = arith.mulf %330, %330 : vector<40x32xf32>
    %cst_142 = arith.constant dense<0.000000e+00> : vector<40xf32>
    %332 = vector.multi_reduction <add>, %331, %cst_142 [1] : vector<40x32xf32> to vector<40xf32>
    %333 = vector.shape_cast %332 : vector<40xf32> to vector<40x1xf32>
    %cst_143 = arith.constant 3.200000e+01 : f32
    %334 = vector.broadcast %cst_143 : f32 to vector<40x1xf32>
    %335 = arith.divf %333, %334 : vector<40x1xf32>
    %cst_144 = arith.constant 9.99999974E-6 : f32
    %336 = vector.broadcast %cst_144 : f32 to vector<40x1xf32>
    %337 = arith.addf %335, %336 : vector<40x1xf32>
    %338 = math.rsqrt %337 : vector<40x1xf32>
    %339 = vector.broadcast %338 : vector<40x1xf32> to vector<40x32xf32>
    %340 = arith.mulf %330, %339 : vector<40x32xf32>
    %341 = vector.broadcast %323 : vector<1x32xf32> to vector<40x32xf32>
    %342 = arith.mulf %340, %341 : vector<40x32xf32>
    %343 = vector.broadcast %324 : vector<1x32xf32> to vector<40x32xf32>
    %344 = arith.addf %342, %343 : vector<40x32xf32>
    %c0_145 = arith.constant 0 : index
    %c0_146 = arith.constant 0 : index
    %345 = vector.load %arg22[%c0_145, %c0_146] : memref<32x192xbf16, #tpu.memory_space<vmem>>, vector<32x192xbf16>
    %346 = arith.truncf %344 : vector<40x32xf32> to vector<40x32xbf16>
    %cst_147 = arith.constant dense<0.000000e+00> : vector<40x192xf32>
    %347 = tpu.matmul %346, %345, %cst_147 {dimension_numbers = #tpu.dot_dimension_numbers<[1], [0], [0], [1], [0, 0, 1, 1], [], []>} : vector<40x32xbf16>, vector<32x192xbf16>, vector<40x192xf32> -> vector<40x192xf32>
    %348 = vector.extract_strided_slice %347 {offsets = [0, 0], sizes = [40, 16], strides = [1, 1]} : vector<40x192xf32> to vector<40x16xf32>
    %349 = vector.extract_strided_slice %347 {offsets = [0, 64], sizes = [40, 16], strides = [1, 1]} : vector<40x192xf32> to vector<40x16xf32>
    %350 = vector.extract_strided_slice %347 {offsets = [0, 128], sizes = [40, 16], strides = [1, 1]} : vector<40x192xf32> to vector<40x16xf32>
    %351 = arith.truncf %348 : vector<40x16xf32> to vector<40x16xbf16>
    %352 = arith.truncf %349 : vector<40x16xf32> to vector<40x16xbf16>
    %cst_148 = arith.constant dense<0.000000e+00> : vector<40x40xf32>
    %353 = tpu.matmul %351, %352, %cst_148 {dimension_numbers = #tpu.dot_dimension_numbers<[1], [1], [0], [0], [0, 0, 1, 0], [], []>} : vector<40x16xbf16>, vector<40x16xbf16>, vector<40x40xf32> -> vector<40x40xf32>
    %354 = arith.addf %353, %120 : vector<40x40xf32>
    %cst_149 = arith.constant dense<0xFF800000> : vector<40xf32>
    %355 = vector.multi_reduction <maximumf>, %354, %cst_149 [1] : vector<40x40xf32> to vector<40xf32>
    %356 = vector.shape_cast %355 : vector<40xf32> to vector<40x1xf32>
    %357 = vector.broadcast %356 : vector<40x1xf32> to vector<40x40xf32>
    %358 = arith.subf %354, %357 : vector<40x40xf32>
    %359 = math.exp %358 : vector<40x40xf32>
    %360 = arith.truncf %359 : vector<40x40xf32> to vector<40x40xbf16>
    %361 = arith.truncf %350 : vector<40x16xf32> to vector<40x16xbf16>
    %cst_150 = arith.constant dense<0.000000e+00> : vector<40x16xf32>
    %362 = tpu.matmul %360, %361, %cst_150 {dimension_numbers = #tpu.dot_dimension_numbers<[1], [0], [0], [1], [0, 0, 1, 1], [], []>} : vector<40x40xbf16>, vector<40x16xbf16>, vector<40x16xf32> -> vector<40x16xf32>
    %cst_151 = arith.constant dense<0.000000e+00> : vector<40xf32>
    %363 = vector.multi_reduction <add>, %359, %cst_151 [1] : vector<40x40xf32> to vector<40xf32>
    %364 = vector.shape_cast %363 : vector<40xf32> to vector<40x1xf32>
    %365 = tpu.reciprocal %364 {approx = true} : vector<40x1xf32> -> vector<40x1xf32>
    %366 = vector.broadcast %365 : vector<40x1xf32> to vector<40x16xf32>
    %367 = arith.mulf %362, %366 : vector<40x16xf32>
    %c0_152 = arith.constant 0 : index
    %c0_153 = arith.constant 0 : index
    %368 = vector.load %arg23[%c0_152, %c0_153] : memref<64x32xbf16, #tpu.memory_space<vmem>>, vector<16x32xbf16>
    %369 = arith.truncf %367 : vector<40x16xf32> to vector<40x16xbf16>
    %cst_154 = arith.constant dense<0.000000e+00> : vector<40x32xf32>
    %370 = tpu.matmul %369, %368, %cst_154 {dimension_numbers = #tpu.dot_dimension_numbers<[1], [0], [0], [1], [0, 0, 1, 1], [], []>} : vector<40x16xbf16>, vector<16x32xbf16>, vector<40x32xf32> -> vector<40x32xf32>
    %371 = vector.extract_strided_slice %347 {offsets = [0, 16], sizes = [40, 16], strides = [1, 1]} : vector<40x192xf32> to vector<40x16xf32>
    %372 = vector.extract_strided_slice %347 {offsets = [0, 80], sizes = [40, 16], strides = [1, 1]} : vector<40x192xf32> to vector<40x16xf32>
    %373 = vector.extract_strided_slice %347 {offsets = [0, 144], sizes = [40, 16], strides = [1, 1]} : vector<40x192xf32> to vector<40x16xf32>
    %374 = arith.truncf %371 : vector<40x16xf32> to vector<40x16xbf16>
    %375 = arith.truncf %372 : vector<40x16xf32> to vector<40x16xbf16>
    %cst_155 = arith.constant dense<0.000000e+00> : vector<40x40xf32>
    %376 = tpu.matmul %374, %375, %cst_155 {dimension_numbers = #tpu.dot_dimension_numbers<[1], [1], [0], [0], [0, 0, 1, 0], [], []>} : vector<40x16xbf16>, vector<40x16xbf16>, vector<40x40xf32> -> vector<40x40xf32>
    %377 = arith.addf %376, %120 : vector<40x40xf32>
    %cst_156 = arith.constant dense<0xFF800000> : vector<40xf32>
    %378 = vector.multi_reduction <maximumf>, %377, %cst_156 [1] : vector<40x40xf32> to vector<40xf32>
    %379 = vector.shape_cast %378 : vector<40xf32> to vector<40x1xf32>
    %380 = vector.broadcast %379 : vector<40x1xf32> to vector<40x40xf32>
    %381 = arith.subf %377, %380 : vector<40x40xf32>
    %382 = math.exp %381 : vector<40x40xf32>
    %383 = arith.truncf %382 : vector<40x40xf32> to vector<40x40xbf16>
    %384 = arith.truncf %373 : vector<40x16xf32> to vector<40x16xbf16>
    %cst_157 = arith.constant dense<0.000000e+00> : vector<40x16xf32>
    %385 = tpu.matmul %383, %384, %cst_157 {dimension_numbers = #tpu.dot_dimension_numbers<[1], [0], [0], [1], [0, 0, 1, 1], [], []>} : vector<40x40xbf16>, vector<40x16xbf16>, vector<40x16xf32> -> vector<40x16xf32>
    %cst_158 = arith.constant dense<0.000000e+00> : vector<40xf32>
    %386 = vector.multi_reduction <add>, %382, %cst_158 [1] : vector<40x40xf32> to vector<40xf32>
    %387 = vector.shape_cast %386 : vector<40xf32> to vector<40x1xf32>
    %388 = tpu.reciprocal %387 {approx = true} : vector<40x1xf32> -> vector<40x1xf32>
    %389 = vector.broadcast %388 : vector<40x1xf32> to vector<40x16xf32>
    %390 = arith.mulf %385, %389 : vector<40x16xf32>
    %c16_159 = arith.constant 16 : index
    %c0_160 = arith.constant 0 : index
    %391 = vector.load %arg23[%c16_159, %c0_160] : memref<64x32xbf16, #tpu.memory_space<vmem>>, vector<16x32xbf16>
    %392 = arith.truncf %390 : vector<40x16xf32> to vector<40x16xbf16>
    %cst_161 = arith.constant dense<0.000000e+00> : vector<40x32xf32>
    %393 = tpu.matmul %392, %391, %cst_161 {dimension_numbers = #tpu.dot_dimension_numbers<[1], [0], [0], [1], [0, 0, 1, 1], [], []>} : vector<40x16xbf16>, vector<16x32xbf16>, vector<40x32xf32> -> vector<40x32xf32>
    %394 = arith.addf %370, %393 : vector<40x32xf32>
    %395 = vector.extract_strided_slice %347 {offsets = [0, 32], sizes = [40, 16], strides = [1, 1]} : vector<40x192xf32> to vector<40x16xf32>
    %396 = vector.extract_strided_slice %347 {offsets = [0, 96], sizes = [40, 16], strides = [1, 1]} : vector<40x192xf32> to vector<40x16xf32>
    %397 = vector.extract_strided_slice %347 {offsets = [0, 160], sizes = [40, 16], strides = [1, 1]} : vector<40x192xf32> to vector<40x16xf32>
    %398 = arith.truncf %395 : vector<40x16xf32> to vector<40x16xbf16>
    %399 = arith.truncf %396 : vector<40x16xf32> to vector<40x16xbf16>
    %cst_162 = arith.constant dense<0.000000e+00> : vector<40x40xf32>
    %400 = tpu.matmul %398, %399, %cst_162 {dimension_numbers = #tpu.dot_dimension_numbers<[1], [1], [0], [0], [0, 0, 1, 0], [], []>} : vector<40x16xbf16>, vector<40x16xbf16>, vector<40x40xf32> -> vector<40x40xf32>
    %401 = arith.addf %400, %120 : vector<40x40xf32>
    %cst_163 = arith.constant dense<0xFF800000> : vector<40xf32>
    %402 = vector.multi_reduction <maximumf>, %401, %cst_163 [1] : vector<40x40xf32> to vector<40xf32>
    %403 = vector.shape_cast %402 : vector<40xf32> to vector<40x1xf32>
    %404 = vector.broadcast %403 : vector<40x1xf32> to vector<40x40xf32>
    %405 = arith.subf %401, %404 : vector<40x40xf32>
    %406 = math.exp %405 : vector<40x40xf32>
    %407 = arith.truncf %406 : vector<40x40xf32> to vector<40x40xbf16>
    %408 = arith.truncf %397 : vector<40x16xf32> to vector<40x16xbf16>
    %cst_164 = arith.constant dense<0.000000e+00> : vector<40x16xf32>
    %409 = tpu.matmul %407, %408, %cst_164 {dimension_numbers = #tpu.dot_dimension_numbers<[1], [0], [0], [1], [0, 0, 1, 1], [], []>} : vector<40x40xbf16>, vector<40x16xbf16>, vector<40x16xf32> -> vector<40x16xf32>
    %cst_165 = arith.constant dense<0.000000e+00> : vector<40xf32>
    %410 = vector.multi_reduction <add>, %406, %cst_165 [1] : vector<40x40xf32> to vector<40xf32>
    %411 = vector.shape_cast %410 : vector<40xf32> to vector<40x1xf32>
    %412 = tpu.reciprocal %411 {approx = true} : vector<40x1xf32> -> vector<40x1xf32>
    %413 = vector.broadcast %412 : vector<40x1xf32> to vector<40x16xf32>
    %414 = arith.mulf %409, %413 : vector<40x16xf32>
    %c32_166 = arith.constant 32 : index
    %c0_167 = arith.constant 0 : index
    %415 = vector.load %arg23[%c32_166, %c0_167] : memref<64x32xbf16, #tpu.memory_space<vmem>>, vector<16x32xbf16>
    %416 = arith.truncf %414 : vector<40x16xf32> to vector<40x16xbf16>
    %cst_168 = arith.constant dense<0.000000e+00> : vector<40x32xf32>
    %417 = tpu.matmul %416, %415, %cst_168 {dimension_numbers = #tpu.dot_dimension_numbers<[1], [0], [0], [1], [0, 0, 1, 1], [], []>} : vector<40x16xbf16>, vector<16x32xbf16>, vector<40x32xf32> -> vector<40x32xf32>
    %418 = arith.addf %394, %417 : vector<40x32xf32>
    %419 = vector.extract_strided_slice %347 {offsets = [0, 48], sizes = [40, 16], strides = [1, 1]} : vector<40x192xf32> to vector<40x16xf32>
    %420 = vector.extract_strided_slice %347 {offsets = [0, 112], sizes = [40, 16], strides = [1, 1]} : vector<40x192xf32> to vector<40x16xf32>
    %421 = vector.extract_strided_slice %347 {offsets = [0, 176], sizes = [40, 16], strides = [1, 1]} : vector<40x192xf32> to vector<40x16xf32>
    %422 = arith.truncf %419 : vector<40x16xf32> to vector<40x16xbf16>
    %423 = arith.truncf %420 : vector<40x16xf32> to vector<40x16xbf16>
    %cst_169 = arith.constant dense<0.000000e+00> : vector<40x40xf32>
    %424 = tpu.matmul %422, %423, %cst_169 {dimension_numbers = #tpu.dot_dimension_numbers<[1], [1], [0], [0], [0, 0, 1, 0], [], []>} : vector<40x16xbf16>, vector<40x16xbf16>, vector<40x40xf32> -> vector<40x40xf32>
    %425 = arith.addf %424, %120 : vector<40x40xf32>
    %cst_170 = arith.constant dense<0xFF800000> : vector<40xf32>
    %426 = vector.multi_reduction <maximumf>, %425, %cst_170 [1] : vector<40x40xf32> to vector<40xf32>
    %427 = vector.shape_cast %426 : vector<40xf32> to vector<40x1xf32>
    %428 = vector.broadcast %427 : vector<40x1xf32> to vector<40x40xf32>
    %429 = arith.subf %425, %428 : vector<40x40xf32>
    %430 = math.exp %429 : vector<40x40xf32>
    %431 = arith.truncf %430 : vector<40x40xf32> to vector<40x40xbf16>
    %432 = arith.truncf %421 : vector<40x16xf32> to vector<40x16xbf16>
    %cst_171 = arith.constant dense<0.000000e+00> : vector<40x16xf32>
    %433 = tpu.matmul %431, %432, %cst_171 {dimension_numbers = #tpu.dot_dimension_numbers<[1], [0], [0], [1], [0, 0, 1, 1], [], []>} : vector<40x40xbf16>, vector<40x16xbf16>, vector<40x16xf32> -> vector<40x16xf32>
    %cst_172 = arith.constant dense<0.000000e+00> : vector<40xf32>
    %434 = vector.multi_reduction <add>, %430, %cst_172 [1] : vector<40x40xf32> to vector<40xf32>
    %435 = vector.shape_cast %434 : vector<40xf32> to vector<40x1xf32>
    %436 = tpu.reciprocal %435 {approx = true} : vector<40x1xf32> -> vector<40x1xf32>
    %437 = vector.broadcast %436 : vector<40x1xf32> to vector<40x16xf32>
    %438 = arith.mulf %433, %437 : vector<40x16xf32>
    %c48_173 = arith.constant 48 : index
    %c0_174 = arith.constant 0 : index
    %439 = vector.load %arg23[%c48_173, %c0_174] : memref<64x32xbf16, #tpu.memory_space<vmem>>, vector<16x32xbf16>
    %440 = arith.truncf %438 : vector<40x16xf32> to vector<40x16xbf16>
    %cst_175 = arith.constant dense<0.000000e+00> : vector<40x32xf32>
    %441 = tpu.matmul %440, %439, %cst_175 {dimension_numbers = #tpu.dot_dimension_numbers<[1], [0], [0], [1], [0, 0, 1, 1], [], []>} : vector<40x16xbf16>, vector<16x32xbf16>, vector<40x32xf32> -> vector<40x32xf32>
    %442 = arith.addf %418, %441 : vector<40x32xf32>
    %c0_176 = arith.constant 0 : index
    %c0_177 = arith.constant 0 : index
    %443 = vector.load %arg24[%c0_176, %c0_177] : memref<1x32xf32, #tpu.memory_space<vmem>>, vector<1x32xf32>
    %444 = vector.broadcast %443 : vector<1x32xf32> to vector<40x32xf32>
    %445 = arith.addf %442, %444 : vector<40x32xf32>
    %446 = arith.addf %445, %344 : vector<40x32xf32>
    %c0_178 = arith.constant 0 : index
    %c0_179 = arith.constant 0 : index
    %447 = vector.load %arg25[%c0_178, %c0_179] : memref<1x32xf32, #tpu.memory_space<vmem>>, vector<1x32xf32>
    %c0_180 = arith.constant 0 : index
    %c0_181 = arith.constant 0 : index
    %448 = vector.load %arg26[%c0_180, %c0_181] : memref<1x32xf32, #tpu.memory_space<vmem>>, vector<1x32xf32>
    %cst_182 = arith.constant dense<0.000000e+00> : vector<40xf32>
    %449 = vector.multi_reduction <add>, %446, %cst_182 [1] : vector<40x32xf32> to vector<40xf32>
    %450 = vector.shape_cast %449 : vector<40xf32> to vector<40x1xf32>
    %cst_183 = arith.constant 3.200000e+01 : f32
    %451 = vector.broadcast %cst_183 : f32 to vector<40x1xf32>
    %452 = arith.divf %450, %451 : vector<40x1xf32>
    %453 = vector.broadcast %452 : vector<40x1xf32> to vector<40x32xf32>
    %454 = arith.subf %446, %453 : vector<40x32xf32>
    %455 = arith.mulf %454, %454 : vector<40x32xf32>
    %cst_184 = arith.constant dense<0.000000e+00> : vector<40xf32>
    %456 = vector.multi_reduction <add>, %455, %cst_184 [1] : vector<40x32xf32> to vector<40xf32>
    %457 = vector.shape_cast %456 : vector<40xf32> to vector<40x1xf32>
    %cst_185 = arith.constant 3.200000e+01 : f32
    %458 = vector.broadcast %cst_185 : f32 to vector<40x1xf32>
    %459 = arith.divf %457, %458 : vector<40x1xf32>
    %cst_186 = arith.constant 9.99999974E-6 : f32
    %460 = vector.broadcast %cst_186 : f32 to vector<40x1xf32>
    %461 = arith.addf %459, %460 : vector<40x1xf32>
    %462 = math.rsqrt %461 : vector<40x1xf32>
    %463 = vector.broadcast %462 : vector<40x1xf32> to vector<40x32xf32>
    %464 = arith.mulf %454, %463 : vector<40x32xf32>
    %465 = vector.broadcast %447 : vector<1x32xf32> to vector<40x32xf32>
    %466 = arith.mulf %464, %465 : vector<40x32xf32>
    %467 = vector.broadcast %448 : vector<1x32xf32> to vector<40x32xf32>
    %468 = arith.addf %466, %467 : vector<40x32xf32>
    %c0_187 = arith.constant 0 : index
    %c0_188 = arith.constant 0 : index
    %469 = vector.load %arg27[%c0_187, %c0_188] : memref<32x256xbf16, #tpu.memory_space<vmem>>, vector<32x256xbf16>
    %470 = arith.truncf %468 : vector<40x32xf32> to vector<40x32xbf16>
    %cst_189 = arith.constant dense<0.000000e+00> : vector<40x256xf32>
    %471 = tpu.matmul %470, %469, %cst_189 {dimension_numbers = #tpu.dot_dimension_numbers<[1], [0], [0], [1], [0, 0, 1, 1], [], []>} : vector<40x32xbf16>, vector<32x256xbf16>, vector<40x256xf32> -> vector<40x256xf32>
    %c0_190 = arith.constant 0 : index
    %c0_191 = arith.constant 0 : index
    %472 = vector.load %arg28[%c0_190, %c0_191] : memref<1x256xf32, #tpu.memory_space<vmem>>, vector<1x256xf32>
    %473 = vector.broadcast %472 : vector<1x256xf32> to vector<40x256xf32>
    %474 = arith.addf %471, %473 : vector<40x256xf32>
    %475 = vector.extract_strided_slice %474 {offsets = [0, 0], sizes = [40, 128], strides = [1, 1]} : vector<40x256xf32> to vector<40x128xf32>
    %476 = vector.extract_strided_slice %474 {offsets = [0, 128], sizes = [40, 128], strides = [1, 1]} : vector<40x256xf32> to vector<40x128xf32>
    %cst_192 = arith.constant 5.000000e-01 : f32
    %477 = vector.broadcast %cst_192 : f32 to vector<40x128xf32>
    %478 = arith.mulf %477, %476 : vector<40x128xf32>
    %cst_193 = arith.constant 0.707106769 : f32
    %479 = vector.broadcast %cst_193 : f32 to vector<40x128xf32>
    %480 = arith.mulf %476, %479 : vector<40x128xf32>
    %481 = math.absf %480 : vector<40x128xf32>
    %cst_194 = arith.constant 0.327591091 : f32
    %482 = vector.broadcast %cst_194 : f32 to vector<40x128xf32>
    %483 = arith.mulf %482, %481 : vector<40x128xf32>
    %cst_195 = arith.constant 1.000000e+00 : f32
    %484 = vector.broadcast %cst_195 : f32 to vector<40x128xf32>
    %485 = arith.addf %484, %483 : vector<40x128xf32>
    %cst_196 = arith.constant 1.000000e+00 : f32
    %486 = vector.broadcast %cst_196 : f32 to vector<40x128xf32>
    %487 = arith.divf %486, %485 : vector<40x128xf32>
    %cst_197 = arith.constant 1.06140542 : f32
    %488 = vector.broadcast %cst_197 : f32 to vector<40x128xf32>
    %489 = arith.mulf %488, %487 : vector<40x128xf32>
    %cst_198 = arith.constant -1.45315206 : f32
    %490 = vector.broadcast %cst_198 : f32 to vector<40x128xf32>
    %491 = arith.addf %489, %490 : vector<40x128xf32>
    %492 = arith.mulf %491, %487 : vector<40x128xf32>
    %cst_199 = arith.constant 1.42141378 : f32
    %493 = vector.broadcast %cst_199 : f32 to vector<40x128xf32>
    %494 = arith.addf %492, %493 : vector<40x128xf32>
    %495 = arith.mulf %494, %487 : vector<40x128xf32>
    %cst_200 = arith.constant -0.284496725 : f32
    %496 = vector.broadcast %cst_200 : f32 to vector<40x128xf32>
    %497 = arith.addf %495, %496 : vector<40x128xf32>
    %498 = arith.mulf %497, %487 : vector<40x128xf32>
    %cst_201 = arith.constant 0.254829586 : f32
    %499 = vector.broadcast %cst_201 : f32 to vector<40x128xf32>
    %500 = arith.addf %498, %499 : vector<40x128xf32>
    %501 = arith.mulf %500, %487 : vector<40x128xf32>
    %cst_202 = arith.constant 0.000000e+00 : f32
    %502 = vector.broadcast %cst_202 : f32 to vector<40x128xf32>
    %503 = arith.subf %502, %481 : vector<40x128xf32>
    %504 = arith.mulf %503, %481 : vector<40x128xf32>
    %505 = math.exp %504 : vector<40x128xf32>
    %506 = arith.mulf %501, %505 : vector<40x128xf32>
    %cst_203 = arith.constant 1.000000e+00 : f32
    %507 = vector.broadcast %cst_203 : f32 to vector<40x128xf32>
    %508 = arith.subf %507, %506 : vector<40x128xf32>
    %cst_204 = arith.constant 0.000000e+00 : f32
    %509 = vector.broadcast %cst_204 : f32 to vector<40x128xf32>
    %510 = arith.cmpf oge, %480, %509 : vector<40x128xf32>
    %cst_205 = arith.constant 0.000000e+00 : f32
    %511 = vector.broadcast %cst_205 : f32 to vector<40x128xf32>
    %512 = arith.subf %511, %508 : vector<40x128xf32>
    %513 = arith.select %510, %508, %512 : vector<40x128xi1>, vector<40x128xf32>
    %cst_206 = arith.constant 1.000000e+00 : f32
    %514 = vector.broadcast %cst_206 : f32 to vector<40x128xf32>
    %515 = arith.addf %514, %513 : vector<40x128xf32>
    %516 = arith.mulf %478, %515 : vector<40x128xf32>
    %517 = arith.mulf %475, %516 : vector<40x128xf32>
    %c0_207 = arith.constant 0 : index
    %c0_208 = arith.constant 0 : index
    %518 = vector.load %arg29[%c0_207, %c0_208] : memref<128x32xbf16, #tpu.memory_space<vmem>>, vector<128x32xbf16>
    %519 = arith.truncf %517 : vector<40x128xf32> to vector<40x128xbf16>
    %cst_209 = arith.constant dense<0.000000e+00> : vector<40x32xf32>
    %520 = tpu.matmul %519, %518, %cst_209 {dimension_numbers = #tpu.dot_dimension_numbers<[1], [0], [0], [1], [0, 0, 1, 1], [], []>} : vector<40x128xbf16>, vector<128x32xbf16>, vector<40x32xf32> -> vector<40x32xf32>
    %c0_210 = arith.constant 0 : index
    %c0_211 = arith.constant 0 : index
    %521 = vector.load %arg30[%c0_210, %c0_211] : memref<1x32xf32, #tpu.memory_space<vmem>>, vector<1x32xf32>
    %522 = vector.broadcast %521 : vector<1x32xf32> to vector<40x32xf32>
    %523 = arith.addf %520, %522 : vector<40x32xf32>
    %524 = arith.addf %523, %468 : vector<40x32xf32>
    %525 = vector.extract_strided_slice %524 {offsets = [0, 0], sizes = [8, 32], strides = [1, 1]} : vector<40x32xf32> to vector<8x32xf32>
    %c0_212 = arith.constant 0 : index
    %c0_213 = arith.constant 0 : index
    %526 = vector.load %arg31[%c0_212, %c0_213] : memref<32x1024xbf16, #tpu.memory_space<vmem>>, vector<32x1024xbf16>
    %527 = arith.truncf %525 : vector<8x32xf32> to vector<8x32xbf16>
    %cst_214 = arith.constant dense<0.000000e+00> : vector<8x1024xf32>
    %528 = tpu.matmul %527, %526, %cst_214 {dimension_numbers = #tpu.dot_dimension_numbers<[1], [0], [0], [1], [0, 0, 1, 1], [], []>} : vector<8x32xbf16>, vector<32x1024xbf16>, vector<8x1024xf32> -> vector<8x1024xf32>
    %c0_215 = arith.constant 0 : index
    %c0_216 = arith.constant 0 : index
    %529 = vector.load %arg32[%c0_215, %c0_216] : memref<1x1024xf32, #tpu.memory_space<vmem>>, vector<1x1024xf32>
    %530 = vector.broadcast %529 : vector<1x1024xf32> to vector<8x1024xf32>
    %531 = arith.addf %528, %530 : vector<8x1024xf32>
    %cst_217 = arith.constant 0.000000e+00 : f32
    %532 = vector.broadcast %cst_217 : f32 to vector<8x1024xf32>
    %533 = arith.maximumf %531, %532 : vector<8x1024xf32>
    %c0_218 = arith.constant 0 : index
    %c0_219 = arith.constant 0 : index
    %534 = vector.load %arg33[%c0_218, %c0_219] : memref<1x1024xf32, #tpu.memory_space<vmem>>, vector<1x1024xf32>
    %535 = vector.broadcast %534 : vector<1x1024xf32> to vector<8x1024xf32>
    %536 = arith.mulf %533, %535 : vector<8x1024xf32>
    %cst_220 = arith.constant dense<0.000000e+00> : vector<8xf32>
    %537 = vector.multi_reduction <add>, %536, %cst_220 [1] : vector<8x1024xf32> to vector<8xf32>
    %538 = vector.shape_cast %537 : vector<8xf32> to vector<8x1xf32>
    %c0_221 = arith.constant 0 : index
    %c0_222 = arith.constant 0 : index
    %539 = vector.load %arg34[%c0_221, %c0_222] : memref<1x1xf32, #tpu.memory_space<vmem>>, vector<1x1xf32>
    %540 = vector.broadcast %539 : vector<1x1xf32> to vector<8x1xf32>
    %541 = arith.addf %538, %540 : vector<8x1xf32>
    %c0_223 = arith.constant 0 : index
    %c0_224 = arith.constant 0 : index
    %542 = vector.load %arg35[%c0_223, %c0_224] : memref<8x1xf32, #tpu.memory_space<vmem>>, vector<8x1xf32>
    tpu.vector_store %arg35[%c0_223, %c0_224], %541 {strides = array<i32>} : memref<8x1xf32, #tpu.memory_space<vmem>>, vector<8x1xf32>,
    return
  }
  func.func @transform_0(%arg0: i32) -> (i32, i32) {
    %c0_i32 = arith.constant 0 : i32
    %c0_i32_0 = arith.constant 0 : i32
    return %arg0, %c0_i32 : i32, i32
  }
  func.func @transform_1(%arg0: i32) -> (i32, i32) {
    %c0_i32 = arith.constant 0 : i32
    %c0_i32_0 = arith.constant 0 : i32
    return %arg0, %c0_i32 : i32, i32
  }
  func.func @transform_2(%arg0: i32) -> (i32, i32) {
    %c0_i32 = arith.constant 0 : i32
    %c0_i32_0 = arith.constant 0 : i32
    return %arg0, %c0_i32 : i32, i32
  }
  func.func @transform_3(%arg0: i32) -> (i32, i32) {
    %c0_i32 = arith.constant 0 : i32
    %c0_i32_0 = arith.constant 0 : i32
    %c0_i32_1 = arith.constant 0 : i32
    return %c0_i32, %c0_i32_0 : i32, i32
  }
  func.func @transform_4(%arg0: i32) -> (i32, i32) {
    %c0_i32 = arith.constant 0 : i32
    %c0_i32_0 = arith.constant 0 : i32
    %c0_i32_1 = arith.constant 0 : i32
    return %c0_i32, %c0_i32_0 : i32, i32
  }
  func.func @transform_5(%arg0: i32) -> (i32, i32) {
    %c0_i32 = arith.constant 0 : i32
    %c0_i32_0 = arith.constant 0 : i32
    %c0_i32_1 = arith.constant 0 : i32
    return %c0_i32, %c0_i32_0 : i32, i32
  }
  func.func @transform_6(%arg0: i32) -> (i32, i32) {
    %c0_i32 = arith.constant 0 : i32
    %c0_i32_0 = arith.constant 0 : i32
    %c0_i32_1 = arith.constant 0 : i32
    return %c0_i32, %c0_i32_0 : i32, i32
  }
  func.func @transform_7(%arg0: i32) -> (i32, i32) {
    %c0_i32 = arith.constant 0 : i32
    %c0_i32_0 = arith.constant 0 : i32
    %c0_i32_1 = arith.constant 0 : i32
    return %c0_i32, %c0_i32_0 : i32, i32
  }
  func.func @transform_8(%arg0: i32) -> (i32, i32) {
    %c0_i32 = arith.constant 0 : i32
    %c0_i32_0 = arith.constant 0 : i32
    %c0_i32_1 = arith.constant 0 : i32
    return %c0_i32, %c0_i32_0 : i32, i32
  }
  func.func @transform_9(%arg0: i32) -> (i32, i32) {
    %c0_i32 = arith.constant 0 : i32
    %c0_i32_0 = arith.constant 0 : i32
    %c0_i32_1 = arith.constant 0 : i32
    return %c0_i32, %c0_i32_0 : i32, i32
  }
  func.func @transform_10(%arg0: i32) -> (i32, i32) {
    %c0_i32 = arith.constant 0 : i32
    %c0_i32_0 = arith.constant 0 : i32
    %c0_i32_1 = arith.constant 0 : i32
    return %c0_i32, %c0_i32_0 : i32, i32
  }
  func.func @transform_11(%arg0: i32) -> (i32, i32) {
    %c0_i32 = arith.constant 0 : i32
    %c0_i32_0 = arith.constant 0 : i32
    %c0_i32_1 = arith.constant 0 : i32
    return %c0_i32, %c0_i32_0 : i32, i32
  }
  func.func @transform_12(%arg0: i32) -> (i32, i32) {
    %c0_i32 = arith.constant 0 : i32
    %c0_i32_0 = arith.constant 0 : i32
    %c0_i32_1 = arith.constant 0 : i32
    return %c0_i32, %c0_i32_0 : i32, i32
  }
  func.func @transform_13(%arg0: i32) -> (i32, i32) {
    %c0_i32 = arith.constant 0 : i32
    %c0_i32_0 = arith.constant 0 : i32
    %c0_i32_1 = arith.constant 0 : i32
    return %c0_i32, %c0_i32_0 : i32, i32
  }
  func.func @transform_14(%arg0: i32) -> (i32, i32) {
    %c0_i32 = arith.constant 0 : i32
    %c0_i32_0 = arith.constant 0 : i32
    %c0_i32_1 = arith.constant 0 : i32
    return %c0_i32, %c0_i32_0 : i32, i32
  }
  func.func @transform_15(%arg0: i32) -> (i32, i32) {
    %c0_i32 = arith.constant 0 : i32
    %c0_i32_0 = arith.constant 0 : i32
    %c0_i32_1 = arith.constant 0 : i32
    return %c0_i32, %c0_i32_0 : i32, i32
  }
  func.func @transform_16(%arg0: i32) -> (i32, i32) {
    %c0_i32 = arith.constant 0 : i32
    %c0_i32_0 = arith.constant 0 : i32
    %c0_i32_1 = arith.constant 0 : i32
    return %c0_i32, %c0_i32_0 : i32, i32
  }
  func.func @transform_17(%arg0: i32) -> (i32, i32) {
    %c0_i32 = arith.constant 0 : i32
    %c0_i32_0 = arith.constant 0 : i32
    %c0_i32_1 = arith.constant 0 : i32
    return %c0_i32, %c0_i32_0 : i32, i32
  }
  func.func @transform_18(%arg0: i32) -> (i32, i32) {
    %c0_i32 = arith.constant 0 : i32
    %c0_i32_0 = arith.constant 0 : i32
    %c0_i32_1 = arith.constant 0 : i32
    return %c0_i32, %c0_i32_0 : i32, i32
  }
  func.func @transform_19(%arg0: i32) -> (i32, i32) {
    %c0_i32 = arith.constant 0 : i32
    %c0_i32_0 = arith.constant 0 : i32
    %c0_i32_1 = arith.constant 0 : i32
    return %c0_i32, %c0_i32_0 : i32, i32
  }
  func.func @transform_20(%arg0: i32) -> (i32, i32) {
    %c0_i32 = arith.constant 0 : i32
    %c0_i32_0 = arith.constant 0 : i32
    %c0_i32_1 = arith.constant 0 : i32
    return %c0_i32, %c0_i32_0 : i32, i32
  }
  func.func @transform_21(%arg0: i32) -> (i32, i32) {
    %c0_i32 = arith.constant 0 : i32
    %c0_i32_0 = arith.constant 0 : i32
    %c0_i32_1 = arith.constant 0 : i32
    return %c0_i32, %c0_i32_0 : i32, i32
  }
  func.func @transform_22(%arg0: i32) -> (i32, i32) {
    %c0_i32 = arith.constant 0 : i32
    %c0_i32_0 = arith.constant 0 : i32
    %c0_i32_1 = arith.constant 0 : i32
    return %c0_i32, %c0_i32_0 : i32, i32
  }
  func.func @transform_23(%arg0: i32) -> (i32, i32) {
    %c0_i32 = arith.constant 0 : i32
    %c0_i32_0 = arith.constant 0 : i32
    %c0_i32_1 = arith.constant 0 : i32
    return %c0_i32, %c0_i32_0 : i32, i32
  }
  func.func @transform_24(%arg0: i32) -> (i32, i32) {
    %c0_i32 = arith.constant 0 : i32
    %c0_i32_0 = arith.constant 0 : i32
    %c0_i32_1 = arith.constant 0 : i32
    return %c0_i32, %c0_i32_0 : i32, i32
  }
  func.func @transform_25(%arg0: i32) -> (i32, i32) {
    %c0_i32 = arith.constant 0 : i32
    %c0_i32_0 = arith.constant 0 : i32
    %c0_i32_1 = arith.constant 0 : i32
    return %c0_i32, %c0_i32_0 : i32, i32
  }
  func.func @transform_26(%arg0: i32) -> (i32, i32) {
    %c0_i32 = arith.constant 0 : i32
    %c0_i32_0 = arith.constant 0 : i32
    %c0_i32_1 = arith.constant 0 : i32
    return %c0_i32, %c0_i32_0 : i32, i32
  }
  func.func @transform_27(%arg0: i32) -> (i32, i32) {
    %c0_i32 = arith.constant 0 : i32
    %c0_i32_0 = arith.constant 0 : i32
    %c0_i32_1 = arith.constant 0 : i32
    return %c0_i32, %c0_i32_0 : i32, i32
  }
  func.func @transform_28(%arg0: i32) -> (i32, i32) {
    %c0_i32 = arith.constant 0 : i32
    %c0_i32_0 = arith.constant 0 : i32
    %c0_i32_1 = arith.constant 0 : i32
    return %c0_i32, %c0_i32_0 : i32, i32
  }
  func.func @transform_29(%arg0: i32) -> (i32, i32) {
    %c0_i32 = arith.constant 0 : i32
    %c0_i32_0 = arith.constant 0 : i32
    %c0_i32_1 = arith.constant 0 : i32
    return %c0_i32, %c0_i32_0 : i32, i32
  }
  func.func @transform_30(%arg0: i32) -> (i32, i32) {
    %c0_i32 = arith.constant 0 : i32
    %c0_i32_0 = arith.constant 0 : i32
    %c0_i32_1 = arith.constant 0 : i32
    return %c0_i32, %c0_i32_0 : i32, i32
  }
  func.func @transform_31(%arg0: i32) -> (i32, i32) {
    %c0_i32 = arith.constant 0 : i32
    %c0_i32_0 = arith.constant 0 : i32
    %c0_i32_1 = arith.constant 0 : i32
    return %c0_i32, %c0_i32_0 : i32, i32
  }
  func.func @transform_32(%arg0: i32) -> (i32, i32) {
    %c0_i32 = arith.constant 0 : i32
    %c0_i32_0 = arith.constant 0 : i32
    %c0_i32_1 = arith.constant 0 : i32
    return %c0_i32, %c0_i32_0 : i32, i32
  }
  func.func @transform_33(%arg0: i32) -> (i32, i32) {
    %c0_i32 = arith.constant 0 : i32
    %c0_i32_0 = arith.constant 0 : i32
    %c0_i32_1 = arith.constant 0 : i32
    return %c0_i32, %c0_i32_0 : i32, i32
  }
  func.func @transform_34(%arg0: i32) -> (i32, i32) {
    %c0_i32 = arith.constant 0 : i32
    %c0_i32_0 = arith.constant 0 : i32
    return %arg0, %c0_i32 : i32, i32
  }
}

</mosaic_0001>

<bundles_post_ra>
// kernel: my_saint_forward.1
= control target key start
LH: loop header
LB: loop body
LE: loop exit
PB: predicated region body
PF: predicated region fallthrough
CT: control target
= control target key end

     0   :  { %s5871_s6 = smov 1   ;;  %s5872_s10 = smov 2   ;;  %s7274_s0 = inlined_call_operand.smem [shape: u32[35], index: -1, kind: input, shape index: {}] }
   0x1   :  { %s5926_s5 = sld [smem:[%s7274_s0]]   ;;  %s5873_s14 = smov 3  }
   0x2   :  { %s5931_s9 = sld [smem:[%s7274_s0 + %s5871_s6]]   ;;  %s5874_s18 = smov 4  }
   0x3   :  { %s5936_s13 = sld [smem:[%s7274_s0 + %s5872_s10]]   ;;  %s5875_s22 = smov 5  }
   0x4   :  { %s5941_s17 = sld [smem:[%s7274_s0 + %s5873_s14]]   ;;  %s5876_s26 = smov 6  }
   0x5   :  { %s5946_s21 = sld [smem:[%s7274_s0 + %s5874_s18]]   ;;  %s5877_s30 = smov 7  }
   0x6   :  { %s5951_s25 = sld [smem:[%s7274_s0 + %s5875_s22]]   ;;  %s5878_s4 = smov 8  }
   0x7   :  { %s5956_s29 = sld [smem:[%s7274_s0 + %s5876_s26]]   ;;  %s5879_s10 = smov 9  }
   0x8   :  { %s5961_s3 = sld [smem:[%s7274_s0 + %s5877_s30]]   ;;  %s5880_s15 = smov 10  }
   0x9   :  { %s5966_s8 = sld [smem:[%s7274_s0 + %s5878_s4]]   ;;  %s5881_s20 = smov 11  }
   0xa   :  { %s5971_s14 = sld [smem:[%s7274_s0 + %s5879_s10]]   ;;  %s5882_s26 = smov 12  }
   0xb   :  { %s5976_s19 = sld [smem:[%s7274_s0 + %s5880_s15]]   ;;  %s5883_s1 = smov 13  }
   0xc   :  { %s5981_s24 = sld [smem:[%s7274_s0 + %s5881_s20]]   ;;  %s5884_s7 = smov 14  }
   0xd   :  { %s5986_s30 = sld [smem:[%s7274_s0 + %s5882_s26]]   ;;  %s5885_s15 = smov 15  }
   0xe   :  { %s5991_s6 = sld [smem:[%s7274_s0 + %s5883_s1]]   ;;  %s5886_s22 = smov 16  }
   0xf   :  { %s5996_s12 = sld [smem:[%s7274_s0 + %s5884_s7]]   ;;  %s5887_s28 = smov 17  }
  0x10   :  { %s6001_s20 = sld [smem:[%s7274_s0 + %s5885_s15]]   ;;  %s5888_s7 = smov 18  }
  0x11   :  { %s6006_s27 = sld [smem:[%s7274_s0 + %s5886_s22]]   ;;  %s5889_s15 = smov 19  }
  0x12   :  { %s6011_s4 = sld [smem:[%s7274_s0 + %s5887_s28]]   ;;  %s5890_s22 = smov 20  }
  0x13   :  { %s5891_s28 = smov 21   ;;  %s5904_s10 = smov 34  }
  0x14   :  { %7281 = sst [smem:[#allocation4_spill]] %s5991_s6 }
  0x15   :  { %7282 = sst [smem:[#allocation5_spill]] %s5996_s12 }
  0x16   :  { %s6016_s12 = sld [smem:[%s7274_s0 + %s5888_s7]]   ;;  %s5892_s7 = smov 22  }
  0x17   :  { %7283 = sst [smem:[#allocation6_spill]] %s6006_s27 }
  0x18   :  { %7284 = sst [smem:[#allocation7_spill]] %s6011_s4 }
  0x19   :  { %s6021_s6 = sld [smem:[%s7274_s0 + %s5889_s15]]   ;;  %s5893_s15 = smov 23  }
  0x1a   :  { %s6026_s27 = sld [smem:[%s7274_s0 + %s5890_s22]]   ;;  %s5894_s22 = smov 24  }
  0x1b   :  { %s6031_s4 = sld [smem:[%s7274_s0 + %s5891_s28]]   ;;  %s5895_s28 = smov 25  }
  0x1c   :  { %7285 = sst [smem:[#allocation8_spill]] %s6016_s12 }
  0x1d   :  { %s6036_s12 = sld [smem:[%s7274_s0 + %s5892_s7]]   ;;  %s5896_s7 = smov 26  }
  0x1f   :  { %7286 = sst [smem:[#allocation9_spill]] %s6021_s6 }
  0x20   :  { %7287 = sst [smem:[#allocation10_spill]] %s6026_s27 }
  0x21   :  { %7288 = sst [smem:[#allocation11_spill]] %s6031_s4 }
  0x22   :  { %s6041_s6 = sld [smem:[%s7274_s0 + %s5893_s15]]   ;;  %s5897_s15 = smov 27  }
  0x23   :  { %7289 = sst [smem:[#allocation12_spill]] %s6036_s12 }
  0x24   :  { %s6046_s27 = sld [smem:[%s7274_s0 + %s5894_s22]]   ;;  %s5898_s22 = smov 28  }
  0x25   :  { %s6051_s4 = sld [smem:[%s7274_s0 + %s5895_s28]]   ;;  %s5899_s28 = smov 29  }
  0x26   :  { %s6056_s12 = sld [smem:[%s7274_s0 + %s5896_s7]]   ;;  %s5900_s7 = smov 30  }
  0x28   :  { %7290 = sst [smem:[#allocation13_spill]] %s6041_s6 }
  0x29   :  { %s6061_s6 = sld [smem:[%s7274_s0 + %s5897_s15]]   ;;  %s5901_s15 = smov 31  }
  0x2a   :  { %7291 = sst [smem:[#allocation14_spill]] %s6046_s27 }
  0x2b   :  { %7292 = sst [smem:[#allocation15_spill]] %s6051_s4 }
  0x2c   :  { %7293 = sst [smem:[#allocation16_spill]] %s6056_s12 }
  0x2d   :  { %s6066_s27 = sld [smem:[%s7274_s0 + %s5898_s22]]   ;;  %s5902_s22 = smov 32  }
  0x2e   :  { %s6071_s4 = sld [smem:[%s7274_s0 + %s5899_s28]]   ;;  %s5903_s28 = smov 33  }
  0x2f   :  { %7294 = sst [smem:[#allocation17_spill]] %s6061_s6 }
  0x30   :  { %s6076_s12 = sld [smem:[%s7274_s0 + %s5900_s7]]  }
  0x31   :  { %s6081_s6 = sld [smem:[%s7274_s0 + %s5901_s15]]   ;;  %s6096_s15 = smov 0  }
  0x33   :  { %7295 = sst [smem:[#allocation18_spill]] %s6066_s27 }
  0x34   :  { %7296 = sst [smem:[#allocation19_spill]] %s6071_s4 }
  0x35   :  { %s6086_s27 = sld [smem:[%s7274_s0 + %s5902_s22]]  }
  0x36   :  { %7297 = sst [smem:[#allocation20_spill]] %s6076_s12 }
  0x37   :  { %s4971_s4 = sld [smem:[%s7274_s0 + %s5903_s28]]  }
  0x38   :  { %s6094_s12 = sld [smem:[%s7274_s0 + %s5904_s10]]  }
  0x3d   :  { %v74_v0 = vstv %s4971_s4 }
  0x3e   :  { %75 = vst [vmem:[#allocation3] sm:$0x1] %v74_v0 }
  0x3f LB: > { %s4973_s16 = sadd.s32 4294967295, %s5869_s15   ;;  %p4977_p0 = scmp.ge.s32.totalorder %s5869_s15, 1  ;;  %s5869_s15 = sphi %s6096_s15, %s81_s15  }
  0x40   : > { %p966_p1 = scmp.lt.s32.totalorder %s5869_s15, 3 }
  0x42   : > { %p967_p2 = pnand %p4977_p0, %p966_p1 }
  0x43   : > { %p1058_p3 = scmp.lt.s32.totalorder (!%p967_p2), %s4973_s16, 1  ;;  %s5910_s23 = smov (!%p967_p2), 64  }
  0x44   : > { %970 = sbr.rel (%p967_p2) target bundleno = 5145 (0x1419), region = 156  ;;  %s5912_s26 = smov (!%p967_p2), 48  }
  0x45   : > { %s5913_s28 = smov (!%p967_p2), 32   ;;  %s5914_s1 = smov (!%p967_p2), 112  }
  0x46   : > { %s5915_s2 = smov (!%p967_p2), 16   ;;  %s5916_s10 = smov (!%p967_p2), 80  }
  0x47   : > { %s5917_s7 = smov (!%p967_p2), 96   ;;  %s7298_s11 = sld [smem:[#allocation4_spill]] (!%p967_p2) }
  0x49   : > { %v5447_v1 = vld [vmem:[%s5951_s25 + $0x38] sm:$0xff]  ;;  %v5905_v2 = vmov 1   ;;  %v5906_v3 = vmov 0   ;;  %s7316_s16 = smov (!%p1058_p3, %s4973_s16), 1  ;;  %v5446_v5 = vld [vmem:[%s5951_s25 + $0x30] sm:$0xff]  ;;  %vm1076_vm0 = vcmask 261120  }
  0x4a   : > { %5585 = vset.pattern.permute.xlu1 %v5905_v2  ;;  %5583 = vset.pattern.permute.xlu0 %v5906_v3  ;;  %v5455_v4 = vld [vmem:[%s5951_s25 + $0x78] sm:$0xff]  ;;  %s6112_s0 = sshll.u32 %s7316_s16, 3  ;;  %v5454_v8 = vld [vmem:[%s5951_s25 + $0x70] sm:$0xff]  ;;  %v5445_v13 = vld [vmem:[%s5951_s25 + $0x28] sm:$0xff]  ;;  %v5907_v22 = vmov 3   ;;  %v5908_v23 = vmov 2  }
  0x4b   : > { %1159 = vmatpush.bf16.msra.mxu0 %v5447_v1  ;;  %v5463_v6 = vld [vmem:[%s5951_s25 + $0xb8] sm:$0xff]  ;;  %5587 = vset.pattern.permute.xlu2 %v5906_v3  ;;  %v5462_v9 = vld [vmem:[%s5951_s25 + $0xb0] sm:$0xff]  ;;  %s1061_s4 = scalar_lea.vmem %s5926_s5, %s6112_s0  ;;  %s1069_s18 = scalar_lea.vmem %s5936_s13, %s6112_s0  ;;  %v5453_v14 = vld [vmem:[%s5951_s25 + $0x68] sm:$0xff] }
  0x4c   : > { %1260 = vmatpush.bf16.msra.mxu1 %v5455_v4  ;;  %v5471_v7 = vld [vmem:[%s5951_s25 + $0xf8] sm:$0xff]  ;;  %1359 = vmatpush.bf16.msra.mxu2 %v5463_v6  ;;  %v5470_v10 = vld [vmem:[%s5951_s25 + $0xf0] sm:$0xff]  ;;  %v1075_v11 = vld [vmem:[%s1069_s18] sm:$0xff]  ;;  %s1065_s22 = scalar_lea.vmem %s5931_s9, %s6112_s0  ;;  %s7299_s16 = sld [smem:[#allocation5_spill]] }
  0x4d   : > { %1458 = vmatpush.bf16.msra.mxu3 %v5471_v7  ;;  %v1078_v12 = vld [vmem:[%s1061_s4] sm:$0xff]  ;;  %1077 = vst.msk [vmem:[#allocation2] sm:$0xff] %vm1076_vm0, %v1075_v11  ;;  %v5461_v15 = vld [vmem:[%s5951_s25 + $0xa8] sm:$0xff]  ;;  %v5443_v20 = vld [vmem:[%s5951_s25 + $0x18] sm:$0xff]  ;;  %v5909_v7 = vmov 32.0   ;;  %s7300_s4 = sld [smem:[#allocation6_spill]] }
  0x4e   : > { %1184 = vperm.xlu1 %5585, %v1078_v12   ;;  %1083 = vperm.xlu0 %5583, %v1078_v12   ;;  %v5444_v16 = vld [vmem:[%s5951_s25 + $0x20] sm:$0xff]  ;;  %v5469_v17 = vld [vmem:[%s5951_s25 + $0xe8] sm:$0xff]  ;;  %v5451_v24 = vld [vmem:[%s5951_s25 + $0x58] sm:$0xff]  ;;  %5621 = vrcp.f32 %v5909_v7  ;;  %s7301_s18 = sld [smem:[#allocation7_spill]] }
  0x4f   : > { %1160 = vmatpush.bf16.msra.mxu0 %v5446_v5  ;;  %v5452_v18 = vld [vmem:[%s5951_s25 + $0x60] sm:$0xff]  ;;  %v5442_v25 = vld [vmem:[%s5951_s25 + $0x10] sm:$0xff]  ;;  %v5441_v27 = vld [vmem:[%s5951_s25 + $0x8] sm:$0xff] }
  0x50   : > { %1261 = vmatpush.bf16.msra.mxu1 %v5454_v8  ;;  %1360 = vmatpush.bf16.msra.mxu2 %v5462_v9  ;;  %v5460_v19 = vld [vmem:[%s5951_s25 + $0xa0] sm:$0xff]  ;;  %v5450_v26 = vld [vmem:[%s5951_s25 + $0x50] sm:$0xff]  ;;  %v5449_v28 = vld [vmem:[%s5951_s25 + $0x48] sm:$0xff] }
  0x51   : > { %1459 = vmatpush.bf16.msra.mxu3 %v5470_v10  ;;  %v5468_v21 = vld [vmem:[%s5951_s25 + $0xe0] sm:$0xff]  ;;  %v5459_v29 = vld [vmem:[%s5951_s25 + $0x98] sm:$0xff]  ;;  %v5458_v33 = vld [vmem:[%s5951_s25 + $0x90] sm:$0xff] }
  0x52   : > { %v5467_v30 = vld [vmem:[%s5951_s25 + $0xd8] sm:$0xff]  ;;  %v5440_v31 = vld [vmem:[%s5951_s25] sm:$0xff]  ;;  %v5466_v34 = vld [vmem:[%s5951_s25 + $0xd0] sm:$0xff] }
  0x53   : > { %1161 = vmatpush.bf16.msra.mxu0 %v5445_v13  ;;  %v5448_v32 = vld [vmem:[%s5951_s25 + $0x40] sm:$0xff]  ;;  %v5457_v35 = vld [vmem:[%s5951_s25 + $0x88] sm:$0xff] }
  0x54   : > { %1262 = vmatpush.bf16.msra.mxu1 %v5453_v14  ;;  %1361 = vmatpush.bf16.msra.mxu2 %v5461_v15  ;;  %v5465_v36 = vld [vmem:[%s5951_s25 + $0xc8] sm:$0xff]  ;;  %v5456_v37 = vld [vmem:[%s5951_s25 + $0x80] sm:$0xff]  ;;  %v5622_v8 = vpop.eup %5621 }
  0x55   : > { %1460 = vmatpush.bf16.msra.mxu3 %v5469_v17  ;;  %v5464_v38 = vld [vmem:[%s5951_s25 + $0xc0] sm:$0xff]  ;;  %v1526_v10 = vmul.f32 32.0, %v5622_v8  ;;  %vm1530_vm4 = vweird.f32 %v5622_v8 }
  0x56   : > { %5586 = vset.pattern.permute.xlu1 %v5907_v22  ;;  %5584 = vset.pattern.permute.xlu0 %v5908_v23  ;;  %v6150_v39 = vld [vmem:[#allocation2] sm:$0xff] }
  0x57   : > { %1162 = vmatpush.bf16.msra.mxu0 %v5444_v16  ;;  %1382 = vperm.xlu1 %5586, %v1078_v12   ;;  %v1079_v40 = vld [vmem:[%s1065_s22] sm:$0xff]  ;;  %v1510_v41 = vsel %vm1076_vm0, %v6150_v39, 0.0  ;;  %v1527_v11 = vsub.f32 1.0, %v1526_v10  ;;  %s7302_s22 = sld [smem:[#allocation8_spill]] }
  0x58   : > { %1283 = vperm.xlu0 %5584, %v1078_v12   ;;  %1263 = vmatpush.bf16.msra.mxu1 %v5452_v18  ;;  %vm1172_vm1 = vcmp.eq.f32.partialorder %v1079_v40, 0.0  ;;  %v5592_v43 = vld [vmem:[%s5941_s17 + $0x1] ss:$0 sm:$0xff]  ;;  %v5593_v44 = vld [vmem:[%s5941_s17] ss:$0 sm:$0xff] }
  0x59   : > { %1362 = vmatpush.bf16.msra.mxu2 %v5460_v19  ;;  %1461 = vmatpush.bf16.msra.mxu3 %v5468_v21  ;;  %v1174_v42 = vsel %vm1172_vm1, 1, %v5906_v3  ;;  %v5594_v45 = vld [vmem:[%s5946_s21 + $0x1] ss:$0 sm:$0xff]  ;;  %v5596_v46 = vld [vmem:[%s5946_s21] ss:$0 sm:$0xff]  ;;  %v1528_v12 = vmul.f32 %v5622_v8, %v1527_v11 }
  0x5a   : > { %1176 = vperm.xlu2 %5587, %v1174_v42   ;;  %v5595_v55 = vld [vmem:[%s5941_s17 + $0x3] ss:$0 sm:$0xff]  ;;  %v5597_v56 = vld [vmem:[%s5941_s17 + $0x2] ss:$0 sm:$0xff]  ;;  %v5600_v13 = vld [vmem:[%s5956_s29] ss:$0 sm:$0xff] }
  0x5b   : > { %1163 = vmatpush.bf16.msra.mxu0 %v5443_v20  ;;  %v5598_v59 = vld [vmem:[%s5946_s21 + $0x2] ss:$0 sm:$0xff]  ;;  %v5599_v60 = vld [vmem:[%s5946_s21 + $0x3] ss:$0 sm:$0xff]  ;;  %v5602_v14 = vld [vmem:[%s5956_s29 + $0x1] ss:$0 sm:$0xff]  ;;  %v1529_v18 = vadd.f32 %v5622_v8, %v1528_v12 }
  0x5c   : > { %1264 = vmatpush.bf16.msra.mxu1 %v5451_v24  ;;  %v5601_v16 = vld [vmem:[%s5961_s3] ss:$0 sm:$0xff]  ;;  %v5603_v17 = vld [vmem:[%s5961_s3 + $0x1] ss:$0 sm:$0xff]  ;;  %v5606_v40 = vld [vmem:[%s5961_s3 + $0x3] ss:$0 sm:$0xff] }
  0x5d   : > { %1363 = vmatpush.bf16.msra.mxu2 %v5459_v29  ;;  %1462 = vmatpush.bf16.msra.mxu3 %v5467_v30 }
  0x5f   : > { %1164 = vmatpush.bf16.msra.mxu0 %v5442_v25  ;;  %5589 = vset.pattern.permute.xlu1 %v5908_v23  ;;  %v6169_v25 = vsel %vm1530_vm4, %v5622_v8, %v1529_v18  ;;  %v5122_v18 = vld [vmem:[%s5976_s19 + $0x18] sm:$0xf0] }
  0x60   : > { %5591 = vset.pattern.permute.xlu0 %v5907_v22  ;;  %1265 = vmatpush.bf16.msra.mxu1 %v5450_v26 }
  0x61   : > { %1364 = vmatpush.bf16.msra.mxu2 %v5458_v33  ;;  %1463 = vmatpush.bf16.msra.mxu3 %v5466_v34  ;;  %v5604_v34 = vld [vmem:[%s5956_s29 + $0x2] ss:$0 sm:$0xff] }
  0x62   : > { %1374 = vperm.xlu1 %5589, %v1174_v42   ;;  %5588 = vset.pattern.permute.xlu2 %v5905_v2 }
  0x63   : > { %1165 = vmatpush.bf16.msra.mxu0 %v5441_v27  ;;  %1275 = vperm.xlu2 %5588, %v1174_v42  }
  0x64   : > { %1266 = vmatpush.bf16.msra.mxu1 %v5449_v28 }
  0x65   : > { %1365 = vmatpush.bf16.msra.mxu2 %v5457_v35  ;;  %1464 = vmatpush.bf16.msra.mxu3 %v5465_v36  ;;  %v5605_v35 = vld [vmem:[%s5956_s29 + $0x3] ss:$0 sm:$0xff] }
  0x67   : > { %1166 = vmatpush.bf16.msra.mxu0 %v5440_v31 }
  0x68   : > { %1267 = vmatpush.bf16.msra.mxu1 %v5448_v32 }
  0x69   : > { %1366 = vmatpush.bf16.msra.mxu2 %v5456_v37  ;;  %1465 = vmatpush.bf16.msra.mxu3 %v5464_v38 }
  0x6b   : > { %5590 = vset.pattern.permute.xlu2 %v5907_v22 }
  0x6c   : > { %1473 = vperm.xlu2 %5590, %v1174_v42  }
  0x82   : > { %1511 = vadd.xlane.f32.xlu0 %v1510_v41  ;;  %v5607_v41 = vld [vmem:[%s5961_s3 + $0x2] ss:$0 sm:$0xff] }
  0xb4   : > { %v1177_v9 = vpop.permute.xlu2 %1176 }
  0xb5   : > { %vm1178_vm2 = vcmp.eq.s32.totalorder %v1177_v9, 1 }
  0xbd   : > { %v1276_v15 = vpop.permute.xlu2 %1275 }
  0xbe   : > { %vm1277_vm3 = vcmp.eq.s32.totalorder %v1276_v15, 1  ;;  %v5475_v15 = vld [vmem:[%s5976_s19 + $0x14] sm:$0xf0] }
  0xc0   : > { %v1185_v47 = vpop.permute.xlu1 %1184  ;;  %v1084_v48 = vpop.permute.xlu0 %1083 }
  0xc1   : > { %v1188_v49 = vmul.f32 %v5592_v43, %v1185_v47  ;;  %v1087_v50 = vmul.f32 %v5593_v44, %v1084_v48 }
  0xc3   : > { %v1191_v51 = vadd.f32 %v5594_v45, %v1188_v49  ;;  %v1090_v52 = vadd.f32 %v5596_v46, %v1087_v50 }
  0xc5   : > { %v1192_v53 = vmax.f32 %v1191_v51, 0.0  ;;  %v1091_v54 = vmax.f32 %v1090_v52, 0.0 }
  0xc6   : > { %v1474_v36 = vpop.permute.xlu2 %1473 }
  0xc7   : > { %v1209_v57 = vpack.c.bf16 %v1192_v53, %v1192_v53  ;;  %v1108_v58 = vpack.c.bf16 %v1091_v54, %v1091_v54  ;;  %vm1475_vm5 = vcmp.eq.s32.totalorder %v1474_v36, 1 }
  0xc9   : > { %1268 = vmatmul.bf16.vlgmr.msra.gmra.mxu1 %v1209_v57  ;;  %v1383_v61 = vpop.permute.xlu1 %1382  ;;  %1167 = vmatmul.bf16.vlgmr.msra.gmra.mxu0 %v1108_v58 }
  0xca   : > { %v1284_v62 = vpop.permute.xlu0 %1283  ;;  %v1386_v63 = vmul.f32 %v5595_v55, %v1383_v61 }
  0xcb   : > { %v1287_v0 = vmul.f32 %v5597_v56, %v1284_v62 }
  0xcc   : > { %v1389_v2 = vadd.f32 %v5599_v60, %v1386_v63 }
  0xcd   : > { %v1290_v1 = vadd.f32 %v5598_v59, %v1287_v0 }
  0xce   : > { %v1390_v4 = vmax.f32 %v1389_v2, 0.0 }
  0xcf   : > { %v1291_v3 = vmax.f32 %v1290_v1, 0.0 }
  0xd0   : > { %v1407_v6 = vpack.c.bf16 %v1390_v4, %v1390_v4 }
  0xd1   : > { %v1308_v5 = vpack.c.bf16 %v1291_v3, %v1291_v3 }
  0xd2   : > { %1466 = vmatmul.bf16.vlgmr.msra.gmra.mxu3 %v1407_v6 }
  0xd3   : > { %1367 = vmatmul.bf16.vlgmr.msra.gmra.mxu2 %v1308_v5 }
  0xd4   : > { %v1375_v37 = vpop.permute.xlu1 %1374 }
  0xd5   : > { %vm1376_vm6 = vcmp.eq.s32.totalorder %v1375_v37, 1 }
  0xf5   : > { %v1512_v26 = vpop.xlane.xlu0 %1511 }
  0xf6   : > { %v1532_v27 = vmul.f32 %v6169_v25, %v1512_v26  ;;  %v5114_v26 = vld [vmem:[%s5976_s19 + $0x8] sm:$0xf0] }
  0xf8   : > { %v6175_v30 = vsub.f32 %v6150_v39, %v1532_v27 }
  0xfa   : > { %v1542_v42 = vmul.f32 %v6175_v30, %v6175_v30 }
  0xfc   : > { %v1547_v48 = vsel %vm1076_vm0, %v1542_v42, 0.0 }
 0x146   : > { %v1168_v19 = vpop.f32.mrf.mxu0  ;;  %v1269_v20 = vpop.f32.mrf.mxu1 }
 0x147   : > { %v1169_v21 = vadd.f32 %v5600_v13, %v1168_v19  ;;  %v1270_v22 = vadd.f32 %v5602_v14, %v1269_v20  ;;  %v5120_v14 = vld [vmem:[%s5976_s19 + $0x10] sm:$0xf] }
 0x149   : > { %v1180_v23 = vsel %vm1178_vm2, %v5601_v16, %v1169_v21  ;;  %v1279_v24 = vsel %vm1277_vm3, %v5603_v17, %v1270_v22  ;;  %v5474_v16 = vld [vmem:[%s5976_s19 + $0x14] sm:$0xf]  ;;  %v5121_v17 = vor.u32 %v5475_v15, %v5120_v14  ;;  %v5112_v21 = vld [vmem:[%s5976_s19] sm:$0xf]  ;;  %v5473_v22 = vld [vmem:[%s5976_s19 + $0x4] sm:$0xf0] }
 0x14a   : > { %1181 = vst.msk [vmem:[#allocation2 + $0x8] sm:$0xff] %vm1076_vm0, %v1180_v23  ;;  %v5125_v19 = vor.u32 %v5474_v16, %v5122_v18  ;;  %v5472_v23 = vld [vmem:[%s5976_s19 + $0x4] sm:$0xf] }
 0x14b   : > { %1280 = vst.msk [vmem:[#allocation2 + $0x10] sm:$0xff] %vm1076_vm0, %v1279_v24  ;;  %1685 = vmatpush.bf16.msrb.mxu0 %v5121_v17  ;;  %v5113_v24 = vor.u32 %v5473_v22, %v5112_v21 }
 0x14c   : > { %1708 = vmatpush.bf16.msrb.mxu1 %v5125_v19 }
 0x14e   : > { %v1170_v28 = vpop.f32.mrf.mxu0  ;;  %v1271_v29 = vpop.f32.mrf.mxu1 }
 0x14f   : > { %v5117_v28 = vor.u32 %v5472_v23, %v5114_v26  ;;  %1686 = vmatpush.bf16.msrb.mxu0 %v5113_v24 }
 0x151   : > { %v1480_v31 = vld [vmem:[#allocation2 + $0x8] sm:$0xff]  ;;  %1709 = vmatpush.bf16.msrb.mxu1 %v5117_v28 }
 0x152   : > { %v1481_v32 = vld [vmem:[#allocation2 + $0x10] sm:$0xff]  ;;  %v1513_v33 = vsel %vm1076_vm0, %v1480_v31, 0.0 }
 0x153   : > { %v1516_v38 = vsel %vm1076_vm0, %v1481_v32, 0.0  ;;  %1514 = vadd.xlane.f32.xlu1 %v1513_v33 }
 0x154   : > { %1517 = vadd.xlane.f32.xlu2 %v1516_v38 }
 0x155   : > { %v1467_v39 = vpop.f32.mrf.mxu3 }
 0x156   : > { %v1368_v43 = vpop.f32.mrf.mxu2  ;;  %v1468_v45 = vadd.f32 %v5605_v35, %v1467_v39 }
 0x157   : > { %v1369_v44 = vadd.f32 %v5604_v34, %v1368_v43 }
 0x158   : > { %v1477_v46 = vsel %vm1475_vm5, %v5606_v40, %v1468_v45 }
 0x159   : > { %v1378_v47 = vsel %vm1376_vm6, %v5607_v41, %v1369_v44  ;;  %1478 = vst.msk [vmem:[#allocation2 + $0x20] sm:$0xff] %vm1076_vm0, %v1477_v46 }
 0x15a   : > { %1379 = vst.msk [vmem:[#allocation2 + $0x18] sm:$0xff] %vm1076_vm0, %v1378_v47 }
 0x15b   : > { %1548 = vadd.xlane.f32.xlu1 %v1547_v48 }
 0x15d   : > { %v1469_v50 = vpop.f32.mrf.mxu3 }
 0x15e   : > { %v1370_v49 = vpop.f32.mrf.mxu2 }
 0x160   : > { %v1483_v51 = vld [vmem:[#allocation2 + $0x20] sm:$0xff] }
 0x161   : > { %v1522_v52 = vsel %vm1076_vm0, %v1483_v51, 0.0  ;;  %v1482_v53 = vld [vmem:[#allocation2 + $0x18] sm:$0xff] }
 0x162   : > { %1523 = vadd.xlane.f32.xlu0 %v1522_v52  ;;  %v1519_v54 = vsel %vm1076_vm0, %v1482_v53, 0.0 }
 0x163   : > { %1520 = vadd.xlane.f32.xlu2 %v1519_v54 }
 0x1c6   : > { %v1515_v55 = vpop.xlane.xlu1 %1514 }
 0x1c7   : > { %v1518_v56 = vpop.xlane.xlu2 %1517  ;;  %v1533_v57 = vmul.f32 %v6169_v25, %v1515_v55 }
 0x1c8   : > { %v1534_v58 = vmul.f32 %v6169_v25, %v1518_v56  ;;  %v5608_v56 = vld [vmem:[%s5966_s8] ss:$0 sm:$0xff] }
 0x1c9   : > { %v6192_v59 = vsub.f32 %v1480_v31, %v1533_v57 }
 0x1ca   : > { %v6194_v60 = vsub.f32 %v1481_v32, %v1534_v58 }
 0x1cb   : > { %v1543_v61 = vmul.f32 %v6192_v59, %v6192_v59 }
 0x1cc   : > { %v1544_v62 = vmul.f32 %v6194_v60, %v6194_v60 }
 0x1cd   : > { %v1550_v63 = vsel %vm1076_vm0, %v1543_v61, 0.0 }
 0x1ce   : > { %v1553_v0 = vsel %vm1076_vm0, %v1544_v62, 0.0  ;;  %1551 = vadd.xlane.f32.xlu2 %v1550_v63  ;;  %v1549_v11 = vpop.xlane.xlu1 %1548 }
 0x1cf   : > { %1554 = vadd.xlane.f32.xlu0 %v1553_v0  ;;  %v1562_v12 = vmul.f32 %v1549_v11, %v6169_v25  ;;  %v5609_v0 = vld [vmem:[%s5971_s14] ss:$0 sm:$0xff] }
 0x1d1   : > { %v1567_v13 = vadd.f32 1e-05, %v1562_v12 }
 0x1d3   : > { %5623 = vrsqrt.f32 %v1567_v13  ;;  %vm1578_vm7 = vweird.f32 %v1567_v13 }
 0x1d5   : > { %v1524_v1 = vpop.xlane.xlu0 %1523 }
 0x1d6   : > { %v1521_v2 = vpop.xlane.xlu2 %1520  ;;  %v1536_v3 = vmul.f32 %v6169_v25, %v1524_v1 }
 0x1d7   : > { %v1535_v4 = vmul.f32 %v6169_v25, %v1521_v2 }
 0x1d8   : > { %v6204_v5 = vsub.f32 %v1483_v51, %v1536_v3 }
 0x1d9   : > { %v6206_v6 = vsub.f32 %v1482_v53, %v1535_v4  ;;  %v5624_v20 = vpop.eup %5623 }
 0x1da   : > { %v1546_v7 = vmul.f32 %v6204_v5, %v6204_v5  ;;  %v1573_v27 = vmul.f32 %v5624_v20, %v1567_v13  ;;  %vm1579_vm8 = vweird.f32 %v5624_v20 }
 0x1db   : > { %v1545_v8 = vmul.f32 %v6206_v6, %v6206_v6  ;;  %vm1580_vm9 = vmor %vm1578_vm7, %vm1579_vm8  ;;  %vm1825_vm7 = vcmask 1043456   ;;  %vm1737_vm8 = vcmask 130048  }
 0x1dc   : > { %v1559_v9 = vsel %vm1076_vm0, %v1546_v7, 0.0  ;;  %v1574_v29 = vmul.f32 %v5624_v20, %v1573_v27 }
 0x1dd   : > { %v1556_v10 = vsel %vm1076_vm0, %v1545_v8, 0.0  ;;  %1560 = vadd.xlane.f32.xlu2 %v1559_v9 }
 0x1de   : > { %1557 = vadd.xlane.f32.xlu1 %v1556_v10  ;;  %v1575_v36 = vmul.f32 0.5, %v1574_v29 }
 0x1e0   : > { %v1576_v38 = vsub.f32 1.5, %v1575_v36 }
 0x1e2   : > { %v1577_v42 = vmul.f32 %v5624_v20, %v1576_v38 }
 0x1e4   : > { %v1581_v46 = vsel %vm1580_vm9, %v5624_v20, %v1577_v42 }
 0x1e5   : > { %v1622_v54 = vmul.f32 %v1581_v46, %v6175_v30 }
 0x1e7   : > { %v1630_v63 = vmul.f32 %v5608_v56, %v1622_v54 }
 0x1e9   : > { %v6231_v8 = vadd.f32 %v5609_v0, %v1630_v63 }
 0x241   : > { %v1552_v31 = vpop.xlane.xlu2 %1551 }
 0x242   : > { %v1563_v32 = vmul.f32 %v1552_v31, %v6169_v25  ;;  %v1555_v33 = vpop.xlane.xlu0 %1554 }
 0x243   : > { %v1564_v34 = vmul.f32 %v1555_v33, %v6169_v25 }
 0x244   : > { %v1568_v35 = vadd.f32 1e-05, %v1563_v32 }
 0x245   : > { %v1569_v37 = vadd.f32 1e-05, %v1564_v34 }
 0x246   : > { %5625 = vrsqrt.f32 %v1568_v35  ;;  %vm1588_vm11 = vweird.f32 %v1568_v35 }
 0x247   : > { %5627 = vrsqrt.f32 %v1569_v37  ;;  %vm1598_vm14 = vweird.f32 %v1569_v37 }
 0x24c   : > { %v5626_v40 = vpop.eup %5625 }
 0x24d   : > { %v5628_v41 = vpop.eup %5627  ;;  %v1583_v43 = vmul.f32 %v5626_v40, %v1568_v35  ;;  %vm1589_vm10 = vweird.f32 %v5626_v40 }
 0x24e   : > { %v1593_v39 = vmul.f32 %v5628_v41, %v1569_v37  ;;  %vm1590_vm12 = vmor %vm1588_vm11, %vm1589_vm10  ;;  %vm1599_vm13 = vweird.f32 %v5628_v41  ;;  %vm1779_vm10 = vcmask 326656  }
 0x24f   : > { %v1584_v44 = vmul.f32 %v5626_v40, %v1583_v43  ;;  %vm1600_vm15 = vmor %vm1598_vm14, %vm1599_vm13 }
 0x250   : > { %v1561_v45 = vpop.xlane.xlu2 %1560  ;;  %v1594_v48 = vmul.f32 %v5628_v41, %v1593_v39 }
 0x251   : > { %v1585_v47 = vmul.f32 0.5, %v1584_v44  ;;  %v1558_v49 = vpop.xlane.xlu1 %1557  ;;  %v1566_v50 = vmul.f32 %v1561_v45, %v6169_v25 }
 0x252   : > { %v1565_v51 = vmul.f32 %v1558_v49, %v6169_v25  ;;  %v1595_v58 = vmul.f32 0.5, %v1594_v48 }
 0x253   : > { %v1586_v52 = vsub.f32 1.5, %v1585_v47  ;;  %v1571_v53 = vadd.f32 1e-05, %v1566_v50 }
 0x254   : > { %v1570_v55 = vadd.f32 1e-05, %v1565_v51  ;;  %v1596_v1 = vsub.f32 1.5, %v1595_v58 }
 0x255   : > { %v1587_v57 = vmul.f32 %v5626_v40, %v1586_v52  ;;  %5629 = vrsqrt.f32 %v1571_v53  ;;  %vm1618_vm5 = vweird.f32 %v1571_v53 }
 0x256   : > { %5631 = vrsqrt.f32 %v1570_v55  ;;  %v1597_v9 = vmul.f32 %v5628_v41, %v1596_v1  ;;  %vm1608_vm2 = vweird.f32 %v1570_v55  ;;  %v5911_v1 = vmov -1e+30  }
 0x257   : > { %v1591_v61 = vsel %vm1590_vm12, %v5626_v40, %v1587_v57  ;;  %v1484_v57 = vlaneseq }
 0x258   : > { %v1623_v62 = vmul.f32 %v1591_v61, %v6192_v59  ;;  %v1601_v13 = vsel %vm1600_vm15, %v5628_v41, %v1597_v9 }
 0x259   : > { %v1624_v17 = vmul.f32 %v1601_v13, %v6194_v60  ;;  %v1485_v58 = vshrl.u32 %v1484_v57, 7  ;;  %v1496_v61 = vand.u32 127, %v1484_v57 }
 0x25a   : > { %v1631_v2 = vmul.f32 %v5608_v56, %v1623_v62 }
 0x25b   : > { %v5630_v3 = vpop.eup %5629  ;;  %v1632_v22 = vmul.f32 %v5608_v56, %v1624_v17  ;;  %v1490_v62 = vand.u32 7, %v1485_v58  ;;  %v1497_v63 = vand.u32 7, %v1496_v61 }
 0x25c   : > { %v5632_v4 = vpop.eup %5631  ;;  %v1613_v7 = vmul.f32 %v5630_v3, %v1571_v53  ;;  %v6233_v30 = vadd.f32 %v5609_v0, %v1631_v2  ;;  %vm1619_vm4 = vweird.f32 %v5630_v3 }
 0x25d   : > { %v1603_v10 = vmul.f32 %v5632_v4, %v1570_v55  ;;  %vm1609_vm1 = vweird.f32 %v5632_v4  ;;  %v6241_v26 = vadd.f32 %v5609_v0, %v1632_v22  ;;  %vm1620_vm6 = vmor %vm1618_vm5, %vm1619_vm4  ;;  %vm1498_vm9 = vcmp.eq.s32.totalorder %v1490_v62, %v1497_v63 }
 0x25e   : > { %v1647_v11 = vpack.c.bf16 %v6233_v30, %v6231_v8  ;;  %v1614_v59 = vmul.f32 %v5630_v3, %v1613_v7  ;;  %vm1610_vm3 = vmor %vm1608_vm2, %vm1609_vm1  ;;  %v6287_v2 = vsel %vm1498_vm9, 0.0, %v5911_v1 }
 0x25f   : > { %v1604_v12 = vmul.f32 %v5632_v4, %v1603_v10  ;;  %v1487_v10 = vadd.s32 16, %v1485_v58 }
 0x260   : > { %5126 = vmatmul.msk.bf16.vlgmr.msrb.gmra.mxu0 %vm1076_vm0, %v1647_v11  ;;  %5129 = vmatmul.msk.bf16.vlgmr.msrb.gmra.mxu1 %vm1076_vm0, %v1647_v11  ;;  %v1615_v16 = vmul.f32 0.5, %v1614_v59 }
 0x261   : > { %v1605_v14 = vmul.f32 0.5, %v1604_v12  ;;  %v1492_v12 = vand.u32 7, %v1487_v10 }
 0x262   : > { %v1616_v20 = vsub.f32 1.5, %v1615_v16 }
 0x263   : > { %v1606_v15 = vsub.f32 1.5, %v1605_v14  ;;  %vm1500_vm12 = vcmp.eq.s32.totalorder %v1492_v12, %v1497_v63 }
 0x264   : > { %v1617_v24 = vmul.f32 %v5630_v3, %v1616_v20  ;;  %v6295_v16 = vsel %vm1500_vm12, 0.0, %v5911_v1 }
 0x265   : > { %v1607_v18 = vmul.f32 %v5632_v4, %v1606_v15  ;;  %v1488_v15 = vadd.s32 24, %v1485_v58 }
 0x266   : > { %v1621_v28 = vsel %vm1620_vm6, %v5630_v3, %v1617_v24 }
 0x267   : > { %v1611_v19 = vsel %vm1610_vm3, %v5632_v4, %v1607_v18  ;;  %v1493_v17 = vand.u32 7, %v1488_v15 }
 0x268   : > { %v1625_v21 = vmul.f32 %v1611_v19, %v6206_v6  ;;  %v1626_v6 = vmul.f32 %v1621_v28, %v6204_v5 }
 0x269   : > { %vm1501_vm13 = vcmp.eq.s32.totalorder %v1493_v17, %v1497_v63 }
 0x26a   : > { %v1633_v23 = vmul.f32 %v5608_v56, %v1625_v21  ;;  %v1634_v29 = vmul.f32 %v5608_v56, %v1626_v6  ;;  %v1489_v21 = vadd.s32 32, %v1485_v58  ;;  %v6299_v22 = vsel %vm1501_vm13, 0.0, %v5911_v1 }
 0x26c   : > { %v6243_v27 = vadd.f32 %v5609_v0, %v1633_v23  ;;  %v6250_v31 = vadd.f32 %v5609_v0, %v1634_v29  ;;  %v1486_v0 = vadd.s32 8, %v1485_v58  ;;  %v1494_v23 = vand.u32 7, %v1489_v21  ;;  %v5476_v58 = vld [vmem:[%s5981_s24] sm:$0xff] }
 0x26e   : > { %v1648_v60 = vpack.c.bf16 %v6243_v27, %v6241_v26  ;;  %v1649_v32 = vpack.c.bf16 %v6250_v31, %v6250_v31  ;;  %v1491_v3 = vand.u32 7, %v1486_v0  ;;  %vm1502_vm14 = vcmp.eq.s32.totalorder %v1494_v23, %v1497_v63 }
 0x26f   : > { %v6303_v6 = vsel %vm1502_vm14, 0.0, %v5911_v1 }
 0x270   : > { %5127 = vmatmul.msk.bf16.gmra.mxu0 %vm1076_vm0, %v1648_v60  ;;  %5130 = vmatmul.msk.bf16.gmra.mxu1 %vm1076_vm0, %v1648_v60  ;;  %vm1499_vm11 = vcmp.eq.s32.totalorder %v1491_v3, %v1497_v63 }
 0x271   : > { %v6291_v11 = vsel %vm1499_vm11, 0.0, %v5911_v1 }
 0x280   : > { %5128 = vmatmul.msk.bf16.gmra.mxu0 %vm1076_vm0, %v1649_v32  ;;  %5131 = vmatmul.msk.bf16.gmra.mxu1 %vm1076_vm0, %v1649_v32 }
 0x2dd   : > { %v1688_v33 = vpop.f32.mrf.mxu0  ;;  %v1711_v34 = vpop.f32.mrf.mxu1 }
 0x2e5   : > { %v1690_v35 = vpop.f32.mrf.mxu0  ;;  %v1713_v36 = vpop.f32.mrf.mxu1 }
 0x2e6   : > { %v6256_v37 = vpack.c.bf16 %v1690_v35, %v1688_v33  ;;  %v6275_v50 = vpack.c.bf16 %v1713_v36, %v1711_v34 }
 0x2e8   : > { %1731 = vrot.lane.b32.xlu2 %v6256_v37, %s5910_s23 }
 0x2ed   : > { %v1693_v5 = vpop.f32.mrf.mxu0  ;;  %v1716_v38 = vpop.f32.mrf.mxu1 }
 0x2f5   : > { %v1695_v40 = vpop.f32.mrf.mxu0  ;;  %v1718_v41 = vpop.f32.mrf.mxu1 }
 0x2f6   : > { %v6260_v42 = vpack.c.bf16 %v1695_v40, %v1693_v5  ;;  %v6272_v47 = vpack.c.bf16 %v1718_v41, %v1716_v38 }
 0x2f8   : > { %1733 = vrot.lane.b32.xlu1 %v6260_v42, %s5910_s23 }
 0x2fd   : > { %v1698_v43 = vpop.f32.mrf.mxu0  ;;  %v1721_v39 = vpop.f32.mrf.mxu1 }
 0x2fe   : > { %v6264_v44 = vpack.c.bf16 %v1698_v43, %v1698_v43  ;;  %v6266_v45 = vpack.c.bf16 %v1721_v39, %v1721_v39 }
 0x300   : > { %1735 = vrot.lane.b32.xlu0 %v6264_v44, %s5910_s23  ;;  %v1827_v46 = vsel %vm1825_vm7, %v6266_v45, 0 }
 0x301   : > { %1834 = vmatpush.bf16.msrb.mxu3 %v1827_v46 }
 0x305   : > { %v1700_v48 = vpop.f32.mrf.mxu0  ;;  %v1723_v49 = vpop.f32.mrf.mxu1  ;;  %1835 = vmatpush.bf16.msrb.mxu3 %v6272_v47 }
 0x309   : > { %1836 = vmatpush.bf16.msrb.mxu3 %v6275_v50 }
 0x342   : > { %v1732_v55 = vpop.permute.xlu2 %1731 }
 0x343   : > { %v1748_v56 = vsel %vm1737_vm8, %v1732_v55, 0 }
 0x36a   : > { %v1734_v53 = vpop.permute.xlu1 %1733 }
 0x36b   : > { %v1751_v54 = vsel %vm1737_vm8, %v1734_v53, 0 }
 0x372   : > { %v1736_v51 = vpop.permute.xlu0 %1735 }
 0x373   : > { %v1754_v52 = vsel %vm1737_vm8, %v1736_v51, 0 }
 0x374   : > { %1761 = vmatpush.bf16.xpose.msrb.mxu2 %v1754_v52 }
 0x37c   : > { %1762 = vmatpush.bf16.xpose.msrb.mxu2 %v1751_v54 }
 0x384   : > { %1763 = vmatpush.bf16.xpose.msrb.mxu2 %v1748_v56 }
 0x38b   : > { %5132 = vmatmul.msk.bf16.vlgmr.msrb.gmra.mxu2 %vm1737_vm8, %v6256_v37 }
 0x38c   : > { %2104 = vmatpush.bf16.msra.mxu2 %v5476_v58 }
 0x39b   : > { %5133 = vmatmul.msk.bf16.gmra.mxu2 %vm1737_vm8, %v6260_v42 }
 0x3ab   : > { %5134 = vmatmul.msk.bf16.gmra.mxu2 %vm1737_vm8, %v6264_v44 }
 0x40e   : > { %v1765_v4 = vpop.f32.mrf.mxu2 }
 0x40f   : > { %v1766_v7 = vadd.f32 %v1765_v4, %v6287_v2 }
 0x411   : > { %v1780_v9 = vsel %vm1779_vm10, %v1766_v7, -inf }
 0x412   : > { %1781 = vmax.xlane.f32.xlu0 %v1780_v9 }
 0x416   : > { %v1767_v59 = vpop.f32.mrf.mxu2 }
 0x417   : > { %v1768_v13 = vadd.f32 %v1767_v59, %v6291_v11 }
 0x419   : > { %v1783_v14 = vsel %vm1779_vm10, %v1768_v13, -inf }
 0x41a   : > { %1784 = vmax.xlane.f32.xlu1 %v1783_v14 }
 0x41e   : > { %v1770_v18 = vpop.f32.mrf.mxu2 }
 0x41f   : > { %v1771_v19 = vadd.f32 %v1770_v18, %v6295_v16 }
 0x421   : > { %v1786_v20 = vsel %vm1779_vm10, %v1771_v19, -inf }
 0x422   : > { %1787 = vmax.xlane.f32.xlu2 %v1786_v20 }
 0x426   : > { %v1772_v24 = vpop.f32.mrf.mxu2 }
 0x427   : > { %v1773_v60 = vadd.f32 %v1772_v24, %v6299_v22 }
 0x429   : > { %v1789_v28 = vsel %vm1779_vm10, %v1773_v60, -inf }
 0x42a   : > { %1790 = vmax.xlane.f32.xlu0 %v1789_v28 }
 0x42e   : > { %v1775_v29 = vpop.f32.mrf.mxu2 }
 0x42f   : > { %v1776_v32 = vadd.f32 %v1775_v29, %v6303_v6 }
 0x431   : > { %v1792_v33 = vsel %vm1779_vm10, %v1776_v32, -inf }
 0x432   : > { %1793 = vmax.xlane.f32.xlu1 %v1792_v33 }
 0x436   : > { %v1777_v34 = vpop.f32.mrf.mxu2 }
 0x43a   : > { %1890 = vrot.lane.b32.xlu2 %v6260_v42, %s5912_s26 }
 0x43e   : > { %1892 = vrot.lane.b32.xlu0 %v6264_v44, %s5912_s26 }
 0x442   : > { %2130 = vrot.lane.b32.xlu2 %v6264_v44, %s5913_s28 }
 0x446   : > { %1888 = vrot.lane.b32.xlu0 %v6256_v37, %s5912_s26 }
 0x44a   : > { %2128 = vrot.lane.b32.xlu2 %v6260_v42, %s5913_s28 }
 0x44b   : > { %1882 = vrot.lane.b32.xlu1 %v6256_v37, %s5914_s1 }
 0x44e   : > { %2332 = vrot.lane.b32.xlu0 %v6264_v44, %s5915_s2 }
 0x453   : > { %1884 = vrot.lane.b32.xlu1 %v6260_v42, %s5914_s1 }
 0x456   : > { %1886 = vrot.lane.b32.xlu0 %v6264_v44, %s5914_s1 }
 0x485   : > { %v1782_v35 = vpop.xlane.xlu0 %1781 }
 0x486   : > { %v1795_v36 = vsub.f32 %v1766_v7, %v1782_v35 }
 0x488   : > { %v1800_v5 = vmul.f32 1.442695, %v1795_v36 }
 0x48a   : > { %5633 = vpow2.f32 %v1800_v5 }
 0x48d   : > { %v1785_v38 = vpop.xlane.xlu1 %1784 }
 0x48e   : > { %v1796_v40 = vsub.f32 %v1768_v13, %v1785_v38 }
 0x490   : > { %v5634_v41 = vpop.eup %5633  ;;  %v1802_v43 = vmul.f32 1.442695, %v1796_v40 }
 0x491   : > { %v1852_v39 = vsel %vm1779_vm10, %v5634_v41, 0.0 }
 0x492   : > { %5635 = vpow2.f32 %v1802_v43  ;;  %1853 = vadd.xlane.f32.xlu1 %v1852_v39 }
 0x495   : > { %v1788_v46 = vpop.xlane.xlu2 %1787 }
 0x496   : > { %v1797_v48 = vsub.f32 %v1771_v19, %v1788_v46 }
 0x498   : > { %v5636_v49 = vpop.eup %5635  ;;  %v1804_v51 = vmul.f32 1.442695, %v1797_v48 }
 0x499   : > { %v1855_v52 = vsel %vm1779_vm10, %v5636_v49, 0.0  ;;  %v1810_v53 = vpack.c.bf16 %v5636_v49, %v5634_v41 }
 0x49a   : > { %5637 = vpow2.f32 %v1804_v51  ;;  %1856 = vadd.xlane.f32.xlu1 %v1855_v52 }
 0x49b   : > { %5135 = vmatmul.msk.bf16.vlgmr.msrb.gmra.mxu3 %vm1779_vm10, %v1810_v53 }
 0x49d   : > { %v1791_v54 = vpop.xlane.xlu0 %1790  ;;  %v1891_v59 = vpop.permute.xlu2 %1890 }
 0x49e   : > { %v1798_v55 = vsub.f32 %v1773_v60, %v1791_v54  ;;  %v1907_v14 = vsel %vm1737_vm8, %v1891_v59, 0 }
 0x4a0   : > { %v5638_v56 = vpop.eup %5637  ;;  %v1806_v57 = vmul.f32 1.442695, %v1798_v55 }
 0x4a1   : > { %v1858_v61 = vsel %vm1779_vm10, %v5638_v56, 0.0 }
 0x4a2   : > { %5639 = vpow2.f32 %v1806_v57  ;;  %1859 = vadd.xlane.f32.xlu2 %v1858_v61 }
 0x4a5   : > { %v1794_v62 = vpop.xlane.xlu1 %1793  ;;  %v2131_v17 = vpop.permute.xlu2 %2130 }
 0x4a6   : > { %v1799_v63 = vsub.f32 %v1776_v32, %v1794_v62  ;;  %v2148_v21 = vsel %vm1737_vm8, %v2131_v17, 0 }
 0x4a8   : > { %v5640_v0 = vpop.eup %5639  ;;  %v1808_v1 = vmul.f32 1.442695, %v1799_v63 }
 0x4a9   : > { %v1861_v3 = vsel %vm1779_vm10, %v5640_v0, 0.0  ;;  %v1811_v4 = vpack.c.bf16 %v5640_v0, %v5638_v56 }
 0x4aa   : > { %5641 = vpow2.f32 %v1808_v1  ;;  %1862 = vadd.xlane.f32.xlu0 %v1861_v3 }
 0x4ab   : > { %5136 = vmatmul.msk.bf16.gmra.mxu3 %vm1779_vm10, %v1811_v4 }
 0x4ad   : > { %v2129_v23 = vpop.permute.xlu2 %2128 }
 0x4ae   : > { %v2145_v60 = vsel %vm1737_vm8, %v2129_v23, 0 }
 0x4b0   : > { %v5642_v7 = vpop.eup %5641  ;;  %v1893_v9 = vpop.permute.xlu0 %1892 }
 0x4b1   : > { %v1910_v10 = vsel %vm1737_vm8, %v1893_v9, 0  ;;  %v1864_v12 = vsel %vm1779_vm10, %v5642_v7, 0.0  ;;  %v1812_v15 = vpack.c.bf16 %v5642_v7, %v5642_v7 }
 0x4b2   : > { %1865 = vadd.xlane.f32.xlu1 %v1864_v12  ;;  %1917 = vmatpush.bf16.xpose.msra.mxu0 %v1910_v10 }
 0x4b8   : > { %v1889_v13 = vpop.permute.xlu0 %1888 }
 0x4b9   : > { %v1904_v20 = vsel %vm1737_vm8, %v1889_v13, 0 }
 0x4ba   : > { %2328 = vrot.lane.b32.xlu2 %v6256_v37, %s5915_s2  ;;  %1918 = vmatpush.bf16.xpose.msra.mxu0 %v1907_v14 }
 0x4bb   : > { %5137 = vmatmul.msk.bf16.gmra.mxu3 %vm1779_vm10, %v1812_v15 }
 0x4bd   : > { %v1883_v24 = vpop.permute.xlu1 %1882 }
 0x4be   : > { %2126 = vrot.lane.b32.xlu0 %v6256_v37, %s5913_s28 }
 0x4c0   : > { %v2333_v18 = vpop.permute.xlu0 %2332 }
 0x4c1   : > { %v2350_v19 = vsel %vm1737_vm8, %v2333_v18, 0 }
 0x4c2   : > { %2322 = vrot.lane.b32.xlu2 %v6256_v37, %s5916_s10  ;;  %1919 = vmatpush.bf16.xpose.msra.mxu0 %v1904_v20 }
 0x4c3   : > { %2357 = vmatpush.bf16.xpose.msrb.mxu2 %v2350_v19 }
 0x4c6   : > { %2120 = vrot.lane.b32.xlu0 %v6256_v37, %s5917_s7  ;;  %v1885_v37 = vpop.permute.xlu1 %1884 }
 0x4c8   : > { %v1887_v28 = vpop.permute.xlu0 %1886 }
 0x4c9   : > { %5138 = vmatmul.msk.bf16.vlgmr.msra.gmra.mxu0 %vm1737_vm8, %v1883_v24 }
 0x4ca   : > { %2155 = vmatpush.bf16.xpose.msrb.mxu0 %v2148_v21  ;;  %2324 = vrot.lane.b32.xlu2 %v6260_v42, %s5916_s10 }
 0x4cb   : > { %2330 = vrot.lane.b32.xlu1 %v6260_v42, %s5915_s2 }
 0x4ce   : > { %2122 = vrot.lane.b32.xlu0 %v6260_v42, %s5917_s7 }
 0x4d2   : > { %2156 = vmatpush.bf16.xpose.msrb.mxu0 %v2145_v60 }
 0x4d3   : > { %2124 = vrot.lane.b32.xlu1 %v6264_v44, %s5917_s7 }
 0x4d6   : > { %2326 = vrot.lane.b32.xlu0 %v6264_v44, %s5916_s10 }
 0x4d9   : > { %5139 = vmatmul.msk.bf16.gmra.mxu0 %vm1737_vm8, %v1885_v37 }
 0x4de   : > { %1975 = vrot.lane.b32.xlu0 %v6266_v45, %s5914_s1 }
 0x4e6   : > { %1973 = vrot.lane.b32.xlu0 %v6272_v47, %s5914_s1 }
 0x4e9   : > { %5140 = vmatmul.msk.bf16.gmra.mxu0 %vm1737_vm8, %v1887_v28 }
 0x4ee   : > { %1971 = vrot.lane.b32.xlu0 %v6275_v50, %s5914_s1 }
 0x505   : > { %v1854_v42 = vpop.xlane.xlu1 %1853 }
 0x506   : > { %5643 = vrcp.f32 %v1854_v42 }
 0x50c   : > { %v5644_v44 = vpop.eup %5643 }
 0x50d   : > { %v1857_v29 = vpop.xlane.xlu1 %1856 }
 0x50e   : > { %5645 = vrcp.f32 %v1857_v29 }
 0x514   : > { %v5646_v33 = vpop.eup %5645 }
 0x515   : > { %v1860_v40 = vpop.xlane.xlu2 %1859 }
 0x516   : > { %5647 = vrcp.f32 %v1860_v40 }
 0x51c   : > { %v5648_v46 = vpop.eup %5647 }
 0x51d   : > { %v1863_v5 = vpop.xlane.xlu0 %1862  ;;  %v2329_v62 = vpop.permute.xlu2 %2328 }
 0x51e   : > { %v1838_v32 = vpop.f32.mrf.mxu3  ;;  %5649 = vrcp.f32 %v1863_v5  ;;  %v2344_v1 = vsel %vm1737_vm8, %v2329_v62, 0 }
 0x51f   : > { %v1872_v35 = vmul.f32 %v5644_v44, %v1838_v32 }
 0x524   : > { %v5650_v49 = vpop.eup %5649 }
 0x525   : > { %v1866_v48 = vpop.xlane.xlu1 %1865  ;;  %v2323_v24 = vpop.permute.xlu2 %2322 }
 0x526   : > { %v1840_v34 = vpop.f32.mrf.mxu3  ;;  %5651 = vrcp.f32 %v1866_v48 }
 0x527   : > { %v1873_v36 = vmul.f32 %v5646_v33, %v1840_v34 }
 0x529   : > { %v1879_v38 = vpack.c.bf16 %v1873_v36, %v1872_v35 }
 0x52b   : > { %5155 = vmatmul.msk.bf16.vlgmr.msra.gmra.mxu2 %vm1737_vm8, %v1879_v38 }
 0x52c   : > { %v5652_v63 = vpop.eup %5651 }
 0x52d   : > { %v2325_v33 = vpop.permute.xlu2 %2324 }
 0x52e   : > { %v1843_v41 = vpop.f32.mrf.mxu3 }
 0x52f   : > { %v1874_v52 = vmul.f32 %v5648_v46, %v1843_v41 }
 0x530   : > { %v2127_v43 = vpop.permute.xlu0 %2126 }
 0x531   : > { %v2142_v39 = vsel %vm1737_vm8, %v2127_v43, 0 }
 0x532   : > { %2157 = vmatpush.bf16.xpose.msrb.mxu0 %v2142_v39 }
 0x536   : > { %v1845_v51 = vpop.f32.mrf.mxu3 }
 0x537   : > { %v1875_v53 = vmul.f32 %v5650_v49, %v1845_v51 }
 0x538   : > { %v2121_v54 = vpop.permute.xlu0 %2120 }
 0x539   : > { %v1880_v55 = vpack.c.bf16 %v1875_v53, %v1874_v52  ;;  %5158 = vmatmul.msk.bf16.vlgmr.msrb.gmra.mxu0 %vm1737_vm8, %v2121_v54 }
 0x53b   : > { %5156 = vmatmul.msk.bf16.gmra.mxu2 %vm1737_vm8, %v1880_v55 }
 0x53d   : > { %v2331_v56 = vpop.permute.xlu1 %2330 }
 0x53e   : > { %v1848_v57 = vpop.f32.mrf.mxu3  ;;  %v2347_v58 = vsel %vm1737_vm8, %v2331_v56, 0 }
 0x53f   : > { %2358 = vmatpush.bf16.xpose.msrb.mxu2 %v2347_v58  ;;  %v1876_v0 = vmul.f32 %v5652_v63, %v1848_v57 }
 0x540   : > { %v2123_v61 = vpop.permute.xlu0 %2122 }
 0x541   : > { %v1881_v10 = vpack.c.bf16 %v1876_v0, %v1876_v0 }
 0x545   : > { %v2125_v20 = vpop.permute.xlu1 %2124 }
 0x546   : > { %v1850_v3 = vpop.f32.mrf.mxu3  ;;  %v1921_v4 = vpop.f32.mrf.mxu0 }
 0x547   : > { %v1922_v7 = vadd.f32 %v1921_v4, %v6287_v2  ;;  %2359 = vmatpush.bf16.xpose.msrb.mxu2 %v2344_v1 }
 0x548   : > { %v2327_v9 = vpop.permute.xlu0 %2326 }
 0x549   : > { %5159 = vmatmul.msk.bf16.gmra.mxu0 %vm1737_vm8, %v2123_v61  ;;  %v1935_v12 = vsel %vm1779_vm10, %v1922_v7, -inf }
 0x54a   : > { %1936 = vmax.xlane.f32.xlu2 %v1935_v12 }
 0x54b   : > { %5157 = vmatmul.msk.bf16.gmra.mxu2 %vm1737_vm8, %v1881_v10 }
 0x54e   : > { %v1923_v59 = vpop.f32.mrf.mxu0 }
 0x54f   : > { %v1924_v13 = vadd.f32 %v1923_v59, %v6291_v11 }
 0x550   : > { %v1976_v14 = vpop.permute.xlu0 %1975 }
 0x551   : > { %v1989_v15 = vsel %vm1825_vm7, %v1976_v14, 0  ;;  %v1938_v17 = vsel %vm1779_vm10, %v1924_v13, -inf }
 0x552   : > { %1996 = vmatpush.bf16.msra.mxu1 %v1989_v15  ;;  %1939 = vmax.xlane.f32.xlu1 %v1938_v17 }
 0x556   : > { %v1926_v18 = vpop.f32.mrf.mxu0 }
 0x557   : > { %v1927_v19 = vadd.f32 %v1926_v18, %v6295_v16 }
 0x558   : > { %v1974_v21 = vpop.permute.xlu0 %1973 }
 0x559   : > { %1997 = vmatpush.bf16.msra.mxu1 %v1974_v21  ;;  %5160 = vmatmul.msk.bf16.gmra.mxu0 %vm1737_vm8, %v2125_v20  ;;  %v1941_v23 = vsel %vm1779_vm10, %v1927_v19, -inf }
 0x55a   : > { %1942 = vmax.xlane.f32.xlu0 %v1941_v23 }
 0x55b   : > { %5171 = vmatmul.msk.bf16.vlgmr.msrb.gmra.mxu2 %vm1737_vm8, %v2323_v24 }
 0x55e   : > { %v1928_v60 = vpop.f32.mrf.mxu0 }
 0x55f   : > { %v1929_v37 = vadd.f32 %v1928_v60, %v6299_v22 }
 0x560   : > { %v1972_v28 = vpop.permute.xlu0 %1971 }
 0x561   : > { %1998 = vmatpush.bf16.msra.mxu1 %v1972_v28  ;;  %v1944_v42 = vsel %vm1779_vm10, %v1929_v37, -inf }
 0x562   : > { %1945 = vmax.xlane.f32.xlu2 %v1944_v42 }
 0x566   : > { %v1931_v29 = vpop.f32.mrf.mxu0 }
 0x567   : > { %v1932_v32 = vadd.f32 %v1931_v29, %v6303_v6 }
 0x569   : > { %v1947_v44 = vsel %vm1779_vm10, %v1932_v32, -inf }
 0x56a   : > { %1948 = vmax.xlane.f32.xlu1 %v1947_v44 }
 0x56b   : > { %5172 = vmatmul.msk.bf16.gmra.mxu2 %vm1737_vm8, %v2325_v33 }
 0x56e   : > { %v1933_v34 = vpop.f32.mrf.mxu0  ;;  %2206 = vrot.lane.b32.xlu0 %v6275_v50, %s5917_s7 }
 0x57b   : > { %5173 = vmatmul.msk.bf16.gmra.mxu2 %vm1737_vm8, %v2327_v9 }
 0x5ae   : > { %v6392_v35 = vpop.f32.mrf.mxu2 }
 0x5b6   : > { %v6394_v36 = vpop.f32.mrf.mxu2  ;;  %v2159_v5 = vpop.f32.mrf.mxu0 }
 0x5b7   : > { %v6397_v38 = vadd.f32 %v2159_v5, %v6287_v2 }
 0x5b9   : > { %v2173_v40 = vsel %vm1779_vm10, %v6397_v38, -inf }
 0x5ba   : > { %2174 = vmax.xlane.f32.xlu2 %v2173_v40 }
 0x5bd   : > { %v1937_v41 = vpop.xlane.xlu2 %1936 }
 0x5be   : > { %v6401_v43 = vpop.f32.mrf.mxu2  ;;  %v2161_v39 = vpop.f32.mrf.mxu0  ;;  %v1950_v48 = vsub.f32 %v1922_v7, %v1937_v41 }
 0x5bf   : > { %v6404_v46 = vadd.f32 %v2161_v39, %v6291_v11 }
 0x5c0   : > { %v1955_v51 = vmul.f32 1.442695, %v1950_v48 }
 0x5c1   : > { %v2176_v49 = vsel %vm1779_vm10, %v6404_v46, -inf }
 0x5c2   : > { %2177 = vmax.xlane.f32.xlu1 %v2176_v49  ;;  %5653 = vpow2.f32 %v1955_v51 }
 0x5c5   : > { %v1940_v52 = vpop.xlane.xlu1 %1939 }
 0x5c6   : > { %v1951_v53 = vsub.f32 %v1924_v13, %v1940_v52  ;;  %v6408_v54 = vpop.f32.mrf.mxu2  ;;  %v2164_v55 = vpop.f32.mrf.mxu0 }
 0x5c8   : > { %v1957_v56 = vmul.f32 1.442695, %v1951_v53  ;;  %v5654_v62 = vpop.eup %5653 }
 0x5c9   : > { %v2014_v51 = vsel %vm1779_vm10, %v5654_v62, 0.0 }
 0x5ca   : > { %5655 = vpow2.f32 %v1957_v56 }
 0x5cd   : > { %v1943_v57 = vpop.xlane.xlu0 %1942 }
 0x5ce   : > { %v6410_v58 = vpop.f32.mrf.mxu2  ;;  %v2166_v61 = vpop.f32.mrf.mxu0  ;;  %v1952_v1 = vsub.f32 %v1927_v19, %v1943_v57 }
 0x5cf   : > { %v6444_v5 = vadd.f32 %v2166_v61, %v6299_v22 }
 0x5d0   : > { %v5656_v63 = vpop.eup %5655  ;;  %v1959_v3 = vmul.f32 1.442695, %v1952_v1 }
 0x5d1   : > { %v1965_v0 = vpack.c.bf16 %v5656_v63, %v5654_v62  ;;  %v2182_v41 = vsel %vm1779_vm10, %v6444_v5, -inf  ;;  %v2017_v52 = vsel %vm1779_vm10, %v5656_v63, 0.0 }
 0x5d2   : > { %2210 = vrot.lane.b32.xlu2 %v6266_v45, %s5917_s7  ;;  %5657 = vpow2.f32 %v1959_v3 }
 0x5d3   : > { %5141 = vmatmul.msk.bf16.vlgmr.msra.gmra.mxu1 %vm1779_vm10, %v1965_v0 }
 0x5d5   : > { %v1946_v4 = vpop.xlane.xlu2 %1945 }
 0x5d6   : > { %v1953_v7 = vsub.f32 %v1929_v37, %v1946_v4  ;;  %v2118_v9 = vpop.f32.mrf.mxu2  ;;  %v2169_v10 = vpop.f32.mrf.mxu0 }
 0x5d8   : > { %v1961_v12 = vmul.f32 1.442695, %v1953_v7  ;;  %v5658_v15 = vpop.eup %5657 }
 0x5d9   : > { %v2020_v53 = vsel %vm1779_vm10, %v5658_v15, 0.0 }
 0x5da   : > { %5659 = vpow2.f32 %v1961_v12  ;;  %2412 = vrot.lane.b32.xlu2 %v6266_v45, %s5916_s10 }
 0x5db   : > { %2208 = vrot.lane.b32.xlu1 %v6272_v47, %s5917_s7 }
 0x5dd   : > { %v1949_v59 = vpop.xlane.xlu1 %1948 }
 0x5de   : > { %v2171_v13 = vpop.f32.mrf.mxu0  ;;  %v2361_v14 = vpop.f32.mrf.mxu2  ;;  %v1954_v19 = vsub.f32 %v1932_v32, %v1949_v59 }
 0x5df   : > { %v6420_v17 = vadd.f32 %v2361_v14, %v6287_v2 }
 0x5e0   : > { %v5660_v18 = vpop.eup %5659  ;;  %v1963_v45 = vmul.f32 1.442695, %v1954_v19 }
 0x5e1   : > { %v2375_v20 = vsel %vm1779_vm10, %v6420_v17, -inf  ;;  %v1966_v21 = vpack.c.bf16 %v5660_v18, %v5658_v15  ;;  %v2023_v56 = vsel %vm1779_vm10, %v5660_v18, 0.0  ;;  %v2207_v15 = vpop.permute.xlu0 %2206 }
 0x5e2   : > { %2376 = vmax.xlane.f32.xlu0 %v2375_v20  ;;  %5661 = vpow2.f32 %v1963_v45 }
 0x5e3   : > { %2410 = vrot.lane.b32.xlu1 %v6272_v47, %s5916_s10  ;;  %5142 = vmatmul.msk.bf16.gmra.mxu1 %vm1779_vm10, %v1966_v21  ;;  %v6434_v47 = vadd.f32 %v2164_v55, %v6295_v16 }
 0x5e5   : > { %v2179_v44 = vsel %vm1779_vm10, %v6434_v47, -inf }
 0x5e6   : > { %v2363_v23 = vpop.f32.mrf.mxu2 }
 0x5e7   : > { %v6428_v24 = vadd.f32 %v2363_v23, %v6291_v11 }
 0x5e8   : > { %v5662_v37 = vpop.eup %5661 }
 0x5e9   : > { %v2378_v60 = vsel %vm1779_vm10, %v6428_v24, -inf  ;;  %v1967_v42 = vpack.c.bf16 %v5662_v37, %v5662_v37  ;;  %v2026_v0 = vsel %vm1779_vm10, %v5662_v37, 0.0 }
 0x5ea   : > { %2379 = vmax.xlane.f32.xlu0 %v2378_v60 }
 0x5ee   : > { %v2366_v28 = vpop.f32.mrf.mxu2 }
 0x5ef   : > { %v6464_v55 = vadd.f32 %v2366_v28, %v6295_v16 }
 0x5f1   : > { %v2381_v57 = vsel %vm1779_vm10, %v6464_v55, -inf }
 0x5f3   : > { %5143 = vmatmul.msk.bf16.gmra.mxu1 %vm1779_vm10, %v1967_v42 }
 0x5f6   : > { %v2368_v29 = vpop.f32.mrf.mxu2 }
 0x5f7   : > { %v6441_v33 = vadd.f32 %v2368_v29, %v6299_v22 }
 0x5f9   : > { %v2384_v40 = vsel %vm1779_vm10, %v6441_v33, -inf }
 0x5fe   : > { %v2371_v32 = vpop.f32.mrf.mxu2  ;;  %2408 = vrot.lane.b32.xlu0 %v6275_v50, %s5916_s10  ;;  %v6451_v50 = vadd.f32 %v2169_v10, %v6303_v6 }
 0x5ff   : > { %v6454_v39 = vadd.f32 %v2371_v32, %v6303_v6 }
 0x600   : > { %v2185_v48 = vsel %vm1779_vm10, %v6451_v50, -inf }
 0x601   : > { %v2387_v49 = vsel %vm1779_vm10, %v6454_v39, -inf }
 0x603   : > { %2180 = vmax.xlane.f32.xlu2 %v2179_v44 }
 0x606   : > { %v2373_v34 = vpop.f32.mrf.mxu2 }
 0x60b   : > { %2385 = vmax.xlane.f32.xlu2 %v2384_v40 }
 0x60d   : > { %2183 = vmax.xlane.f32.xlu1 %v2182_v41 }
 0x613   : > { %2186 = vmax.xlane.f32.xlu2 %v2185_v48 }
 0x615   : > { %2388 = vmax.xlane.f32.xlu1 %v2387_v49 }
 0x61b   : > { %2015 = vadd.xlane.f32.xlu2 %v2014_v51 }
 0x61d   : > { %2018 = vadd.xlane.f32.xlu1 %v2017_v52 }
 0x623   : > { %2021 = vadd.xlane.f32.xlu2 %v2020_v53  ;;  %v5477_v53 = vld [vmem:[%s5981_s24 + $0x8] sm:$0xff] }
 0x624   : > { %2066 = vmatpush.bf16.msra.mxu3 %v5477_v53 }
 0x625   : > { %2024 = vadd.xlane.f32.xlu1 %v2023_v56 }
 0x628   : > { %2382 = vmax.xlane.f32.xlu0 %v2381_v57 }
 0x62d   : > { %v2175_v61 = vpop.xlane.xlu2 %2174 }
 0x62e   : > { %v2188_v62 = vsub.f32 %v6397_v38, %v2175_v61 }
 0x630   : > { %v2193_v63 = vmul.f32 1.442695, %v2188_v62  ;;  %2027 = vadd.xlane.f32.xlu0 %v2026_v0 }
 0x632   : > { %5663 = vpow2.f32 %v2193_v63 }
 0x635   : > { %v2178_v1 = vpop.xlane.xlu1 %2177  ;;  %v2211_v3 = vpop.permute.xlu2 %2210 }
 0x636   : > { %v2189_v4 = vsub.f32 %v6404_v46, %v2178_v1  ;;  %v2224_v7 = vsel %vm1825_vm7, %v2211_v3, 0 }
 0x637   : > { %2231 = vmatpush.bf16.msrb.mxu1 %v2224_v7 }
 0x638   : > { %v5664_v9 = vpop.eup %5663  ;;  %v2195_v10 = vmul.f32 1.442695, %v2189_v4 }
 0x639   : > { %v2249_v12 = vsel %vm1779_vm10, %v5664_v9, 0.0 }
 0x63a   : > { %5665 = vpow2.f32 %v2195_v10  ;;  %2250 = vadd.xlane.f32.xlu2 %v2249_v12 }
 0x63d   : > { %v2413_v59 = vpop.permute.xlu2 %2412 }
 0x63e   : > { %v2426_v38 = vsel %vm1825_vm7, %v2413_v59, 0 }
 0x63f   : > { %2433 = vmatpush.bf16.msra.mxu0 %v2426_v38 }
 0x640   : > { %v5666_v13 = vpop.eup %5665 }
 0x641   : > { %v2252_v14 = vsel %vm1779_vm10, %v5666_v13, 0.0  ;;  %v2203_v19 = vpack.c.bf16 %v5666_v13, %v5664_v9 }
 0x642   : > { %2253 = vadd.xlane.f32.xlu1 %v2252_v14 }
 0x64d   : > { %v2209_v18 = vpop.permute.xlu1 %2208 }
 0x64e   : > { %2232 = vmatpush.bf16.msrb.mxu1 %v2209_v18 }
 0x650   : > { %v6476_v46 = vpop.f32.mrf.mxu1 }
 0x652   : > { %2233 = vmatpush.bf16.msrb.mxu1 %v2207_v15 }
 0x655   : > { %v2377_v20 = vpop.xlane.xlu0 %2376  ;;  %v2411_v21 = vpop.permute.xlu1 %2410  ;;  %5161 = vmatmul.msk.bf16.vlgmr.msrb.gmra.mxu1 %vm1779_vm10, %v2203_v19 }
 0x656   : > { %v2390_v45 = vsub.f32 %v6420_v17, %v2377_v20  ;;  %2434 = vmatpush.bf16.msra.mxu0 %v2411_v21 }
 0x658   : > { %v2395_v23 = vmul.f32 1.442695, %v2390_v45  ;;  %v2002_v60 = vpop.f32.mrf.mxu1 }
 0x65a   : > { %5667 = vpow2.f32 %v2395_v23 }
 0x65d   : > { %v2380_v37 = vpop.xlane.xlu0 %2379 }
 0x65e   : > { %v2391_v28 = vsub.f32 %v6428_v24, %v2380_v37 }
 0x660   : > { %v5668_v42 = vpop.eup %5667  ;;  %v2397_v29 = vmul.f32 1.442695, %v2391_v28  ;;  %v6481_v32 = vpop.f32.mrf.mxu1 }
 0x661   : > { %v2451_v44 = vsel %vm1779_vm10, %v5668_v42, 0.0 }
 0x662   : > { %5669 = vpow2.f32 %v2397_v29  ;;  %2452 = vadd.xlane.f32.xlu0 %v2451_v44 }
 0x668   : > { %v5670_v34 = vpop.eup %5669  ;;  %v6484_v40 = vpop.f32.mrf.mxu1 }
 0x669   : > { %v2454_v17 = vsel %vm1779_vm10, %v5670_v34, 0.0  ;;  %v2405_v24 = vpack.c.bf16 %v5670_v34, %v5668_v42 }
 0x66a   : > { %2455 = vadd.xlane.f32.xlu2 %v2454_v17 }
 0x670   : > { %v2409_v41 = vpop.permute.xlu0 %2408  ;;  %v6487_v48 = vpop.f32.mrf.mxu1 }
 0x671   : > { %2435 = vmatpush.bf16.msra.mxu0 %v2409_v41 }
 0x674   : > { %5174 = vmatmul.msk.bf16.vlgmr.msra.gmra.mxu0 %vm1779_vm10, %v2405_v24 }
 0x676   : > { %v2181_v49 = vpop.xlane.xlu2 %2180 }
 0x677   : > { %v2190_v51 = vsub.f32 %v6434_v47, %v2181_v49 }
 0x678   : > { %v2012_v52 = vpop.f32.mrf.mxu1 }
 0x679   : > { %v2197_v56 = vmul.f32 1.442695, %v2190_v51 }
 0x67b   : > { %5671 = vpow2.f32 %v2197_v56 }
 0x67e   : > { %v2386_v57 = vpop.xlane.xlu2 %2385 }
 0x67f   : > { %v2393_v61 = vsub.f32 %v6441_v33, %v2386_v57 }
 0x680   : > { %v2184_v62 = vpop.xlane.xlu1 %2183 }
 0x681   : > { %v5672_v0 = vpop.eup %5671  ;;  %v2401_v63 = vmul.f32 1.442695, %v2393_v61  ;;  %v2191_v1 = vsub.f32 %v6444_v5, %v2184_v62 }
 0x682   : > { %v2255_v3 = vsel %vm1779_vm10, %v5672_v0, 0.0 }
 0x683   : > { %5673 = vpow2.f32 %v2401_v63  ;;  %v2199_v4 = vmul.f32 1.442695, %v2191_v1  ;;  %2256 = vadd.xlane.f32.xlu1 %v2255_v3 }
 0x685   : > { %5675 = vpow2.f32 %v2199_v4 }
 0x686   : > { %v2187_v47 = vpop.xlane.xlu2 %2186 }
 0x687   : > { %v2192_v7 = vsub.f32 %v6451_v50, %v2187_v47 }
 0x688   : > { %v2389_v9 = vpop.xlane.xlu1 %2388 }
 0x689   : > { %v5674_v10 = vpop.eup %5673  ;;  %v2201_v12 = vmul.f32 1.442695, %v2192_v7  ;;  %v2394_v44 = vsub.f32 %v6454_v39, %v2389_v9  ;;  %v5479_v7 = vld [vmem:[%s5981_s24 + $0x18] sm:$0xff] }
 0x68a   : > { %v2460_v59 = vsel %vm1779_vm10, %v5674_v10, 0.0  ;;  %2503 = vmatpush.bf16.msra.mxu1 %v5479_v7 }
 0x68b   : > { %v5676_v33 = vpop.eup %5675  ;;  %5677 = vpow2.f32 %v2201_v12  ;;  %2461 = vadd.xlane.f32.xlu1 %v2460_v59  ;;  %v2403_v17 = vmul.f32 1.442695, %v2394_v44 }
 0x68c   : > { %v2258_v38 = vsel %vm1779_vm10, %v5676_v33, 0.0  ;;  %v2204_v5 = vpack.c.bf16 %v5676_v33, %v5672_v0 }
 0x68d   : > { %2259 = vadd.xlane.f32.xlu0 %v2258_v38 }
 0x68e   : > { %5162 = vmatmul.msk.bf16.gmra.mxu1 %vm1779_vm10, %v2204_v5  ;;  %v2016_v13 = vpop.xlane.xlu2 %2015 }
 0x68f   : > { %5679 = vrcp.f32 %v2016_v13 }
 0x690   : > { %v2019_v14 = vpop.xlane.xlu1 %2018 }
 0x691   : > { %v5678_v15 = vpop.eup %5677  ;;  %5681 = vrcp.f32 %v2019_v14 }
 0x692   : > { %v2261_v50 = vsel %vm1779_vm10, %v5678_v15, 0.0  ;;  %v2205_v29 = vpack.c.bf16 %v5678_v15, %v5678_v15 }
 0x695   : > { %v5680_v18 = vpop.eup %5679  ;;  %2262 = vadd.xlane.f32.xlu0 %v2261_v50 }
 0x696   : > { %v2034_v20 = vmul.f32 %v5680_v18, %v6476_v46  ;;  %v2022_v28 = vpop.xlane.xlu2 %2021 }
 0x697   : > { %v5682_v19 = vpop.eup %5681 }
 0x698   : > { %v2035_v21 = vmul.f32 %v5682_v19, %v2002_v60  ;;  %v2025_v23 = vpop.xlane.xlu1 %2024 }
 0x699   : > { %5683 = vrcp.f32 %v2025_v23 }
 0x69a   : > { %v2041_v45 = vpack.c.bf16 %v2035_v21, %v2034_v20  ;;  %5685 = vrcp.f32 %v2022_v28 }
 0x69b   : > { %v2383_v37 = vpop.xlane.xlu0 %2382 }
 0x69c   : > { %v2392_v42 = vsub.f32 %v6464_v55, %v2383_v37  ;;  %5148 = vmatmul.msk.bf16.vlgmr.msra.gmra.mxu3 %vm1737_vm8, %v2041_v45 }
 0x69e   : > { %v2399_v34 = vmul.f32 1.442695, %v2392_v42  ;;  %5163 = vmatmul.msk.bf16.gmra.mxu1 %vm1779_vm10, %v2205_v29 }
 0x69f   : > { %v5684_v46 = vpop.eup %5683 }
 0x6a0   : > { %5687 = vpow2.f32 %v2399_v34  ;;  %v5686_v60 = vpop.eup %5685  ;;  %v2037_v24 = vmul.f32 %v5684_v46, %v6484_v40 }
 0x6a1   : > { %5689 = vpow2.f32 %v2403_v17  ;;  %v2036_v51 = vmul.f32 %v5686_v60, %v6481_v32  ;;  %v5478_v32 = vld [vmem:[%s5981_s24 + $0x10] sm:$0xff] }
 0x6a2   : > { %2301 = vmatpush.bf16.msrb.mxu3 %v5478_v32 }
 0x6a3   : > { %v2028_v39 = vpop.xlane.xlu0 %2027  ;;  %v2042_v52 = vpack.c.bf16 %v2037_v24, %v2036_v51 }
 0x6a4   : > { %5691 = vrcp.f32 %v2028_v39 }
 0x6a6   : > { %v5688_v41 = vpop.eup %5687 }
 0x6a7   : > { %v2457_v55 = vsel %vm1779_vm10, %v5688_v41, 0.0  ;;  %v2406_v49 = vpack.c.bf16 %v5674_v10, %v5688_v41  ;;  %v5690_v53 = vpop.eup %5689 }
 0x6a8   : > { %2458 = vadd.xlane.f32.xlu2 %v2457_v55  ;;  %v2463_v56 = vsel %vm1779_vm10, %v5690_v53, 0.0  ;;  %v2407_v61 = vpack.c.bf16 %v5690_v53, %v5690_v53 }
 0x6a9   : > { %5175 = vmatmul.msk.bf16.gmra.mxu0 %vm1779_vm10, %v2406_v49 }
 0x6aa   : > { %v5692_v57 = vpop.eup %5691 }
 0x6ab   : > { %v2038_v40 = vmul.f32 %v5692_v57, %v6487_v48 }
 0x6ac   : > { %5149 = vmatmul.msk.bf16.gmra.mxu3 %vm1737_vm8, %v2042_v52 }
 0x6ad   : > { %v2043_v62 = vpack.c.bf16 %v2038_v40, %v2038_v40  ;;  %v2251_v0 = vpop.xlane.xlu2 %2250 }
 0x6ae   : > { %5693 = vrcp.f32 %v2251_v0 }
 0x6b0   : > { %2464 = vadd.xlane.f32.xlu2 %v2463_v56 }
 0x6b4   : > { %v5694_v3 = vpop.eup %5693 }
 0x6b5   : > { %v2254_v63 = vpop.xlane.xlu1 %2253 }
 0x6b6   : > { %5695 = vrcp.f32 %v2254_v63 }
 0x6b9   : > { %5176 = vmatmul.msk.bf16.gmra.mxu0 %vm1779_vm10, %v2407_v61 }
 0x6bc   : > { %5150 = vmatmul.msk.bf16.gmra.mxu3 %vm1737_vm8, %v2043_v62  ;;  %v5696_v4 = vpop.eup %5695 }
 0x6d2   : > { %v2235_v1 = vpop.f32.mrf.mxu1 }
 0x6d3   : > { %v2269_v9 = vmul.f32 %v5694_v3, %v2235_v1 }
 0x6d5   : > { %v2453_v12 = vpop.xlane.xlu0 %2452 }
 0x6d6   : > { %5697 = vrcp.f32 %v2453_v12  ;;  %v5610_v12 = vld [vmem:[%s5986_s30] ss:$0 sm:$0xff] }
 0x6da   : > { %v2237_v47 = vpop.f32.mrf.mxu1 }
 0x6db   : > { %v2270_v10 = vmul.f32 %v5696_v4, %v2237_v47 }
 0x6dc   : > { %v5698_v38 = vpop.eup %5697 }
 0x6dd   : > { %v2276_v48 = vpack.c.bf16 %v2270_v10, %v2269_v9  ;;  %v2456_v59 = vpop.xlane.xlu2 %2455 }
 0x6de   : > { %5699 = vrcp.f32 %v2456_v59 }
 0x6df   : > { %5168 = vmatmul.msk.bf16.vlgmr.msrb.gmra.mxu3 %vm1737_vm8, %v2276_v48 }
 0x6e4   : > { %v5700_v5 = vpop.eup %5699 }
 0x6f1   : > { %v2437_v33 = vpop.f32.mrf.mxu0 }
 0x6f2   : > { %v2471_v14 = vmul.f32 %v5698_v38, %v2437_v33 }
 0x6f6   : > { %v2257_v18 = vpop.xlane.xlu1 %2256 }
 0x6f7   : > { %5701 = vrcp.f32 %v2257_v18 }
 0x6f9   : > { %v2439_v13 = vpop.f32.mrf.mxu0 }
 0x6fa   : > { %v2472_v15 = vmul.f32 %v5700_v5, %v2439_v13 }
 0x6fc   : > { %v2478_v50 = vpack.c.bf16 %v2472_v15, %v2471_v14 }
 0x6fd   : > { %v5702_v21 = vpop.eup %5701 }
 0x6fe   : > { %5181 = vmatmul.msk.bf16.vlgmr.msra.gmra.mxu1 %vm1737_vm8, %v2478_v50  ;;  %v2462_v41 = vpop.xlane.xlu1 %2461 }
 0x700   : > { %v2260_v19 = vpop.xlane.xlu0 %2259 }
 0x701   : > { %5703 = vrcp.f32 %v2260_v19 }
 0x707   : > { %v5704_v45 = vpop.eup %5703 }
 0x708   : > { %v2263_v29 = vpop.xlane.xlu0 %2262 }
 0x709   : > { %5705 = vrcp.f32 %v2263_v29 }
 0x70a   : > { %5707 = vrcp.f32 %v2462_v41 }
 0x70b   : > { %v2240_v20 = vpop.f32.mrf.mxu1 }
 0x70c   : > { %v2271_v37 = vmul.f32 %v5702_v21, %v2240_v20 }
 0x70f   : > { %v5706_v17 = vpop.eup %5705 }
 0x710   : > { %v5708_v39 = vpop.eup %5707 }
 0x713   : > { %v2242_v23 = vpop.f32.mrf.mxu1 }
 0x714   : > { %v2272_v28 = vmul.f32 %v5704_v45, %v2242_v23 }
 0x716   : > { %v2277_v42 = vpack.c.bf16 %v2272_v28, %v2271_v37 }
 0x718   : > { %5169 = vmatmul.msk.bf16.gmra.mxu3 %vm1737_vm8, %v2277_v42 }
 0x71b   : > { %v2245_v44 = vpop.f32.mrf.mxu1  ;;  %v2459_v24 = vpop.xlane.xlu2 %2458 }
 0x71c   : > { %v2273_v46 = vmul.f32 %v5706_v17, %v2245_v44  ;;  %5709 = vrcp.f32 %v2459_v24 }
 0x71e   : > { %v2278_v55 = vpack.c.bf16 %v2273_v46, %v2273_v46 }
 0x71f   : > { %v2068_v34 = vpop.f32.mrf.mxu3 }
 0x720   : > { %v2107_v10 = vadd.f32 %v6392_v35, %v2068_v34 }
 0x722   : > { %v5710_v52 = vpop.eup %5709 }
 0x723   : > { %v2247_v60 = vpop.f32.mrf.mxu1  ;;  %v2465_v62 = vpop.xlane.xlu2 %2464 }
 0x724   : > { %5711 = vrcp.f32 %v2465_v62 }
 0x726   : > { %v2442_v49 = vpop.f32.mrf.mxu0 }
 0x727   : > { %v2070_v51 = vpop.f32.mrf.mxu3  ;;  %v2473_v56 = vmul.f32 %v5710_v52, %v2442_v49 }
 0x728   : > { %5170 = vmatmul.msk.bf16.gmra.mxu3 %vm1737_vm8, %v2278_v55  ;;  %v2109_v13 = vadd.f32 %v6394_v36, %v2070_v51 }
 0x72a   : > { %v5712_v63 = vpop.eup %5711 }
 0x72e   : > { %v2444_v53 = vpop.f32.mrf.mxu0 }
 0x72f   : > { %v2474_v57 = vmul.f32 %v5708_v39, %v2444_v53  ;;  %v2073_v40 = vpop.f32.mrf.mxu3 }
 0x730   : > { %v2112_v28 = vadd.f32 %v6401_v43, %v2073_v40 }
 0x731   : > { %v2479_v61 = vpack.c.bf16 %v2474_v57, %v2473_v56 }
 0x733   : > { %5182 = vmatmul.msk.bf16.gmra.mxu1 %vm1737_vm8, %v2479_v61 }
 0x736   : > { %v2447_v32 = vpop.f32.mrf.mxu0 }
 0x737   : > { %v2075_v0 = vpop.f32.mrf.mxu3  ;;  %v2475_v1 = vmul.f32 %v5712_v63, %v2447_v32 }
 0x738   : > { %v2114_v34 = vadd.f32 %v6408_v54, %v2075_v0 }
 0x739   : > { %v2480_v47 = vpack.c.bf16 %v2475_v1, %v2475_v1 }
 0x73e   : > { %v2449_v3 = vpop.f32.mrf.mxu0 }
 0x73f   : > { %v2078_v4 = vpop.f32.mrf.mxu3 }
 0x740   : > { %v2117_v55 = vadd.f32 %v6410_v58, %v2078_v4 }
 0x743   : > { %5183 = vmatmul.msk.bf16.gmra.mxu1 %vm1737_vm8, %v2480_v47 }
 0x747   : > { %v2080_v7 = vpop.f32.mrf.mxu3 }
 0x762   : > { %v2303_v9 = vpop.f32.mrf.mxu3 }
 0x763   : > { %v2317_v48 = vadd.f32 %v2303_v9, %v2107_v10 }
 0x76a   : > { %v2305_v5 = vpop.f32.mrf.mxu3 }
 0x76b   : > { %v2318_v15 = vadd.f32 %v2305_v5, %v2109_v13 }
 0x77b   : > { %v2505_v59 = vpop.f32.mrf.mxu1 }
 0x77c   : > { %v2519_v33 = vadd.f32 %v2505_v59, %v2317_v48 }
 0x77e   : > { %v2528_v38 = vadd.f32 %v5610_v12, %v2519_v33 }
 0x780   : > { %v2533_v14 = vadd.f32 %v2528_v38, %v6231_v8 }
 0x782   : > { %v2540_v50 = vsel %vm1076_vm0, %v2533_v14, 0.0 }
 0x783   : > { %2541 = vadd.xlane.f32.xlu1 %v2540_v50  ;;  %v2507_v18 = vpop.f32.mrf.mxu1  ;;  %v5483_v50 = vld [vmem:[%s6001_s20 + $0x14] sm:$0xf0] }
 0x784   : > { %v2520_v19 = vadd.f32 %v2507_v18, %v2318_v15  ;;  %v5194_v15 = vld [vmem:[%s6001_s20 + $0x10] sm:$0xf]  ;;  %v5482_v18 = vld [vmem:[%s6001_s20 + $0x14] sm:$0xf] }
 0x786   : > { %v2529_v20 = vadd.f32 %v5610_v12, %v2520_v19  ;;  %v5195_v19 = vor.u32 %v5483_v50, %v5194_v15 }
 0x788   : > { %v2534_v21 = vadd.f32 %v2529_v20, %v6233_v30  ;;  %v5196_v20 = vld [vmem:[%s6001_s20 + $0x18] sm:$0xf0]  ;;  %2714 = vmatpush.bf16.msra.mxu3 %v5195_v19 }
 0x78a   : > { %v2543_v35 = vsel %vm1076_vm0, %v2534_v21, 0.0 }
 0x78b   : > { %2544 = vadd.xlane.f32.xlu0 %v2543_v35  ;;  %v5199_v35 = vor.u32 %v5482_v18, %v5196_v20 }
 0x78d   : > { %2737 = vmatpush.bf16.msra.mxu2 %v5199_v35 }
 0x79b   : > { %v2308_v45 = vpop.f32.mrf.mxu3 }
 0x79c   : > { %v2319_v36 = vadd.f32 %v2308_v45, %v2112_v28  ;;  %v5480_v28 = vld [vmem:[%s6001_s20 + $0x4] sm:$0xf] }
 0x7a3   : > { %v2310_v23 = vpop.f32.mrf.mxu3 }
 0x7a4   : > { %v2320_v46 = vadd.f32 %v2310_v23, %v2114_v34  ;;  %v5186_v23 = vld [vmem:[%s6001_s20] sm:$0xf] }
 0x7ab   : > { %v2313_v37 = vpop.f32.mrf.mxu3 }
 0x7ac   : > { %v2321_v49 = vadd.f32 %v2313_v37, %v2117_v55  ;;  %v5481_v37 = vld [vmem:[%s6001_s20 + $0x4] sm:$0xf0] }
 0x7b0   : > { %v2510_v42 = vpop.f32.mrf.mxu1 }
 0x7b1   : > { %v2521_v8 = vadd.f32 %v2510_v42, %v2319_v36  ;;  %v5187_v42 = vor.u32 %v5481_v37, %v5186_v23 }
 0x7b3   : > { %v2530_v29 = vadd.f32 %v5610_v12, %v2521_v8  ;;  %v2315_v44 = vpop.f32.mrf.mxu3  ;;  %v5188_v8 = vld [vmem:[%s6001_s20 + $0x8] sm:$0xf0]  ;;  %2715 = vmatpush.bf16.msra.mxu3 %v5187_v42 }
 0x7b5   : > { %v2535_v17 = vadd.f32 %v2530_v29, %v6241_v26  ;;  %v5191_v29 = vor.u32 %v5480_v28, %v5188_v8 }
 0x7b7   : > { %v2546_v30 = vsel %vm1076_vm0, %v2535_v17, 0.0  ;;  %2738 = vmatpush.bf16.msra.mxu2 %v5191_v29 }
 0x7b8   : > { %2547 = vadd.xlane.f32.xlu2 %v2546_v30  ;;  %v2512_v60 = vpop.f32.mrf.mxu1 }
 0x7b9   : > { %v2522_v41 = vadd.f32 %v2512_v60, %v2320_v46 }
 0x7bb   : > { %v2531_v24 = vadd.f32 %v5610_v12, %v2522_v41 }
 0x7bd   : > { %v2536_v43 = vadd.f32 %v2531_v24, %v6243_v27 }
 0x7bf   : > { %v2549_v51 = vsel %vm1076_vm0, %v2536_v43, 0.0 }
 0x7c0   : > { %2550 = vadd.xlane.f32.xlu1 %v2549_v51  ;;  %v2515_v39 = vpop.f32.mrf.mxu1 }
 0x7c1   : > { %v2523_v52 = vadd.f32 %v2515_v39, %v2321_v49 }
 0x7c3   : > { %v2532_v54 = vadd.f32 %v5610_v12, %v2523_v52 }
 0x7c5   : > { %v2537_v26 = vadd.f32 %v2532_v54, %v6250_v31 }
 0x7c7   : > { %v2552_v53 = vsel %vm1076_vm0, %v2537_v26, 0.0 }
 0x7c8   : > { %2553 = vadd.xlane.f32.xlu1 %v2552_v53  ;;  %v2517_v56 = vpop.f32.mrf.mxu1 }
 0x7f6   : > { %v2542_v57 = vpop.xlane.xlu1 %2541 }
 0x7f7   : > { %v2555_v40 = vmul.f32 %v2542_v57, %v6169_v25 }
 0x7f9   : > { %v6539_v61 = vsub.f32 %v2533_v14, %v2555_v40  ;;  %v5612_v40 = vld [vmem:[%s7299_s16] ss:$0 sm:$0xff]  ;;  %s7304_s16 = sld [smem:[#allocation9_spill]] }
 0x7fb   : > { %v2565_v27 = vmul.f32 %v6539_v61, %v6539_v61 }
 0x7fd   : > { %v2570_v58 = vsel %vm1076_vm0, %v2565_v27, 0.0 }
 0x7fe   : > { %2571 = vadd.xlane.f32.xlu0 %v2570_v58  ;;  %v2545_v62 = vpop.xlane.xlu0 %2544 }
 0x7ff   : > { %v2556_v32 = vmul.f32 %v2545_v62, %v6169_v25 }
 0x801   : > { %v6545_v0 = vsub.f32 %v2534_v21, %v2556_v32 }
 0x803   : > { %v2566_v31 = vmul.f32 %v6545_v0, %v6545_v0 }
 0x805   : > { %v2573_v63 = vsel %vm1076_vm0, %v2566_v31, 0.0 }
 0x806   : > { %2574 = vadd.xlane.f32.xlu2 %v2573_v63 }
 0x82b   : > { %v2548_v1 = vpop.xlane.xlu2 %2547 }
 0x82c   : > { %v2557_v3 = vmul.f32 %v2548_v1, %v6169_v25 }
 0x82e   : > { %v6551_v4 = vsub.f32 %v2535_v17, %v2557_v3 }
 0x830   : > { %v2567_v47 = vmul.f32 %v6551_v4, %v6551_v4 }
 0x832   : > { %v2576_v7 = vsel %vm1076_vm0, %v2567_v47, 0.0 }
 0x833   : > { %v2551_v9 = vpop.xlane.xlu1 %2550  ;;  %2577 = vadd.xlane.f32.xlu0 %v2576_v7 }
 0x834   : > { %v2558_v10 = vmul.f32 %v2551_v9, %v6169_v25 }
 0x836   : > { %v6557_v48 = vsub.f32 %v2536_v43, %v2558_v10 }
 0x838   : > { %v2568_v12 = vmul.f32 %v6557_v48, %v6557_v48 }
 0x83a   : > { %v2579_v59 = vsel %vm1076_vm0, %v2568_v12, 0.0 }
 0x83b   : > { %2580 = vadd.xlane.f32.xlu2 %v2579_v59  ;;  %v2554_v33 = vpop.xlane.xlu1 %2553 }
 0x83c   : > { %v2559_v38 = vmul.f32 %v2554_v33, %v6169_v25 }
 0x83e   : > { %v6563_v5 = vsub.f32 %v2537_v26, %v2559_v38  ;;  %v6579_v26 = vld [vmem:[%s7298_s11] ss:$0 sm:$0xff]  ;;  %s7303_s11 = sld [smem:[#allocation11_spill]] }
 0x840   : > { %v2569_v13 = vmul.f32 %v6563_v5, %v6563_v5 }
 0x842   : > { %v2582_v14 = vsel %vm1076_vm0, %v2569_v13, 0.0 }
 0x843   : > { %2583 = vadd.xlane.f32.xlu1 %v2582_v14 }
 0x871   : > { %v2572_v21 = vpop.xlane.xlu0 %2571 }
 0x872   : > { %v2585_v45 = vmul.f32 %v2572_v21, %v6169_v25 }
 0x874   : > { %v2590_v36 = vadd.f32 1e-05, %v2585_v45 }
 0x876   : > { %5713 = vrsqrt.f32 %v2590_v36  ;;  %vm2601_vm1 = vweird.f32 %v2590_v36 }
 0x879   : > { %v2575_v44 = vpop.xlane.xlu2 %2574 }
 0x87a   : > { %v2586_v34 = vmul.f32 %v2575_v44, %v6169_v25 }
 0x87c   : > { %v5714_v17 = vpop.eup %5713  ;;  %v2591_v46 = vadd.f32 1e-05, %v2586_v34 }
 0x87d   : > { %v2596_v30 = vmul.f32 %v5714_v17, %v2590_v36  ;;  %vm2602_vm15 = vweird.f32 %v5714_v17 }
 0x87e   : > { %5715 = vrsqrt.f32 %v2591_v46  ;;  %vm2603_vm2 = vmor %vm2601_vm1, %vm2602_vm15  ;;  %vm2611_vm4 = vweird.f32 %v2591_v46 }
 0x87f   : > { %v2597_v60 = vmul.f32 %v5714_v17, %v2596_v30 }
 0x881   : > { %v2598_v41 = vmul.f32 0.5, %v2597_v60 }
 0x883   : > { %v2599_v24 = vsub.f32 1.5, %v2598_v41 }
 0x884   : > { %v5716_v55 = vpop.eup %5715 }
 0x885   : > { %v2600_v43 = vmul.f32 %v5714_v17, %v2599_v24  ;;  %v2606_v49 = vmul.f32 %v5716_v55, %v2591_v46  ;;  %vm2612_vm3 = vweird.f32 %v5716_v55 }
 0x886   : > { %vm2613_vm5 = vmor %vm2611_vm4, %vm2612_vm3 }
 0x887   : > { %v2607_v51 = vmul.f32 %v5716_v55, %v2606_v49  ;;  %v2604_v39 = vsel %vm2603_vm2, %v5714_v17, %v2600_v43  ;;  %v6618_v49 = vld [vmem:[%s7300_s4] sm:$0x3]  ;;  %s7305_s4 = sld [smem:[#allocation10_spill]] }
 0x888   : > { %v2645_v53 = vmul.f32 %v2604_v39, %v6539_v61 }
 0x889   : > { %v2608_v52 = vmul.f32 0.5, %v2607_v51  ;;  %v6621_v51 = vperm.slane %v6618_v49, 1 }
 0x88a   : > { %v2653_v27 = vmul.f32 %v6579_v26, %v2645_v53 }
 0x88b   : > { %v2609_v54 = vsub.f32 1.5, %v2608_v52 }
 0x88c   : > { %v6586_v32 = vadd.f32 %v5612_v40, %v2653_v27  ;;  %v5490_v27 = vld [vmem:[%s7301_s18 + $0x30] sm:$0xff] }
 0x88d   : > { %v2610_v56 = vmul.f32 %v5716_v55, %v2609_v54 }
 0x88f   : > { %v2614_v57 = vsel %vm2613_vm5, %v5716_v55, %v2610_v56 }
 0x890   : > { %v2646_v58 = vmul.f32 %v2614_v57, %v6545_v0 }
 0x892   : > { %v2654_v62 = vmul.f32 %v6579_v26, %v2646_v58 }
 0x894   : > { %v6588_v31 = vadd.f32 %v5612_v40, %v2654_v62 }
 0x896   : > { %v2670_v63 = vpack.c.bf16 %v6588_v31, %v6586_v32 }
 0x898   : > { %5200 = vmatmul.msk.bf16.vlgmr.msra.gmra.mxu3 %vm1076_vm0, %v2670_v63  ;;  %5203 = vmatmul.msk.bf16.vlgmr.msra.gmra.mxu2 %vm1076_vm0, %v2670_v63  ;;  %v5489_v63 = vld [vmem:[%s7301_s18 + $0x28] sm:$0xff] }
 0x8a6   : > { %v2578_v61 = vpop.xlane.xlu0 %2577 }
 0x8a7   : > { %v2587_v1 = vmul.f32 %v2578_v61, %v6169_v25 }
 0x8a9   : > { %v2592_v3 = vadd.f32 1e-05, %v2587_v1 }
 0x8ab   : > { %5717 = vrsqrt.f32 %v2592_v3  ;;  %vm2621_vm9 = vweird.f32 %v2592_v3 }
 0x8ae   : > { %v2581_v47 = vpop.xlane.xlu2 %2580 }
 0x8af   : > { %v2588_v0 = vmul.f32 %v2581_v47, %v6169_v25 }
 0x8b1   : > { %v5718_v7 = vpop.eup %5717  ;;  %v2593_v9 = vadd.f32 1e-05, %v2588_v0  ;;  %v5488_v0 = vld [vmem:[%s7301_s18 + $0x20] sm:$0xff] }
 0x8b2   : > { %v2616_v10 = vmul.f32 %v5718_v7, %v2592_v3  ;;  %vm2622_vm6 = vweird.f32 %v5718_v7 }
 0x8b3   : > { %5719 = vrsqrt.f32 %v2593_v9  ;;  %vm2623_vm11 = vmor %vm2621_vm9, %vm2622_vm6  ;;  %vm2631_vm13 = vweird.f32 %v2593_v9 }
 0x8b4   : > { %v2617_v12 = vmul.f32 %v5718_v7, %v2616_v10 }
 0x8b6   : > { %v2618_v59 = vmul.f32 0.5, %v2617_v12  ;;  %v2584_v33 = vpop.xlane.xlu1 %2583 }
 0x8b7   : > { %v2589_v38 = vmul.f32 %v2584_v33, %v6169_v25 }
 0x8b8   : > { %v2619_v13 = vsub.f32 1.5, %v2618_v59  ;;  %v5487_v59 = vld [vmem:[%s7301_s18 + $0x18] sm:$0xff] }
 0x8b9   : > { %v5720_v14 = vpop.eup %5719  ;;  %v2594_v15 = vadd.f32 1e-05, %v2589_v38 }
 0x8ba   : > { %v2620_v50 = vmul.f32 %v5718_v7, %v2619_v13  ;;  %v2626_v18 = vmul.f32 %v5720_v14, %v2593_v9  ;;  %vm2632_vm12 = vweird.f32 %v5720_v14 }
 0x8bb   : > { %5721 = vrsqrt.f32 %v2594_v15  ;;  %vm2633_vm14 = vmor %vm2631_vm13, %vm2632_vm12  ;;  %vm2641_vm1 = vweird.f32 %v2594_v15 }
 0x8bc   : > { %v2627_v19 = vmul.f32 %v5720_v14, %v2626_v18  ;;  %v2624_v20 = vsel %vm2623_vm11, %v5718_v7, %v2620_v50 }
 0x8bd   : > { %v2647_v23 = vmul.f32 %v2624_v20, %v6551_v4 }
 0x8be   : > { %v2628_v21 = vmul.f32 0.5, %v2627_v19 }
 0x8bf   : > { %v2655_v29 = vmul.f32 %v6579_v26, %v2647_v23  ;;  %v5485_v23 = vld [vmem:[%s7301_s18 + $0x8] sm:$0xff] }
 0x8c0   : > { %v2629_v35 = vsub.f32 1.5, %v2628_v21 }
 0x8c1   : > { %v5722_v45 = vpop.eup %5721  ;;  %v6601_v46 = vadd.f32 %v5612_v40, %v2655_v29 }
 0x8c2   : > { %v2630_v37 = vmul.f32 %v5720_v14, %v2629_v35  ;;  %v2636_v28 = vmul.f32 %v5722_v45, %v2594_v15  ;;  %vm2642_vm15 = vweird.f32 %v5722_v45  ;;  %v5486_v15 = vld [vmem:[%s7301_s18 + $0x10] sm:$0xff] }
 0x8c3   : > { %vm2643_vm2 = vmor %vm2641_vm1, %vm2642_vm15 }
 0x8c4   : > { %v2634_v36 = vsel %vm2633_vm14, %v5720_v14, %v2630_v37  ;;  %v2637_v42 = vmul.f32 %v5722_v45, %v2636_v28 }
 0x8c5   : > { %v2648_v8 = vmul.f32 %v2634_v36, %v6557_v48 }
 0x8c6   : > { %v2638_v44 = vmul.f32 0.5, %v2637_v42 }
 0x8c7   : > { %v2656_v34 = vmul.f32 %v6579_v26, %v2648_v8 }
 0x8c8   : > { %v2639_v17 = vsub.f32 1.5, %v2638_v44 }
 0x8c9   : > { %v6603_v30 = vadd.f32 %v5612_v40, %v2656_v34  ;;  %v5484_v34 = vld [vmem:[%s7301_s18] sm:$0xff] }
 0x8ca   : > { %v2640_v4 = vmul.f32 %v5722_v45, %v2639_v17 }
 0x8cb   : > { %v2671_v60 = vpack.c.bf16 %v6603_v30, %v6601_v46 }
 0x8cc   : > { %v2644_v48 = vsel %vm2643_vm2, %v5722_v45, %v2640_v4 }
 0x8cd   : > { %5201 = vmatmul.msk.bf16.gmra.mxu3 %vm1076_vm0, %v2671_v60  ;;  %5204 = vmatmul.msk.bf16.gmra.mxu2 %vm1076_vm0, %v2671_v60  ;;  %v2649_v41 = vmul.f32 %v2644_v48, %v6563_v5 }
 0x8cf   : > { %v2657_v24 = vmul.f32 %v6579_v26, %v2649_v41  ;;  %v5491_v26 = vld [vmem:[%s7301_s18 + $0x38] sm:$0xff] }
 0x8d0   : > { %3030 = vmatpush.bf16.msrb.mxu0 %v5491_v26 }
 0x8d1   : > { %v6611_v55 = vadd.f32 %v5612_v40, %v2657_v24 }
 0x8d3   : > { %v2672_v43 = vpack.c.bf16 %v6611_v55, %v6611_v55 }
 0x8d4   : > { %3031 = vmatpush.bf16.msrb.mxu0 %v5490_v27 }
 0x8d8   : > { %3032 = vmatpush.bf16.msrb.mxu0 %v5489_v63 }
 0x8dc   : > { %3033 = vmatpush.bf16.msrb.mxu0 %v5488_v0 }
 0x8dd   : > { %5202 = vmatmul.msk.bf16.gmra.mxu3 %vm1076_vm0, %v2672_v43  ;;  %5205 = vmatmul.msk.bf16.gmra.mxu2 %vm1076_vm0, %v2672_v43 }
 0x8e0   : > { %3034 = vmatpush.bf16.msrb.mxu0 %v5487_v59 }
 0x8e4   : > { %3035 = vmatpush.bf16.msrb.mxu0 %v5486_v15 }
 0x8e8   : > { %3036 = vmatpush.bf16.msrb.mxu0 %v5485_v23 }
 0x8ec   : > { %3037 = vmatpush.bf16.msrb.mxu0 %v5484_v34 }
 0x91b   : > { %v2740_v39 = vpop.f32.mrf.mxu2  ;;  %v2717_v17 = vpop.f32.mrf.mxu3 }
 0x91c   : > { %v6624_v5 = vadd.f32 %v2740_v39, %v6621_v51 }
 0x91e   : > { %v6627_v52 = vmul.f32 0.70710677, %v6624_v5  ;;  %v2754_v23 = vmul.f32 0.5, %v6624_v5 }
 0x920   : > { %v2764_v54 = vand.u32 2147483647, %v6627_v52  ;;  %vm2929_vm14 = vcmp.ge.f32.partialorder %v6627_v52, 0.0 }
 0x922   : > { %v2769_v53 = vmul.f32 0.3275911, %v2764_v54  ;;  %v2899_v18 = vsub.f32 0.0, %v2764_v54 }
 0x923   : > { %v2742_v56 = vpop.f32.mrf.mxu2 }
 0x924   : > { %v2774_v57 = vadd.f32 1.0, %v2769_v53  ;;  %v6632_v40 = vadd.f32 %v2742_v56, %v6621_v51  ;;  %v2904_v37 = vmul.f32 %v2899_v18, %v2764_v54 }
 0x926   : > { %5723 = vrcp.f32 %v2774_v57  ;;  %v6636_v58 = vmul.f32 0.70710677, %v6632_v40  ;;  %v2790_v9 = vand.u32 2147483648, %v2774_v57  ;;  %v2788_v12 = vand.u32 2147483647, %v2774_v57 }
 0x927   : > { %vm2784_vm4 = vweird.f32 %v2774_v57  ;;  %v2909_v4 = vmul.f32 1.442695, %v2904_v37 }
 0x928   : > { %v2765_v62 = vand.u32 2147483647, %v6636_v58  ;;  %v2791_v38 = vor.u32 1.1754944e-38, %v2790_v9  ;;  %vm2789_vm6 = vcmp.eq.f32.partialorder %v2788_v12, 8.507059e+37  ;;  %vm2930_vm15 = vcmp.ge.f32.partialorder %v6636_v58, 0.0 }
 0x92a   : > { %v2770_v61 = vmul.f32 0.3275911, %v2765_v62  ;;  %v2900_v24 = vsub.f32 0.0, %v2765_v62 }
 0x92c   : > { %v5724_v1 = vpop.eup %5723  ;;  %v2775_v47 = vadd.f32 1.0, %v2770_v61  ;;  %v2905_v53 = vmul.f32 %v2900_v24, %v2765_v62 }
 0x92d   : > { %v2780_v3 = vmul.f32 %v5724_v1, %v2774_v57  ;;  %vm2785_vm3 = vweird.f32 %v5724_v1 }
 0x92e   : > { %5725 = vrcp.f32 %v2775_v47  ;;  %vm2786_vm5 = vmor %vm2784_vm4, %vm2785_vm3  ;;  %v2805_v45 = vand.u32 2147483648, %v2775_v47  ;;  %v2803_v36 = vand.u32 2147483647, %v2775_v47  ;;  %vm2799_vm11 = vweird.f32 %v2775_v47 }
 0x92f   : > { %v2781_v7 = vsub.f32 1.0, %v2780_v3  ;;  %5727 = vpow2.f32 %v2909_v4  ;;  %v2911_v61 = vmul.f32 1.442695, %v2905_v53  ;;  %v2719_v3 = vpop.f32.mrf.mxu3 }
 0x930   : > { %v2806_v44 = vor.u32 1.1754944e-38, %v2805_v45  ;;  %vm2804_vm13 = vcmp.eq.f32.partialorder %v2803_v36, 8.507059e+37  ;;  %v6656_v45 = vperm.slane %v6618_v49, 0 }
 0x931   : > { %v2782_v10 = vmul.f32 %v5724_v1, %v2781_v7  ;;  %5729 = vpow2.f32 %v2911_v61 }
 0x932   : > { %v2718_v49 = vadd.f32 %v2717_v17, %v6656_v45  ;;  %v2720_v4 = vadd.f32 %v2719_v3, %v6656_v45 }
 0x933   : > { %v2783_v33 = vadd.f32 %v5724_v1, %v2782_v10 }
 0x934   : > { %v5726_v13 = vpop.eup %5725 }
 0x935   : > { %v2787_v14 = vsel %vm2786_vm5, %v5724_v1, %v2783_v33  ;;  %v2795_v19 = vmul.f32 %v5726_v13, %v2775_v47  ;;  %vm2800_vm9 = vweird.f32 %v5726_v13  ;;  %v5728_v1 = vpop.eup %5727 }
 0x936   : > { %v2792_v50 = vsel %vm2789_vm6, %v2791_v38, %v2787_v14  ;;  %vm2801_vm12 = vmor %vm2799_vm11, %vm2800_vm9 }
 0x937   : > { %v2854_v20 = vmul.f32 1.0614054, %v2792_v50  ;;  %v2796_v21 = vsub.f32 1.0, %v2795_v19  ;;  %v5730_v62 = vpop.eup %5729 }
 0x939   : > { %v2859_v35 = vadd.f32 -1.4531521, %v2854_v20  ;;  %v2797_v28 = vmul.f32 %v5726_v13, %v2796_v21 }
 0x93b   : > { %v2864_v42 = vmul.f32 %v2859_v35, %v2792_v50  ;;  %v2798_v8 = vadd.f32 %v5726_v13, %v2797_v28 }
 0x93d   : > { %v2869_v29 = vadd.f32 1.4214138, %v2864_v42  ;;  %v2802_v60 = vsel %vm2801_vm12, %v5726_v13, %v2798_v8  ;;  %v2755_v8 = vmul.f32 0.5, %v6632_v40 }
 0x93e   : > { %v2807_v41 = vsel %vm2804_vm13, %v2806_v44, %v2802_v60 }
 0x93f   : > { %v2874_v48 = vmul.f32 %v2869_v29, %v2792_v50  ;;  %v2855_v43 = vmul.f32 1.0614054, %v2807_v41 }
 0x941   : > { %v2879_v39 = vadd.f32 -0.28449672, %v2874_v48  ;;  %v2860_v54 = vadd.f32 -1.4531521, %v2855_v43 }
 0x943   : > { %v2884_v26 = vmul.f32 %v2879_v39, %v2792_v50  ;;  %v2865_v56 = vmul.f32 %v2860_v54, %v2807_v41 }
 0x945   : > { %v2889_v57 = vadd.f32 0.2548296, %v2884_v26  ;;  %v2870_v27 = vadd.f32 1.4214138, %v2865_v56 }
 0x947   : > { %v2894_v63 = vmul.f32 %v2889_v57, %v2792_v50  ;;  %v2875_v47 = vmul.f32 %v2870_v27, %v2807_v41 }
 0x949   : > { %v2919_v0 = vmul.f32 %v5728_v1, %v2894_v63  ;;  %v2880_v7 = vadd.f32 -0.28449672, %v2875_v47 }
 0x94b   : > { %v2924_v9 = vsub.f32 1.0, %v2919_v0  ;;  %v2885_v10 = vmul.f32 %v2880_v7, %v2807_v41 }
 0x94d   : > { %v2934_v12 = vsub.f32 0.0, %v2924_v9  ;;  %v2890_v59 = vadd.f32 0.2548296, %v2885_v10 }
 0x94f   : > { %v2895_v33 = vmul.f32 %v2890_v59, %v2807_v41  ;;  %v2939_v15 = vsel %vm2929_vm14, %v2924_v9, %v2934_v12 }
 0x950   : > { %v6645_v38 = vpop.f32.mrf.mxu3  ;;  %v2745_v13 = vpop.f32.mrf.mxu2  ;;  %v2944_v20 = vadd.f32 1.0, %v2939_v15 }
 0x951   : > { %v6649_v14 = vadd.f32 %v2745_v13, %v6621_v51  ;;  %v2920_v50 = vmul.f32 %v5730_v62, %v2895_v33 }
 0x952   : > { %v2949_v42 = vmul.f32 %v2944_v20, %v2754_v23 }
 0x953   : > { %v6652_v18 = vmul.f32 0.70710677, %v6649_v14  ;;  %v2925_v19 = vsub.f32 1.0, %v2920_v50 }
 0x954   : > { %v2954_v60 = vmul.f32 %v2949_v42, %v2718_v49 }
 0x955   : > { %v2766_v21 = vand.u32 2147483647, %v6652_v18  ;;  %v2935_v35 = vsub.f32 0.0, %v2925_v19 }
 0x957   : > { %v2771_v52 = vmul.f32 0.3275911, %v2766_v21  ;;  %v2940_v37 = vsel %vm2930_vm15, %v2925_v19, %v2935_v35  ;;  %v2901_v33 = vsub.f32 0.0, %v2766_v21 }
 0x958   : > { %v6660_v28 = vpop.f32.mrf.mxu3  ;;  %v2747_v36 = vpop.f32.mrf.mxu2  ;;  %v2945_v29 = vadd.f32 1.0, %v2940_v37 }
 0x959   : > { %v2776_v44 = vadd.f32 1.0, %v2771_v52  ;;  %v6664_v34 = vadd.f32 %v2747_v36, %v6621_v51  ;;  %v2906_v20 = vmul.f32 %v2901_v33, %v2766_v21 }
 0x95a   : > { %v2950_v5 = vmul.f32 %v2945_v29, %v2755_v8 }
 0x95b   : > { %5731 = vrcp.f32 %v2776_v44  ;;  %v6669_v58 = vmul.f32 0.70710677, %v6664_v34  ;;  %v2820_v27 = vand.u32 2147483648, %v2776_v44  ;;  %v2818_v1 = vand.u32 2147483647, %v2776_v44 }
 0x95c   : > { %v2955_v48 = vmul.f32 %v2950_v5, %v2720_v4  ;;  %vm2814_vm2 = vweird.f32 %v2776_v44 }
 0x95d   : > { %v6672_v41 = vand.u32 2147483647, %v6669_v58  ;;  %v2821_v7 = vor.u32 1.1754944e-38, %v2820_v27  ;;  %vm2819_vm4 = vcmp.eq.f32.partialorder %v2818_v1, 8.507059e+37 }
 0x95e   : > { %v2975_v40 = vpack.c.bf16 %v2955_v48, %v2954_v60 }
 0x95f   : > { %v2772_v24 = vmul.f32 0.3275911, %v6672_v41  ;;  %v2902_v60 = vsub.f32 0.0, %v6672_v41 }
 0x960   : > { %v6675_v43 = vpop.f32.mrf.mxu3  ;;  %v2750_v39 = vpop.f32.mrf.mxu2  ;;  %3038 = vmatmul.bf16.vlgmr.msrb.gmra.mxu0 %v2975_v40 }
 0x961   : > { %v5732_v54 = vpop.eup %5731  ;;  %v6678_v17 = vadd.f32 %v2750_v39, %v6621_v51  ;;  %v2777_v53 = vadd.f32 1.0, %v2772_v24 }
 0x962   : > { %v2810_v26 = vmul.f32 %v5732_v54, %v2776_v44  ;;  %vm2815_vm1 = vweird.f32 %v5732_v54  ;;  %v2913_v44 = vmul.f32 1.442695, %v2906_v20 }
 0x963   : > { %v6681_v56 = vmul.f32 0.70710677, %v6678_v17  ;;  %5733 = vrcp.f32 %v2777_v53  ;;  %vm2816_vm3 = vmor %vm2814_vm2, %vm2815_vm1  ;;  %v2835_v19 = vand.u32 2147483648, %v2777_v53  ;;  %v2833_v23 = vand.u32 2147483647, %v2777_v53 }
 0x964   : > { %v2811_v57 = vsub.f32 1.0, %v2810_v26  ;;  %vm2829_vm6 = vweird.f32 %v2777_v53  ;;  %vm2931_vm1 = vcmp.ge.f32.partialorder %v6652_v18, 0.0  ;;  %vm2932_vm2 = vcmp.ge.f32.partialorder %v6669_v58, 0.0 }
 0x965   : > { %v6684_v63 = vand.u32 2147483647, %v6681_v56  ;;  %v2836_v8 = vor.u32 1.1754944e-38, %v2835_v19  ;;  %vm2834_vm11 = vcmp.eq.f32.partialorder %v2833_v23, 8.507059e+37 }
 0x966   : > { %v2812_v61 = vmul.f32 %v5732_v54, %v2811_v57  ;;  %v2907_v57 = vmul.f32 %v2902_v60, %v6672_v41 }
 0x967   : > { %v2773_v3 = vmul.f32 0.3275911, %v6684_v63 }
 0x968   : > { %v2813_v47 = vadd.f32 %v5732_v54, %v2812_v61  ;;  %v2729_v51 = vpop.f32.mrf.mxu3  ;;  %v2752_v0 = vpop.f32.mrf.mxu2 }
 0x969   : > { %v2778_v9 = vadd.f32 1.0, %v2773_v3  ;;  %v5734_v10 = vpop.eup %5733 }
 0x96a   : > { %v2817_v12 = vsel %vm2816_vm3, %v5732_v54, %v2813_v47  ;;  %v2825_v13 = vmul.f32 %v5734_v10, %v2777_v53  ;;  %vm2830_vm5 = vweird.f32 %v5734_v10  ;;  %vm2933_vm3 = vcmp.ge.f32.partialorder %v6681_v56, 0.0 }
 0x96b   : > { %v2822_v59 = vsel %vm2819_vm4, %v2821_v7, %v2817_v12  ;;  %5735 = vrcp.f32 %v2778_v9  ;;  %vm2831_vm9 = vmor %vm2829_vm6, %vm2830_vm5  ;;  %v2850_v40 = vand.u32 2147483648, %v2778_v9  ;;  %v2848_v54 = vand.u32 2147483647, %v2778_v9 }
 0x96c   : > { %v2856_v62 = vmul.f32 1.0614054, %v2822_v59  ;;  %v2826_v15 = vsub.f32 1.0, %v2825_v13  ;;  %5737 = vpow2.f32 %v2913_v44  ;;  %vm2844_vm13 = vweird.f32 %v2778_v9 }
 0x96d   : > { %v2851_v1 = vor.u32 1.1754944e-38, %v2850_v40  ;;  %vm2849_vm15 = vcmp.eq.f32.partialorder %v2848_v54, 8.507059e+37  ;;  %v2903_v7 = vsub.f32 0.0, %v6684_v63  ;;  %v2915_v12 = vmul.f32 1.442695, %v2907_v57 }
 0x96e   : > { %v2861_v50 = vadd.f32 -1.4531521, %v2856_v62  ;;  %v2827_v35 = vmul.f32 %v5734_v10, %v2826_v15  ;;  %v2756_v40 = vmul.f32 0.5, %v6649_v14  ;;  %v2723_v57 = vadd.f32 %v6645_v38, %v6656_v45 }
 0x96f   : > { %5739 = vpow2.f32 %v2915_v12  ;;  %v2728_v38 = vadd.f32 %v6675_v43, %v6656_v45  ;;  %v5613_v12 = vld [vmem:[%s7302_s22] ss:$0 sm:$0xff]  ;;  %s7313_s22 = sld [smem:[#allocation20_spill]] }
 0x970   : > { %v2866_v52 = vmul.f32 %v2861_v50, %v2822_v59  ;;  %v2828_v36 = vadd.f32 %v5734_v10, %v2827_v35 }
 0x971   : > { %v5736_v37 = vpop.eup %5735 }
 0x972   : > { %v2871_v42 = vadd.f32 1.4214138, %v2866_v52  ;;  %v2840_v29 = vmul.f32 %v5736_v37, %v2778_v9  ;;  %v2832_v49 = vsel %vm2831_vm9, %v5734_v10, %v2828_v36  ;;  %vm2845_vm12 = vweird.f32 %v5736_v37  ;;  %v5738_v13 = vpop.eup %5737 }
 0x973   : > { %v2837_v5 = vsel %vm2834_vm11, %v2836_v8, %v2832_v49  ;;  %vm2846_vm14 = vmor %vm2844_vm13, %vm2845_vm12  ;;  %v2908_v9 = vmul.f32 %v2903_v7, %v6684_v63 }
 0x974   : > { %v2876_v4 = vmul.f32 %v2871_v42, %v2822_v59  ;;  %v2841_v48 = vsub.f32 1.0, %v2840_v29  ;;  %v2857_v21 = vmul.f32 1.0614054, %v2837_v5 }
 0x975   : > { %v2917_v36 = vmul.f32 1.442695, %v2908_v9 }
 0x976   : > { %v2881_v24 = vadd.f32 -0.28449672, %v2876_v4  ;;  %v2842_v39 = vmul.f32 %v5736_v37, %v2841_v48  ;;  %v2862_v26 = vadd.f32 -1.4531521, %v2857_v21 }
 0x977   : > { %5741 = vpow2.f32 %v2917_v36 }
 0x978   : > { %v2886_v53 = vmul.f32 %v2881_v24, %v2822_v59  ;;  %v2843_v27 = vadd.f32 %v5736_v37, %v2842_v39  ;;  %v2867_v61 = vmul.f32 %v2862_v26, %v2837_v5  ;;  %v2757_v26 = vmul.f32 0.5, %v6664_v34 }
 0x97a   : > { %v2891_v3 = vadd.f32 0.2548296, %v2886_v53  ;;  %v2847_v47 = vsel %vm2846_vm14, %v5736_v37, %v2843_v27  ;;  %v2872_v51 = vadd.f32 1.4214138, %v2867_v61  ;;  %v2725_v27 = vadd.f32 %v6660_v28, %v6656_v45 }
 0x97b   : > { %v2852_v0 = vsel %vm2849_vm15, %v2851_v1, %v2847_v47 }
 0x97c   : > { %v2896_v10 = vmul.f32 %v2891_v3, %v2822_v59  ;;  %v2858_v33 = vmul.f32 1.0614054, %v2852_v0  ;;  %v2877_v62 = vmul.f32 %v2872_v51, %v2837_v5  ;;  %v5740_v59 = vpop.eup %5739 }
 0x97d   : > { %v5742_v39 = vpop.eup %5741 }
 0x97e   : > { %v2921_v15 = vmul.f32 %v5738_v13, %v2896_v10  ;;  %v2863_v50 = vadd.f32 -1.4531521, %v2858_v33  ;;  %v2882_v41 = vadd.f32 -0.28449672, %v2877_v62 }
 0x980   : > { %v2926_v19 = vsub.f32 1.0, %v2921_v15  ;;  %v2868_v20 = vmul.f32 %v2863_v50, %v2852_v0  ;;  %v2887_v35 = vmul.f32 %v2882_v41, %v2837_v5 }
 0x982   : > { %v2873_v23 = vadd.f32 1.4214138, %v2868_v20  ;;  %v2936_v52 = vsub.f32 0.0, %v2926_v19  ;;  %v2892_v37 = vadd.f32 0.2548296, %v2887_v35 }
 0x984   : > { %v2878_v42 = vmul.f32 %v2873_v23, %v2852_v0  ;;  %v2897_v8 = vmul.f32 %v2892_v37, %v2837_v5  ;;  %v2941_v44 = vsel %vm2931_vm1, %v2926_v19, %v2936_v52 }
 0x985   : > { %v2946_v63 = vadd.f32 1.0, %v2941_v44 }
 0x986   : > { %v2883_v29 = vadd.f32 -0.28449672, %v2878_v42  ;;  %v2922_v49 = vmul.f32 %v5740_v59, %v2897_v8 }
 0x987   : > { %v2951_v5 = vmul.f32 %v2946_v63, %v2756_v40 }
 0x988   : > { %v2888_v4 = vmul.f32 %v2883_v29, %v2852_v0  ;;  %v2927_v60 = vsub.f32 1.0, %v2922_v49 }
 0x989   : > { %v2956_v3 = vmul.f32 %v2951_v5, %v2723_v57 }
 0x98a   : > { %v2893_v48 = vadd.f32 0.2548296, %v2888_v4  ;;  %v2937_v21 = vsub.f32 0.0, %v2927_v60 }
 0x98c   : > { %v2898_v24 = vmul.f32 %v2893_v48, %v2852_v0  ;;  %v2942_v54 = vsel %vm2932_vm2, %v2927_v60, %v2937_v21  ;;  %v2758_v0 = vmul.f32 0.5, %v6678_v17 }
 0x98d   : > { %v2947_v18 = vadd.f32 1.0, %v2942_v54 }
 0x98e   : > { %v2923_v53 = vmul.f32 %v5742_v39, %v2898_v24 }
 0x98f   : > { %v2952_v61 = vmul.f32 %v2947_v18, %v2757_v26 }
 0x990   : > { %v2928_v1 = vsub.f32 1.0, %v2923_v53 }
 0x991   : > { %v2957_v58 = vmul.f32 %v2952_v61, %v2725_v27 }
 0x992   : > { %v2938_v14 = vsub.f32 0.0, %v2928_v1 }
 0x993   : > { %v2976_v47 = vpack.c.bf16 %v2957_v58, %v2956_v3  ;;  %v5495_v3 = vld [vmem:[%s7303_s11 + $0x14] sm:$0xf0]  ;;  %v5494_v58 = vld [vmem:[%s7303_s11 + $0x14] sm:$0xf] }
 0x994   : > { %v2943_v51 = vsel %vm2933_vm3, %v2928_v1, %v2938_v14  ;;  %v5248_v14 = vld [vmem:[%s7303_s11 + $0x10] sm:$0xf] }
 0x995   : > { %3043 = vmatmul.bf16.gmra.mxu0 %v2976_v47  ;;  %v2948_v34 = vadd.f32 1.0, %v2943_v51  ;;  %v5249_v47 = vor.u32 %v5495_v3, %v5248_v14  ;;  %v5250_v51 = vld [vmem:[%s7303_s11 + $0x18] sm:$0xf0] }
 0x997   : > { %v2953_v7 = vmul.f32 %v2948_v34, %v2758_v0  ;;  %v5253_v0 = vor.u32 %v5494_v58, %v5250_v51  ;;  %3228 = vmatpush.bf16.msrb.mxu1 %v5249_v47 }
 0x999   : > { %v2958_v10 = vmul.f32 %v2953_v7, %v2728_v38  ;;  %3251 = vmatpush.bf16.msrb.mxu3 %v5253_v0  ;;  %v5240_v38 = vld [vmem:[%s7303_s11] sm:$0xf] }
 0x99b   : > { %v2977_v28 = vpack.c.bf16 %v2958_v10, %v2958_v10  ;;  %v5493_v10 = vld [vmem:[%s7303_s11 + $0x4] sm:$0xf0] }
 0x9a5   : > { %3048 = vmatmul.bf16.gmra.mxu0 %v2977_v28  ;;  %v5492_v28 = vld [vmem:[%s7303_s11 + $0x4] sm:$0xf] }
 0x9dd   : > { %v3039_v33 = vpop.f32.mrf.mxu0 }
 0x9de   : > { %v3040_v13 = vadd.f32 %v5613_v12, %v3039_v33  ;;  %v5241_v33 = vor.u32 %v5493_v10, %v5240_v38 }
 0x9e0   : > { %v3053_v62 = vadd.f32 %v3040_v13, %v6586_v32  ;;  %v5242_v13 = vld [vmem:[%s7303_s11 + $0x8] sm:$0xf0]  ;;  %3229 = vmatpush.bf16.msrb.mxu1 %v5241_v33 }
 0x9e2   : > { %v3060_v56 = vsel %vm1076_vm0, %v3053_v62, 0.0 }
 0x9e3   : > { %3061 = vadd.xlane.f32.xlu0 %v3060_v56 }
 0x9e5   : > { %v3041_v15 = vpop.f32.mrf.mxu0 }
 0x9e6   : > { %v3042_v50 = vadd.f32 %v5613_v12, %v3041_v15 }
 0x9e8   : > { %v3054_v41 = vadd.f32 %v3042_v50, %v6588_v31 }
 0x9ea   : > { %v3063_v17 = vsel %vm1076_vm0, %v3054_v41, 0.0 }
 0x9eb   : > { %3064 = vadd.xlane.f32.xlu2 %v3063_v17 }
 0xa12   : > { %v3044_v9 = vpop.f32.mrf.mxu0 }
 0xa13   : > { %v3045_v45 = vadd.f32 %v5613_v12, %v3044_v9 }
 0xa15   : > { %v3055_v43 = vadd.f32 %v3045_v45, %v6601_v46 }
 0xa17   : > { %v3066_v19 = vsel %vm1076_vm0, %v3055_v43, 0.0 }
 0xa18   : > { %3067 = vadd.xlane.f32.xlu1 %v3066_v19 }
 0xa1a   : > { %v3046_v20 = vpop.f32.mrf.mxu0 }
 0xa1b   : > { %v3047_v35 = vadd.f32 %v5613_v12, %v3046_v20 }
 0xa1d   : > { %v3056_v32 = vadd.f32 %v3047_v35, %v6603_v30 }
 0xa1f   : > { %v3069_v23 = vsel %vm1076_vm0, %v3056_v32, 0.0 }
 0xa20   : > { %3070 = vadd.xlane.f32.xlu0 %v3069_v23 }
 0xa22   : > { %v3049_v52 = vpop.f32.mrf.mxu0 }
 0xa23   : > { %v3050_v37 = vadd.f32 %v5613_v12, %v3049_v52 }
 0xa25   : > { %v3057_v31 = vadd.f32 %v3050_v37, %v6611_v55 }
 0xa27   : > { %v3072_v36 = vsel %vm1076_vm0, %v3057_v31, 0.0 }
 0xa28   : > { %3073 = vadd.xlane.f32.xlu2 %v3072_v36 }
 0xa2a   : > { %v3051_v42 = vpop.f32.mrf.mxu0 }
 0xa56   : > { %v3062_v8 = vpop.xlane.xlu0 %3061 }
 0xa57   : > { %v3075_v46 = vmul.f32 %v3062_v8, %v6169_v25 }
 0xa59   : > { %v6715_v59 = vsub.f32 %v3053_v62, %v3075_v46  ;;  %v5245_v62 = vor.u32 %v5492_v28, %v5242_v13  ;;  %v5615_v46 = vld [vmem:[%s7305_s4] ss:$0 sm:$0xff]  ;;  %s1073_s4 = scalar_lea.vmem %s6094_s12, %s6112_s0 }
 0xa5b   : > { %v3085_v29 = vmul.f32 %v6715_v59, %v6715_v59  ;;  %3252 = vmatpush.bf16.msrb.mxu3 %v5245_v62 }
 0xa5d   : > { %v3090_v30 = vsel %vm1076_vm0, %v3085_v29, 0.0 }
 0xa5e   : > { %3091 = vadd.xlane.f32.xlu1 %v3090_v30  ;;  %v3065_v44 = vpop.xlane.xlu2 %3064 }
 0xa5f   : > { %v3076_v49 = vmul.f32 %v3065_v44, %v6169_v25 }
 0xa61   : > { %v6721_v4 = vsub.f32 %v3054_v41, %v3076_v49 }
 0xa63   : > { %v3086_v55 = vmul.f32 %v6721_v4, %v6721_v4 }
 0xa65   : > { %v3093_v60 = vsel %vm1076_vm0, %v3086_v55, 0.0 }
 0xa66   : > { %3094 = vadd.xlane.f32.xlu0 %v3093_v60 }
 0xa8b   : > { %v3068_v63 = vpop.xlane.xlu1 %3067 }
 0xa8c   : > { %v3077_v48 = vmul.f32 %v3068_v63, %v6169_v25 }
 0xa8e   : > { %v6727_v21 = vsub.f32 %v3055_v43, %v3077_v48 }
 0xa90   : > { %v3087_v40 = vmul.f32 %v6727_v21, %v6727_v21 }
 0xa92   : > { %v3096_v24 = vsel %vm1076_vm0, %v3087_v40, 0.0 }
 0xa93   : > { %v3071_v39 = vpop.xlane.xlu0 %3070  ;;  %3097 = vadd.xlane.f32.xlu2 %v3096_v24 }
 0xa94   : > { %v3078_v54 = vmul.f32 %v3071_v39, %v6169_v25 }
 0xa96   : > { %v6733_v5 = vsub.f32 %v3056_v32, %v3078_v54 }
 0xa98   : > { %v3088_v26 = vmul.f32 %v6733_v5, %v6733_v5 }
 0xa9a   : > { %v3099_v18 = vsel %vm1076_vm0, %v3088_v26, 0.0 }
 0xa9b   : > { %3100 = vadd.xlane.f32.xlu1 %v3099_v18  ;;  %v3074_v53 = vpop.xlane.xlu2 %3073 }
 0xa9c   : > { %v3079_v57 = vmul.f32 %v3074_v53, %v6169_v25 }
 0xa9e   : > { %v6739_v27 = vsub.f32 %v3057_v31, %v3079_v57  ;;  %v6755_v31 = vld [vmem:[%s7304_s16] ss:$0 sm:$0xff]  ;;  %s7314_s16 = sld [smem:[#allocation19_spill]] }
 0xaa0   : > { %v3089_v61 = vmul.f32 %v6739_v27, %v6739_v27 }
 0xaa2   : > { %v3102_v1 = vsel %vm1076_vm0, %v3089_v61, 0.0 }
 0xaa3   : > { %3103 = vadd.xlane.f32.xlu0 %v3102_v1 }
 0xad1   : > { %v3092_v34 = vpop.xlane.xlu1 %3091 }
 0xad2   : > { %v3105_v7 = vmul.f32 %v3092_v34, %v6169_v25 }
 0xad4   : > { %v3110_v12 = vadd.f32 1e-05, %v3105_v7 }
 0xad6   : > { %5743 = vrsqrt.f32 %v3110_v12  ;;  %vm3121_vm5 = vweird.f32 %v3110_v12 }
 0xad9   : > { %v3095_v56 = vpop.xlane.xlu0 %3094 }
 0xada   : > { %v3106_v15 = vmul.f32 %v3095_v56, %v6169_v25 }
 0xadc   : > { %v5744_v50 = vpop.eup %5743  ;;  %v3111_v41 = vadd.f32 1e-05, %v3106_v15 }
 0xadd   : > { %v3116_v17 = vmul.f32 %v5744_v50, %v3110_v12  ;;  %vm3122_vm4 = vweird.f32 %v5744_v50 }
 0xade   : > { %5745 = vrsqrt.f32 %v3111_v41  ;;  %vm3123_vm6 = vmor %vm3121_vm5, %vm3122_vm4  ;;  %vm3131_vm11 = vweird.f32 %v3111_v41 }
 0xadf   : > { %v3117_v9 = vmul.f32 %v5744_v50, %v3116_v17 }
 0xae1   : > { %v3118_v45 = vmul.f32 0.5, %v3117_v9 }
 0xae3   : > { %v3119_v43 = vsub.f32 1.5, %v3118_v45 }
 0xae4   : > { %v5746_v19 = vpop.eup %5745 }
 0xae5   : > { %v3120_v20 = vmul.f32 %v5744_v50, %v3119_v43  ;;  %v3126_v35 = vmul.f32 %v5746_v19, %v3111_v41  ;;  %vm3132_vm9 = vweird.f32 %v5746_v19 }
 0xae6   : > { %vm3133_vm12 = vmor %vm3131_vm11, %vm3132_vm9 }
 0xae7   : > { %v3127_v32 = vmul.f32 %v5746_v19, %v3126_v35  ;;  %v3124_v23 = vsel %vm3123_vm6, %v5744_v50, %v3120_v20 }
 0xae8   : > { %v3165_v36 = vmul.f32 %v3124_v23, %v6715_v59 }
 0xae9   : > { %v3128_v52 = vmul.f32 0.5, %v3127_v32 }
 0xaea   : > { %v3173_v29 = vmul.f32 %v6755_v31, %v3165_v36 }
 0xaeb   : > { %v3129_v37 = vsub.f32 1.5, %v3128_v52 }
 0xaec   : > { %v6762_v49 = vadd.f32 %v5615_v46, %v3173_v29 }
 0xaed   : > { %v3130_v42 = vmul.f32 %v5746_v19, %v3129_v37 }
 0xaef   : > { %v3134_v8 = vsel %vm3133_vm12, %v5746_v19, %v3130_v42 }
 0xaf0   : > { %v3166_v30 = vmul.f32 %v3134_v8, %v6721_v4 }
 0xaf2   : > { %v3174_v44 = vmul.f32 %v6755_v31, %v3166_v30 }
 0xaf4   : > { %v6764_v55 = vadd.f32 %v5615_v46, %v3174_v44 }
 0xaf6   : > { %v3190_v60 = vpack.c.bf16 %v6764_v55, %v6762_v49 }
 0xaf8   : > { %5254 = vmatmul.msk.bf16.vlgmr.msrb.gmra.mxu1 %vm1076_vm0, %v3190_v60  ;;  %5257 = vmatmul.msk.bf16.vlgmr.msrb.gmra.mxu3 %vm1076_vm0, %v3190_v60 }
 0xb06   : > { %v3098_v59 = vpop.xlane.xlu2 %3097 }
 0xb07   : > { %v3107_v63 = vmul.f32 %v3098_v59, %v6169_v25 }
 0xb09   : > { %v3112_v48 = vadd.f32 1e-05, %v3107_v63 }
 0xb0b   : > { %5747 = vrsqrt.f32 %v3112_v48  ;;  %vm3141_vm14 = vweird.f32 %v3112_v48 }
 0xb0e   : > { %v3101_v40 = vpop.xlane.xlu1 %3100 }
 0xb0f   : > { %v3108_v4 = vmul.f32 %v3101_v40, %v6169_v25 }
 0xb11   : > { %v5748_v24 = vpop.eup %5747  ;;  %v3113_v39 = vadd.f32 1e-05, %v3108_v4 }
 0xb12   : > { %v3136_v54 = vmul.f32 %v5748_v24, %v3112_v48  ;;  %vm3142_vm13 = vweird.f32 %v5748_v24 }
 0xb13   : > { %5749 = vrsqrt.f32 %v3113_v39  ;;  %vm3143_vm15 = vmor %vm3141_vm14, %vm3142_vm13  ;;  %vm3151_vm2 = vweird.f32 %v3113_v39 }
 0xb14   : > { %v3137_v26 = vmul.f32 %v5748_v24, %v3136_v54 }
 0xb16   : > { %v3138_v18 = vmul.f32 0.5, %v3137_v26  ;;  %v3104_v53 = vpop.xlane.xlu0 %3103 }
 0xb17   : > { %v3109_v57 = vmul.f32 %v3104_v53, %v6169_v25 }
 0xb18   : > { %v3139_v61 = vsub.f32 1.5, %v3138_v18 }
 0xb19   : > { %v5750_v1 = vpop.eup %5749  ;;  %v3114_v14 = vadd.f32 1e-05, %v3109_v57 }
 0xb1a   : > { %v3140_v3 = vmul.f32 %v5748_v24, %v3139_v61  ;;  %v3146_v58 = vmul.f32 %v5750_v1, %v3113_v39  ;;  %vm3152_vm1 = vweird.f32 %v5750_v1 }
 0xb1b   : > { %5751 = vrsqrt.f32 %v3114_v14  ;;  %vm3153_vm3 = vmor %vm3151_vm2, %vm3152_vm1  ;;  %vm3161_vm5 = vweird.f32 %v3114_v14 }
 0xb1c   : > { %v3147_v47 = vmul.f32 %v5750_v1, %v3146_v58  ;;  %v3144_v51 = vsel %vm3143_vm15, %v5748_v24, %v3140_v3 }
 0xb1d   : > { %v3167_v38 = vmul.f32 %v3144_v51, %v6727_v21 }
 0xb1e   : > { %v3148_v34 = vmul.f32 0.5, %v3147_v47 }
 0xb1f   : > { %v3175_v62 = vmul.f32 %v6755_v31, %v3167_v38 }
 0xb20   : > { %v3149_v0 = vsub.f32 1.5, %v3148_v34 }
 0xb21   : > { %v5752_v7 = vpop.eup %5751  ;;  %v6777_v41 = vadd.f32 %v5615_v46, %v3175_v62 }
 0xb22   : > { %v3150_v10 = vmul.f32 %v5750_v1, %v3149_v0  ;;  %v3156_v28 = vmul.f32 %v5752_v7, %v3114_v14  ;;  %vm3162_vm4 = vweird.f32 %v5752_v7 }
 0xb23   : > { %vm3163_vm6 = vmor %vm3161_vm5, %vm3162_vm4 }
 0xb24   : > { %v3154_v12 = vsel %vm3153_vm3, %v5750_v1, %v3150_v10  ;;  %v3157_v33 = vmul.f32 %v5752_v7, %v3156_v28 }
 0xb25   : > { %v3168_v13 = vmul.f32 %v3154_v12, %v6733_v5 }
 0xb26   : > { %v3158_v56 = vmul.f32 0.5, %v3157_v33 }
 0xb27   : > { %v3176_v15 = vmul.f32 %v6755_v31, %v3168_v13 }
 0xb28   : > { %v3159_v50 = vsub.f32 1.5, %v3158_v56 }
 0xb29   : > { %v6779_v17 = vadd.f32 %v5615_v46, %v3176_v15 }
 0xb2a   : > { %v3160_v21 = vmul.f32 %v5752_v7, %v3159_v50 }
 0xb2b   : > { %v3191_v9 = vpack.c.bf16 %v6779_v17, %v6777_v41 }
 0xb2c   : > { %v3164_v45 = vsel %vm3163_vm6, %v5752_v7, %v3160_v21 }
 0xb2d   : > { %5255 = vmatmul.msk.bf16.gmra.mxu1 %vm1076_vm0, %v3191_v9  ;;  %5258 = vmatmul.msk.bf16.gmra.mxu3 %vm1076_vm0, %v3191_v9  ;;  %v3169_v5 = vmul.f32 %v3164_v45, %v6739_v27 }
 0xb2f   : > { %v3177_v43 = vmul.f32 %v6755_v31, %v3169_v5 }
 0xb31   : > { %v6787_v19 = vadd.f32 %v5615_v46, %v3177_v43 }
 0xb33   : > { %v3192_v20 = vpack.c.bf16 %v6787_v19, %v6787_v19 }
 0xb3d   : > { %5256 = vmatmul.msk.bf16.gmra.mxu1 %vm1076_vm0, %v3192_v20  ;;  %5259 = vmatmul.msk.bf16.gmra.mxu3 %vm1076_vm0, %v3192_v20 }
 0xb75   : > { %v3231_v35 = vpop.f32.mrf.mxu1 }
 0xb7b   : > { %v3254_v52 = vpop.f32.mrf.mxu3 }
 0xb7d   : > { %v3233_v32 = vpop.f32.mrf.mxu1 }
 0xb7e   : > { %v6793_v23 = vpack.c.bf16 %v3233_v32, %v3231_v35 }
 0xb80   : > { %3274 = vrot.lane.b32.xlu0 %v6793_v23, %s5910_s23 }
 0xb83   : > { %v3256_v27 = vpop.f32.mrf.mxu3 }
 0xb84   : > { %v6812_v40 = vpack.c.bf16 %v3256_v27, %v3254_v52 }
 0xbaa   : > { %v3236_v37 = vpop.f32.mrf.mxu1 }
 0xbb0   : > { %v3259_v31 = vpop.f32.mrf.mxu3 }
 0xbb2   : > { %v3238_v36 = vpop.f32.mrf.mxu1 }
 0xbb3   : > { %v6797_v42 = vpack.c.bf16 %v3238_v36, %v3236_v37 }
 0xbb5   : > { %3276 = vrot.lane.b32.xlu1 %v6797_v42, %s5910_s23 }
 0xbb8   : > { %v3261_v8 = vpop.f32.mrf.mxu3 }
 0xbb9   : > { %v6809_v63 = vpack.c.bf16 %v3261_v8, %v3259_v31 }
 0xbba   : > { %v3241_v46 = vpop.f32.mrf.mxu1 }
 0xbbb   : > { %v6801_v29 = vpack.c.bf16 %v3241_v46, %v3241_v46 }
 0xbbd   : > { %3278 = vrot.lane.b32.xlu2 %v6801_v29, %s5910_s23  ;;  %s7306_s23 = sld [smem:[#allocation12_spill]] }
 0xbc0   : > { %v3264_v30 = vpop.f32.mrf.mxu3 }
 0xbc1   : > { %v6805_v44 = vpack.c.bf16 %v3264_v30, %v3264_v30 }
 0xbc2   : > { %v3243_v60 = vpop.f32.mrf.mxu1 }
 0xbc3   : > { %v3367_v59 = vsel %vm1825_vm7, %v6805_v44, 0 }
 0xbc4   : > { %3374 = vmatpush.bf16.msra.mxu0 %v3367_v59 }
 0xbc8   : > { %v3266_v48 = vpop.f32.mrf.mxu3  ;;  %3375 = vmatpush.bf16.msra.mxu0 %v6809_v63 }
 0xbcc   : > { %3376 = vmatpush.bf16.msra.mxu0 %v6812_v40 }
 0xbf2   : > { %v3275_v26 = vpop.permute.xlu0 %3274 }
 0xbf3   : > { %v3290_v18 = vsel %vm1737_vm8, %v3275_v26, 0 }
 0xc17   : > { %v3279_v4 = vpop.permute.xlu2 %3278 }
 0xc18   : > { %v3296_v24 = vsel %vm1737_vm8, %v3279_v4, 0 }
 0xc19   : > { %3303 = vmatpush.bf16.xpose.msrb.mxu2 %v3296_v24 }
 0xc27   : > { %v3277_v39 = vpop.permute.xlu1 %3276 }
 0xc28   : > { %v3293_v54 = vsel %vm1737_vm8, %v3277_v39, 0 }
 0xc29   : > { %3304 = vmatpush.bf16.xpose.msrb.mxu2 %v3293_v54 }
 0xc31   : > { %3305 = vmatpush.bf16.xpose.msrb.mxu2 %v3290_v18 }
 0xc38   : > { %5260 = vmatmul.msk.bf16.vlgmr.msrb.gmra.mxu2 %vm1737_vm8, %v6793_v23 }
 0xc48   : > { %5261 = vmatmul.msk.bf16.gmra.mxu2 %vm1737_vm8, %v6797_v42 }
 0xc58   : > { %5262 = vmatmul.msk.bf16.gmra.mxu2 %vm1737_vm8, %v6801_v29 }
 0xcbb   : > { %v3307_v53 = vpop.f32.mrf.mxu2 }
 0xcbc   : > { %v3308_v57 = vadd.f32 %v3307_v53, %v6287_v2 }
 0xcbe   : > { %v3321_v61 = vsel %vm1779_vm10, %v3308_v57, -inf }
 0xcbf   : > { %3322 = vmax.xlane.f32.xlu2 %v3321_v61 }
 0xcc3   : > { %v3309_v1 = vpop.f32.mrf.mxu2 }
 0xcc4   : > { %v3310_v14 = vadd.f32 %v3309_v1, %v6291_v11 }
 0xcc6   : > { %v3324_v3 = vsel %vm1779_vm10, %v3310_v14, -inf }
 0xcc7   : > { %3325 = vmax.xlane.f32.xlu0 %v3324_v3 }
 0xccb   : > { %v3312_v58 = vpop.f32.mrf.mxu2 }
 0xccc   : > { %v3313_v47 = vadd.f32 %v3312_v58, %v6295_v16 }
 0xcce   : > { %v3327_v51 = vsel %vm1779_vm10, %v3313_v47, -inf }
 0xccf   : > { %3328 = vmax.xlane.f32.xlu1 %v3327_v51 }
 0xcd3   : > { %v3314_v34 = vpop.f32.mrf.mxu2 }
 0xcd4   : > { %v3315_v0 = vadd.f32 %v3314_v34, %v6299_v22 }
 0xcd6   : > { %v3330_v7 = vsel %vm1779_vm10, %v3315_v0, -inf }
 0xcd7   : > { %3331 = vmax.xlane.f32.xlu2 %v3330_v7 }
 0xcdb   : > { %v3317_v38 = vpop.f32.mrf.mxu2 }
 0xcdc   : > { %v3318_v10 = vadd.f32 %v3317_v38, %v6303_v6 }
 0xcde   : > { %v3333_v28 = vsel %vm1779_vm10, %v3318_v10, -inf }
 0xcdf   : > { %3334 = vmax.xlane.f32.xlu0 %v3333_v28 }
 0xce3   : > { %v3319_v12 = vpop.f32.mrf.mxu2 }
 0xce8   : > { %3432 = vrot.lane.b32.xlu1 %v6801_v29, %s5912_s26 }
 0xcef   : > { %3430 = vrot.lane.b32.xlu2 %v6797_v42, %s5912_s26 }
 0xcf0   : > { %3670 = vrot.lane.b32.xlu1 %v6801_v29, %s5913_s28 }
 0xcf3   : > { %3428 = vrot.lane.b32.xlu0 %v6793_v23, %s5912_s26  ;;  %s7307_s26 = sld [smem:[#allocation13_spill]] }
 0xcf7   : > { %3422 = vrot.lane.b32.xlu2 %v6793_v23, %s5914_s1 }
 0xcfb   : > { %3424 = vrot.lane.b32.xlu0 %v6797_v42, %s5914_s1 }
 0xcff   : > { %3426 = vrot.lane.b32.xlu2 %v6801_v29, %s5914_s1 }
 0xd03   : > { %3668 = vrot.lane.b32.xlu0 %v6797_v42, %s5913_s28 }
 0xd32   : > { %v3323_v33 = vpop.xlane.xlu2 %3322 }
 0xd33   : > { %v3336_v13 = vsub.f32 %v3308_v57, %v3323_v33 }
 0xd35   : > { %v3341_v62 = vmul.f32 1.442695, %v3336_v13 }
 0xd37   : > { %5753 = vpow2.f32 %v3341_v62 }
 0xd3a   : > { %v3326_v56 = vpop.xlane.xlu0 %3325 }
 0xd3b   : > { %v3337_v15 = vsub.f32 %v3310_v14, %v3326_v56 }
 0xd3d   : > { %v5754_v50 = vpop.eup %5753  ;;  %v3343_v21 = vmul.f32 1.442695, %v3337_v15 }
 0xd3e   : > { %v3392_v9 = vsel %vm1779_vm10, %v5754_v50, 0.0 }
 0xd3f   : > { %5755 = vpow2.f32 %v3343_v21  ;;  %3393 = vadd.xlane.f32.xlu1 %v3392_v9 }
 0xd42   : > { %v3329_v45 = vpop.xlane.xlu1 %3328 }
 0xd43   : > { %v3338_v5 = vsub.f32 %v3313_v47, %v3329_v45 }
 0xd45   : > { %v5756_v43 = vpop.eup %5755  ;;  %v3345_v20 = vmul.f32 1.442695, %v3338_v5 }
 0xd46   : > { %v3351_v35 = vpack.c.bf16 %v5756_v43, %v5754_v50  ;;  %v3395_v32 = vsel %vm1779_vm10, %v5756_v43, 0.0 }
 0xd47   : > { %5757 = vpow2.f32 %v3345_v20  ;;  %3396 = vadd.xlane.f32.xlu0 %v3395_v32 }
 0xd48   : > { %5263 = vmatmul.msk.bf16.vlgmr.msra.gmra.mxu0 %vm1779_vm10, %v3351_v35 }
 0xd4a   : > { %v3332_v52 = vpop.xlane.xlu2 %3331 }
 0xd4b   : > { %v3339_v27 = vsub.f32 %v3315_v0, %v3332_v52  ;;  %v5496_v0 = vld [vmem:[%s7306_s23] sm:$0xff] }
 0xd4c   : > { %3644 = vmatpush.bf16.msrb.mxu0 %v5496_v0 }
 0xd4d   : > { %v5758_v37 = vpop.eup %5757  ;;  %v3347_v31 = vmul.f32 1.442695, %v3339_v27 }
 0xd4e   : > { %v3398_v36 = vsel %vm1779_vm10, %v5758_v37, 0.0 }
 0xd4f   : > { %5759 = vpow2.f32 %v3347_v31  ;;  %3399 = vadd.xlane.f32.xlu2 %v3398_v36 }
 0xd52   : > { %v3335_v8 = vpop.xlane.xlu0 %3334  ;;  %v3431_v54 = vpop.permute.xlu2 %3430 }
 0xd53   : > { %v3340_v46 = vsub.f32 %v3318_v10, %v3335_v8  ;;  %v3447_v26 = vsel %vm1737_vm8, %v3431_v54, 0 }
 0xd55   : > { %v5760_v30 = vpop.eup %5759  ;;  %v3349_v60 = vmul.f32 1.442695, %v3340_v46 }
 0xd56   : > { %v3352_v59 = vpack.c.bf16 %v5760_v30, %v5758_v37  ;;  %v3401_v51 = vsel %vm1779_vm10, %v5760_v30, 0.0 }
 0xd57   : > { %5761 = vpow2.f32 %v3349_v60 }
 0xd58   : > { %3666 = vrot.lane.b32.xlu1 %v6793_v23, %s5913_s28  ;;  %5264 = vmatmul.msk.bf16.gmra.mxu0 %vm1779_vm10, %v3352_v59  ;;  %s7308_s28 = sld [smem:[#allocation16_spill]] }
 0xd5a   : > { %v3433_v48 = vpop.permute.xlu1 %3432  ;;  %v3423_v3 = vpop.permute.xlu2 %3422 }
 0xd5b   : > { %v3450_v4 = vsel %vm1737_vm8, %v3433_v48, 0  ;;  %3872 = vrot.lane.b32.xlu0 %v6801_v29, %s5915_s2 }
 0xd5c   : > { %3457 = vmatpush.bf16.xpose.msra.mxu1 %v3450_v4 }
 0xd5d   : > { %v5762_v24 = vpop.eup %5761 }
 0xd5e   : > { %v3404_v39 = vsel %vm1779_vm10, %v5762_v24, 0.0  ;;  %v3353_v53 = vpack.c.bf16 %v5762_v24, %v5762_v24 }
 0xd5f   : > { %3405 = vadd.xlane.f32.xlu2 %v3404_v39 }
 0xd62   : > { %v3671_v57 = vpop.permute.xlu1 %3670  ;;  %v3427_v34 = vpop.permute.xlu2 %3426 }
 0xd63   : > { %3870 = vrot.lane.b32.xlu0 %v6797_v42, %s5915_s2  ;;  %v3688_v1 = vsel %vm1737_vm8, %v3671_v57, 0 }
 0xd64   : > { %3458 = vmatpush.bf16.xpose.msra.mxu1 %v3447_v26 }
 0xd65   : > { %v3429_v18 = vpop.permute.xlu0 %3428 }
 0xd66   : > { %v3444_v61 = vsel %vm1737_vm8, %v3429_v18, 0 }
 0xd68   : > { %5265 = vmatmul.msk.bf16.gmra.mxu0 %vm1779_vm10, %v3353_v53 }
 0xd6b   : > { %3862 = vrot.lane.b32.xlu0 %v6793_v23, %s5916_s10 }
 0xd6c   : > { %3459 = vmatpush.bf16.xpose.msra.mxu1 %v3444_v61 }
 0xd6d   : > { %v3425_v14 = vpop.permute.xlu0 %3424 }
 0xd73   : > { %5266 = vmatmul.msk.bf16.vlgmr.msra.gmra.mxu1 %vm1737_vm8, %v3423_v3 }
 0xd74   : > { %3695 = vmatpush.bf16.xpose.msrb.mxu1 %v3688_v1 }
 0xd75   : > { %v3669_v58 = vpop.permute.xlu0 %3668 }
 0xd76   : > { %v3685_v47 = vsel %vm1737_vm8, %v3669_v58, 0 }
 0xd77   : > { %3868 = vrot.lane.b32.xlu2 %v6793_v23, %s5915_s2  ;;  %s7310_s2 = sld [smem:[#allocation15_spill]] }
 0xd7c   : > { %3696 = vmatpush.bf16.xpose.msrb.mxu1 %v3685_v47 }
 0xd82   : > { %3402 = vadd.xlane.f32.xlu1 %v3401_v51 }
 0xd83   : > { %5267 = vmatmul.msk.bf16.gmra.mxu1 %vm1737_vm8, %v3425_v14 }
 0xd93   : > { %5268 = vmatmul.msk.bf16.gmra.mxu1 %vm1737_vm8, %v3427_v34 }
 0xd9b   : > { %3660 = vrot.lane.b32.xlu1 %v6793_v23, %s5917_s7 }
 0xda3   : > { %3662 = vrot.lane.b32.xlu1 %v6797_v42, %s5917_s7 }
 0xdab   : > { %3515 = vrot.lane.b32.xlu1 %v6805_v44, %s5914_s1 }
 0xdb2   : > { %v3394_v7 = vpop.xlane.xlu1 %3393 }
 0xdb3   : > { %3513 = vrot.lane.b32.xlu1 %v6809_v63, %s5914_s1  ;;  %5763 = vrcp.f32 %v3394_v7 }
 0xdb9   : > { %v5764_v33 = vpop.eup %5763 }
 0xdba   : > { %v3397_v38 = vpop.xlane.xlu0 %3396 }
 0xdbb   : > { %3664 = vrot.lane.b32.xlu1 %v6801_v29, %s5917_s7  ;;  %5765 = vrcp.f32 %v3397_v38 }
 0xdc1   : > { %v5766_v13 = vpop.eup %5765 }
 0xdc2   : > { %v3400_v10 = vpop.xlane.xlu2 %3399 }
 0xdc3   : > { %3511 = vrot.lane.b32.xlu1 %v6812_v40, %s5914_s1  ;;  %5767 = vrcp.f32 %v3400_v10  ;;  %s7309_s1 = sld [smem:[#allocation14_spill]] }
 0xdc5   : > { %v3378_v23 = vpop.f32.mrf.mxu0 }
 0xdc6   : > { %v3412_v15 = vmul.f32 %v5764_v33, %v3378_v23 }
 0xdc9   : > { %v5768_v59 = vpop.eup %5767 }
 0xdca   : > { %v3667_v28 = vpop.permute.xlu1 %3666 }
 0xdcb   : > { %v3682_v12 = vsel %vm1737_vm8, %v3667_v28, 0 }
 0xdcc   : > { %3697 = vmatpush.bf16.xpose.msrb.mxu1 %v3682_v12 }
 0xdcd   : > { %v3873_v62 = vpop.permute.xlu0 %3872  ;;  %v3380_v56 = vpop.f32.mrf.mxu0 }
 0xdce   : > { %v3890_v50 = vsel %vm1737_vm8, %v3873_v62, 0  ;;  %v3413_v21 = vmul.f32 %v5766_v13, %v3380_v56 }
 0xdcf   : > { %3897 = vmatpush.bf16.xpose.msra.mxu0 %v3890_v50 }
 0xdd0   : > { %v3419_v9 = vpack.c.bf16 %v3413_v21, %v3412_v15 }
 0xdd2   : > { %5283 = vmatmul.msk.bf16.vlgmr.msrb.gmra.mxu0 %vm1737_vm8, %v3419_v9  ;;  %v3406_v45 = vpop.xlane.xlu2 %3405 }
 0xdd5   : > { %v3871_v5 = vpop.permute.xlu0 %3870  ;;  %v3383_v43 = vpop.f32.mrf.mxu0 }
 0xdd6   : > { %v3887_v20 = vsel %vm1737_vm8, %v3871_v5, 0  ;;  %v3414_v24 = vmul.f32 %v5768_v59, %v3383_v43 }
 0xdd7   : > { %3898 = vmatpush.bf16.xpose.msra.mxu0 %v3887_v20 }
 0xdda   : > { %v3869_v35 = vpop.permute.xlu2 %3868 }
 0xddb   : > { %v3884_v52 = vsel %vm1737_vm8, %v3869_v35, 0 }
 0xddd   : > { %v3385_v32 = vpop.f32.mrf.mxu0  ;;  %v3863_v28 = vpop.permute.xlu0 %3862 }
 0xddf   : > { %3899 = vmatpush.bf16.xpose.msra.mxu0 %v3884_v52 }
 0xde5   : > { %v3388_v27 = vpop.f32.mrf.mxu0 }
 0xded   : > { %v3390_v37 = vpop.f32.mrf.mxu0 }
 0xdf0   : > { %v3461_v31 = vpop.f32.mrf.mxu1 }
 0xdf1   : > { %v3462_v36 = vadd.f32 %v3461_v31, %v6287_v2 }
 0xdf3   : > { %v3475_v8 = vsel %vm1779_vm10, %v3462_v36, -inf }
 0xdf4   : > { %3476 = vmax.xlane.f32.xlu2 %v3475_v8 }
 0xdf5   : > { %v3403_v46 = vpop.xlane.xlu1 %3402 }
 0xdf6   : > { %5769 = vrcp.f32 %v3403_v46 }
 0xdf7   : > { %5771 = vrcp.f32 %v3406_v45 }
 0xdf8   : > { %v3463_v30 = vpop.f32.mrf.mxu1 }
 0xdf9   : > { %v3464_v60 = vadd.f32 %v3463_v30, %v6291_v11 }
 0xdfb   : > { %v3478_v48 = vsel %vm1779_vm10, %v3464_v60, -inf }
 0xdfc   : > { %v5770_v4 = vpop.eup %5769  ;;  %3479 = vmax.xlane.f32.xlu0 %v3478_v48 }
 0xdfd   : > { %v3415_v39 = vmul.f32 %v5770_v4, %v3385_v32  ;;  %v5772_v1 = vpop.eup %5771 }
 0xdfe   : > { %v3416_v14 = vmul.f32 %v5772_v1, %v3388_v27 }
 0xdff   : > { %v3420_v54 = vpack.c.bf16 %v3415_v39, %v3414_v24 }
 0xe00   : > { %v3466_v26 = vpop.f32.mrf.mxu1  ;;  %v3421_v47 = vpack.c.bf16 %v3416_v14, %v3416_v14 }
 0xe01   : > { %v3467_v18 = vadd.f32 %v3466_v26, %v6295_v16  ;;  %5284 = vmatmul.msk.bf16.gmra.mxu0 %vm1737_vm8, %v3420_v54 }
 0xe03   : > { %v3481_v53 = vsel %vm1779_vm10, %v3467_v18, -inf }
 0xe04   : > { %3482 = vmax.xlane.f32.xlu1 %v3481_v53 }
 0xe08   : > { %v3468_v57 = vpop.f32.mrf.mxu1 }
 0xe09   : > { %v3469_v61 = vadd.f32 %v3468_v57, %v6299_v22 }
 0xe0b   : > { %v3484_v3 = vsel %vm1779_vm10, %v3469_v61, -inf }
 0xe0c   : > { %3485 = vmax.xlane.f32.xlu2 %v3484_v3 }
 0xe0d   : > { %v3661_v58 = vpop.permute.xlu1 %3660 }
 0xe0e   : > { %5286 = vmatmul.msk.bf16.vlgmr.msrb.gmra.mxu1 %vm1737_vm8, %v3661_v58 }
 0xe10   : > { %v3471_v51 = vpop.f32.mrf.mxu1  ;;  %3864 = vrot.lane.b32.xlu0 %v6797_v42, %s5916_s10 }
 0xe11   : > { %v3472_v34 = vadd.f32 %v3471_v51, %v6303_v6  ;;  %5285 = vmatmul.msk.bf16.gmra.mxu0 %vm1737_vm8, %v3421_v47 }
 0xe13   : > { %v3487_v0 = vsel %vm1779_vm10, %v3472_v34, -inf }
 0xe14   : > { %3488 = vmax.xlane.f32.xlu2 %v3487_v0 }
 0xe15   : > { %v3663_v7 = vpop.permute.xlu1 %3662 }
 0xe18   : > { %v3473_v38 = vpop.f32.mrf.mxu1 }
 0xe1d   : > { %v3516_v23 = vpop.permute.xlu1 %3515  ;;  %3748 = vrot.lane.b32.xlu1 %v6809_v63, %s5917_s7 }
 0xe1e   : > { %v3529_v10 = vsel %vm1825_vm7, %v3516_v23, 0  ;;  %5287 = vmatmul.msk.bf16.gmra.mxu1 %vm1737_vm8, %v3663_v7 }
 0xe1f   : > { %3536 = vmatpush.bf16.msra.mxu3 %v3529_v10 }
 0xe21   : > { %5299 = vmatmul.msk.bf16.vlgmr.msra.gmra.mxu0 %vm1737_vm8, %v3863_v28 }
 0xe25   : > { %v3514_v42 = vpop.permute.xlu1 %3513 }
 0xe26   : > { %3537 = vmatpush.bf16.msra.mxu3 %v3514_v42 }
 0xe2d   : > { %v3665_v12 = vpop.permute.xlu1 %3664 }
 0xe2e   : > { %5288 = vmatmul.msk.bf16.gmra.mxu1 %vm1737_vm8, %v3665_v12 }
 0xe35   : > { %v3512_v33 = vpop.permute.xlu1 %3511 }
 0xe36   : > { %3538 = vmatpush.bf16.msra.mxu3 %v3512_v33 }
 0xe4f   : > { %v6915_v56 = vpop.f32.mrf.mxu0 }
 0xe57   : > { %v6917_v45 = vpop.f32.mrf.mxu0 }
 0xe67   : > { %v3477_v13 = vpop.xlane.xlu2 %3476 }
 0xe68   : > { %v3490_v62 = vsub.f32 %v3462_v36, %v3477_v13 }
 0xe6a   : > { %v3495_v15 = vmul.f32 1.442695, %v3490_v62 }
 0xe6c   : > { %5773 = vpow2.f32 %v3495_v15 }
 0xe6f   : > { %v3480_v50 = vpop.xlane.xlu0 %3479 }
 0xe70   : > { %v3491_v21 = vsub.f32 %v3464_v60, %v3480_v50 }
 0xe72   : > { %v3497_v9 = vmul.f32 1.442695, %v3491_v21  ;;  %v5774_v43 = vpop.eup %5773 }
 0xe73   : > { %v3554_v23 = vsel %vm1779_vm10, %v5774_v43, 0.0 }
 0xe74   : > { %5775 = vpow2.f32 %v3497_v9 }
 0xe77   : > { %v3483_v5 = vpop.xlane.xlu1 %3482 }
 0xe78   : > { %v3492_v32 = vsub.f32 %v3467_v18, %v3483_v5 }
 0xe7a   : > { %v6919_v20 = vpop.eup %5775  ;;  %v3499_v27 = vmul.f32 1.442695, %v3492_v32 }
 0xe7b   : > { %v3505_v35 = vpack.c.bf16 %v6919_v20, %v5774_v43 }
 0xe7c   : > { %5777 = vpow2.f32 %v3499_v27 }
 0xe7d   : > { %5269 = vmatmul.msk.bf16.vlgmr.msra.gmra.mxu3 %vm1779_vm10, %v3505_v35 }
 0xe7e   : > { %v6923_v52 = vpop.f32.mrf.mxu0 }
 0xe7f   : > { %v3486_v37 = vpop.xlane.xlu2 %3485 }
 0xe80   : > { %v3493_v31 = vsub.f32 %v3469_v61, %v3486_v37 }
 0xe82   : > { %v3501_v36 = vmul.f32 1.442695, %v3493_v31  ;;  %v3865_v8 = vpop.permute.xlu0 %3864  ;;  %v6928_v60 = vpop.eup %5777 }
 0xe83   : > { %5300 = vmatmul.msk.bf16.gmra.mxu0 %vm1737_vm8, %v3865_v8  ;;  %v3560_v8 = vsel %vm1779_vm10, %v6928_v60, 0.0 }
 0xe84   : > { %5779 = vpow2.f32 %v3501_v36 }
 0xe86   : > { %v6926_v46 = vpop.f32.mrf.mxu0 }
 0xe87   : > { %v3489_v30 = vpop.xlane.xlu2 %3488 }
 0xe88   : > { %v3494_v48 = vsub.f32 %v3472_v34, %v3489_v30 }
 0xe8a   : > { %v5780_v59 = vpop.eup %5779  ;;  %v3503_v54 = vmul.f32 1.442695, %v3494_v48 }
 0xe8b   : > { %v3699_v4 = vpop.f32.mrf.mxu1  ;;  %v3506_v24 = vpack.c.bf16 %v5780_v59, %v6928_v60 }
 0xe8c   : > { %v3700_v39 = vadd.f32 %v3699_v4, %v6287_v2  ;;  %5781 = vpow2.f32 %v3503_v54 }
 0xe8d   : > { %5270 = vmatmul.msk.bf16.gmra.mxu3 %vm1779_vm10, %v3506_v24 }
 0xe8e   : > { %v6933_v26 = vpop.f32.mrf.mxu0  ;;  %v3713_v18 = vsel %vm1779_vm10, %v3700_v39, -inf }
 0xe8f   : > { %3714 = vmax.xlane.f32.xlu2 %v3713_v18 }
 0xe92   : > { %v5782_v14 = vpop.eup %5781 }
 0xe93   : > { %v3701_v53 = vpop.f32.mrf.mxu1  ;;  %v3507_v58 = vpack.c.bf16 %v5782_v14, %v5782_v14  ;;  %v3566_v13 = vsel %vm1779_vm10, %v5782_v14, 0.0 }
 0xe94   : > { %v3702_v57 = vadd.f32 %v3701_v53, %v6291_v11 }
 0xe96   : > { %v3658_v61 = vpop.f32.mrf.mxu0  ;;  %v3716_v1 = vsel %vm1779_vm10, %v3702_v57, -inf }
 0xe97   : > { %3717 = vmax.xlane.f32.xlu0 %v3716_v1 }
 0xe9b   : > { %v3704_v3 = vpop.f32.mrf.mxu1 }
 0xe9c   : > { %v6955_v28 = vadd.f32 %v3704_v3, %v6295_v16 }
 0xe9d   : > { %5271 = vmatmul.msk.bf16.gmra.mxu3 %vm1779_vm10, %v3507_v58 }
 0xe9e   : > { %v3901_v47 = vpop.f32.mrf.mxu0  ;;  %v3719_v42 = vsel %vm1779_vm10, %v6955_v28, -inf }
 0xe9f   : > { %v6967_v33 = vadd.f32 %v3901_v47, %v6287_v2  ;;  %v3557_v2 = vsel %vm1779_vm10, %v6919_v20, 0.0  ;;  %v3749_v20 = vpop.permute.xlu1 %3748 }
 0xea3   : > { %v3706_v51 = vpop.f32.mrf.mxu1 }
 0xea6   : > { %v3903_v34 = vpop.f32.mrf.mxu0 }
 0xea7   : > { %v6940_v0 = vadd.f32 %v3903_v34, %v6291_v11  ;;  %3750 = vrot.lane.b32.xlu2 %v6805_v44, %s5917_s7  ;;  %v3563_v11 = vsel %vm1779_vm10, %v5780_v59, 0.0 }
 0xea9   : > { %v3918_v7 = vsel %vm1779_vm10, %v6940_v0, -inf }
 0xeaa   : > { %3919 = vmax.xlane.f32.xlu1 %v3918_v7 }
 0xeab   : > { %v3709_v38 = vpop.f32.mrf.mxu1  ;;  %3952 = vrot.lane.b32.xlu0 %v6805_v44, %s5916_s10  ;;  %v6962_v44 = vadd.f32 %v3706_v51, %v6299_v22 }
 0xeac   : > { %v6973_v62 = vadd.f32 %v3709_v38, %v6303_v6 }
 0xead   : > { %v3722_v12 = vsel %vm1779_vm10, %v6962_v44, -inf }
 0xeb2   : > { %3555 = vadd.xlane.f32.xlu1 %v3554_v23 }
 0xeb3   : > { %v3711_v10 = vpop.f32.mrf.mxu1  ;;  %3746 = vrot.lane.b32.xlu0 %v6812_v40, %s5917_s7  ;;  %s7312_s7 = sld [smem:[#allocation18_spill]] }
 0xeba   : > { %3564 = vadd.xlane.f32.xlu1 %v3563_v11 }
 0xebb   : > { %3948 = vrot.lane.b32.xlu0 %v6812_v40, %s5916_s10  ;;  %v3915_v40 = vsel %vm1779_vm10, %v6967_v33, -inf }
 0xec2   : > { %3720 = vmax.xlane.f32.xlu1 %v3719_v42 }
 0xec3   : > { %3866 = vrot.lane.b32.xlu0 %v6801_v29, %s5916_s10  ;;  %v3725_v29 = vsel %vm1779_vm10, %v6973_v62, -inf }
 0xeca   : > { %3723 = vmax.xlane.f32.xlu1 %v3722_v12 }
 0xed0   : > { %3916 = vmax.xlane.f32.xlu2 %v3915_v40 }
 0xed2   : > { %3567 = vadd.xlane.f32.xlu1 %v3566_v13 }
 0xeda   : > { %3726 = vmax.xlane.f32.xlu1 %v3725_v29 }
 0xee8   : > { %3950 = vrot.lane.b32.xlu2 %v6809_v63, %s5916_s10  ;;  %s7311_s10 = sld [smem:[#allocation17_spill]] }
 0xeed   : > { %3558 = vadd.xlane.f32.xlu0 %v3557_v2 }
 0xf00   : > { %v6981_v15 = vpop.f32.mrf.mxu3  ;;  %v3906_v48 = vpop.f32.mrf.mxu0 }
 0xf01   : > { %v6993_v24 = vadd.f32 %v3906_v48, %v6295_v16 }
 0xf02   : > { %v3715_v50 = vpop.xlane.xlu2 %3714 }
 0xf03   : > { %v3728_v21 = vsub.f32 %v3700_v39, %v3715_v50 }
 0xf05   : > { %v3733_v9 = vmul.f32 1.442695, %v3728_v21 }
 0xf07   : > { %5783 = vpow2.f32 %v3733_v9 }
 0xf08   : > { %v6983_v5 = vpop.f32.mrf.mxu3 }
 0xf0a   : > { %v3718_v43 = vpop.xlane.xlu0 %3717  ;;  %v3751_v35 = vpop.permute.xlu2 %3750 }
 0xf0b   : > { %v3729_v32 = vsub.f32 %v3702_v57, %v3718_v43  ;;  %v3764_v27 = vsel %vm1825_vm7, %v3751_v35, 0  ;;  %v3921_v57 = vsel %vm1779_vm10, %v6993_v24, -inf  ;;  %v5497_v43 = vld [vmem:[%s7306_s23 + $0x8] sm:$0xff] }
 0xf0c   : > { %3771 = vmatpush.bf16.msrb.mxu3 %v3764_v27  ;;  %3606 = vmatpush.bf16.msra.mxu2 %v5497_v43 }
 0xf0d   : > { %v5784_v37 = vpop.eup %5783  ;;  %v3735_v63 = vmul.f32 1.442695, %v3729_v32 }
 0xf0e   : > { %v3789_v31 = vsel %vm1779_vm10, %v5784_v37, 0.0 }
 0xf0f   : > { %5785 = vpow2.f32 %v3735_v63  ;;  %3790 = vadd.xlane.f32.xlu0 %v3789_v31 }
 0xf10   : > { %v6987_v36 = vpop.f32.mrf.mxu3  ;;  %3772 = vmatpush.bf16.msrb.mxu3 %v3749_v20  ;;  %v3908_v20 = vpop.f32.mrf.mxu0 }
 0xf11   : > { %3561 = vadd.xlane.f32.xlu2 %v3560_v8 }
 0xf15   : > { %v5786_v30 = vpop.eup %5785 }
 0xf16   : > { %v3792_v59 = vsel %vm1779_vm10, %v5786_v30, 0.0  ;;  %v3743_v3 = vpack.c.bf16 %v5786_v30, %v5784_v37 }
 0xf17   : > { %3793 = vadd.xlane.f32.xlu1 %v3792_v59  ;;  %v3909_v59 = vadd.f32 %v3908_v20, %v6299_v22 }
 0xf18   : > { %v3547_v4 = vpop.f32.mrf.mxu3 }
 0xf19   : > { %v3924_v48 = vsel %vm1779_vm10, %v3909_v59, -inf }
 0xf1d   : > { %v3920_v39 = vpop.xlane.xlu1 %3919  ;;  %v3953_v54 = vpop.permute.xlu0 %3952 }
 0xf1e   : > { %v3931_v18 = vsub.f32 %v6940_v0, %v3920_v39  ;;  %v3966_v53 = vsel %vm1825_vm7, %v3953_v54, 0 }
 0xf1f   : > { %3973 = vmatpush.bf16.msra.mxu1 %v3966_v53  ;;  %3922 = vmax.xlane.f32.xlu1 %v3921_v57 }
 0xf20   : > { %v3937_v60 = vmul.f32 1.442695, %v3931_v18  ;;  %v3550_v61 = vpop.f32.mrf.mxu3 }
 0xf22   : > { %5787 = vpow2.f32 %v3937_v60 }
 0xf25   : > { %v3747_v1 = vpop.permute.xlu0 %3746  ;;  %v3556_v14 = vpop.xlane.xlu1 %3555 }
 0xf26   : > { %3773 = vmatpush.bf16.msrb.mxu3 %v3747_v1 }
 0xf28   : > { %v5788_v16 = vpop.eup %5787  ;;  %v3552_v58 = vpop.f32.mrf.mxu3 }
 0xf29   : > { %5289 = vmatmul.msk.bf16.vlgmr.msrb.gmra.mxu3 %vm1779_vm10, %v3743_v3  ;;  %v3994_v47 = vsel %vm1779_vm10, %v5788_v16, 0.0  ;;  %v5498_v58 = vld [vmem:[%s7306_s23 + $0x10] sm:$0xff] }
 0xf2a   : > { %3995 = vadd.xlane.f32.xlu0 %v3994_v47  ;;  %3841 = vmatpush.bf16.msrb.mxu2 %v5498_v58 }
 0xf2d   : > { %v3949_v51 = vpop.permute.xlu0 %3948  ;;  %v3565_v34 = vpop.xlane.xlu1 %3564 }
 0xf2e   : > { %5789 = vrcp.f32 %v3565_v34 }
 0xf34   : > { %v5790_v0 = vpop.eup %5789 }
 0xf35   : > { %v7001_v7 = vmul.f32 %v5790_v0, %v3547_v4  ;;  %v3867_v38 = vpop.permute.xlu0 %3866  ;;  %v3721_v23 = vpop.xlane.xlu1 %3720 }
 0xf36   : > { %v3730_v10 = vsub.f32 %v6955_v28, %v3721_v23  ;;  %5301 = vmatmul.msk.bf16.gmra.mxu0 %vm1737_vm8, %v3867_v38 }
 0xf38   : > { %v3737_v11 = vmul.f32 1.442695, %v3730_v10 }
 0xf3a   : > { %5791 = vpow2.f32 %v3737_v11 }
 0xf3d   : > { %v3724_v42 = vpop.xlane.xlu1 %3723 }
 0xf3e   : > { %v3731_v12 = vsub.f32 %v6962_v44, %v3724_v42 }
 0xf40   : > { %v5792_v40 = vpop.eup %5791  ;;  %v3739_v13 = vmul.f32 1.442695, %v3731_v12 }
 0xf41   : > { %v3795_v29 = vsel %vm1779_vm10, %v5792_v40, 0.0 }
 0xf42   : > { %5793 = vpow2.f32 %v3739_v13  ;;  %3796 = vadd.xlane.f32.xlu1 %v3795_v29 }
 0xf43   : > { %v3917_v2 = vpop.xlane.xlu2 %3916 }
 0xf44   : > { %v3930_v50 = vsub.f32 %v6967_v33, %v3917_v2 }
 0xf45   : > { %v3568_v21 = vpop.xlane.xlu1 %3567 }
 0xf46   : > { %v3935_v9 = vmul.f32 1.442695, %v3930_v50  ;;  %5795 = vrcp.f32 %v3568_v21 }
 0xf48   : > { %v5794_v28 = vpop.eup %5793  ;;  %5797 = vpow2.f32 %v3935_v9 }
 0xf49   : > { %v3744_v35 = vpack.c.bf16 %v5794_v28, %v5792_v40 }
 0xf4b   : > { %5290 = vmatmul.msk.bf16.gmra.mxu3 %vm1779_vm10, %v3744_v35  ;;  %v3951_v44 = vpop.permute.xlu2 %3950 }
 0xf4c   : > { %v5796_v32 = vpop.eup %5795  ;;  %3974 = vmatpush.bf16.msra.mxu1 %v3951_v44 }
 0xf4d   : > { %v3578_v27 = vmul.f32 %v5796_v32, %v3550_v61  ;;  %v3727_v37 = vpop.xlane.xlu1 %3726 }
 0xf4e   : > { %v5798_v63 = vpop.eup %5797  ;;  %v3732_v31 = vsub.f32 %v6973_v62, %v3727_v37  ;;  %v3798_v62 = vsel %vm1779_vm10, %v5794_v28, 0.0 }
 0xf4f   : > { %v3991_v33 = vsel %vm1779_vm10, %v5798_v63, 0.0  ;;  %v3945_v30 = vpack.c.bf16 %v5788_v16, %v5798_v63  ;;  %v3583_v47 = vpack.c.bf16 %v3578_v27, %v3578_v27 }
 0xf50   : > { %v3741_v8 = vmul.f32 1.442695, %v3732_v31  ;;  %3992 = vadd.xlane.f32.xlu2 %v3991_v33  ;;  %3975 = vmatpush.bf16.msra.mxu1 %v3949_v51 }
 0xf52   : > { %5799 = vpow2.f32 %v3741_v8 }
 0xf53   : > { %5302 = vmatmul.msk.bf16.vlgmr.msra.gmra.mxu1 %vm1779_vm10, %v3945_v30  ;;  %5801 = vrcp.f32 %v3556_v14 }
 0xf58   : > { %v5800_v4 = vpop.eup %5799  ;;  %3925 = vmax.xlane.f32.xlu2 %v3924_v48 }
 0xf59   : > { %v3745_v39 = vpack.c.bf16 %v5800_v4, %v5800_v4  ;;  %v5802_v18 = vpop.eup %5801  ;;  %v3801_v22 = vsel %vm1779_vm10, %v5800_v4, 0.0 }
 0xf5a   : > { %v3574_v57 = vmul.f32 %v5802_v18, %v6981_v15 }
 0xf5b   : > { %5291 = vmatmul.msk.bf16.gmra.mxu3 %vm1779_vm10, %v3745_v39 }
 0xf60   : > { %v3559_v54 = vpop.xlane.xlu0 %3558  ;;  %3799 = vadd.xlane.f32.xlu2 %v3798_v62 }
 0xf61   : > { %5803 = vrcp.f32 %v3559_v54 }
 0xf67   : > { %v5804_v53 = vpop.eup %5803 }
 0xf68   : > { %v3575_v60 = vmul.f32 %v5804_v53, %v6983_v5  ;;  %3802 = vadd.xlane.f32.xlu2 %v3801_v22 }
 0xf6a   : > { %v3581_v61 = vpack.c.bf16 %v3575_v60, %v3574_v57 }
 0xf6c   : > { %5276 = vmatmul.msk.bf16.vlgmr.msra.gmra.mxu2 %vm1737_vm8, %v3581_v61 }
 0xf82   : > { %v3791_v15 = vpop.xlane.xlu0 %3790 }
 0xf84   : > { %v3562_v1 = vpop.xlane.xlu2 %3561 }
 0xf85   : > { %5805 = vrcp.f32 %v3562_v1 }
 0xf86   : > { %5807 = vrcp.f32 %v3791_v15 }
 0xf8a   : > { %v3794_v51 = vpop.xlane.xlu1 %3793 }
 0xf8b   : > { %v5806_v14 = vpop.eup %5805  ;;  %5809 = vrcp.f32 %v3794_v51 }
 0xf8c   : > { %v3576_v3 = vmul.f32 %v5806_v14, %v6987_v36  ;;  %v5808_v36 = vpop.eup %5807 }
 0xf8e   : > { %v3582_v16 = vpack.c.bf16 %v7001_v7, %v3576_v3 }
 0xf90   : > { %5277 = vmatmul.msk.bf16.gmra.mxu2 %vm1737_vm8, %v3582_v16 }
 0xf91   : > { %v5810_v7 = vpop.eup %5809 }
 0xf92   : > { %v3923_v5 = vpop.xlane.xlu1 %3922 }
 0xf93   : > { %v3932_v0 = vsub.f32 %v6993_v24, %v3923_v5  ;;  %v5499_v24 = vld [vmem:[%s7306_s23 + $0x18] sm:$0xff] }
 0xf94   : > { %4043 = vmatpush.bf16.msra.mxu3 %v5499_v24 }
 0xf95   : > { %v3939_v38 = vmul.f32 1.442695, %v3932_v0 }
 0xf97   : > { %5811 = vpow2.f32 %v3939_v38 }
 0xf9d   : > { %v5812_v29 = vpop.eup %5811  ;;  %v3996_v28 = vpop.xlane.xlu0 %3995 }
 0xf9e   : > { %v3997_v50 = vsel %vm1779_vm10, %v5812_v29, 0.0 }
 0xfa0   : > { %5278 = vmatmul.msk.bf16.gmra.mxu2 %vm1737_vm8, %v3583_v47 }
 0xfac   : > { %v3775_v34 = vpop.f32.mrf.mxu3 }
 0xfad   : > { %v3809_v42 = vmul.f32 %v5808_v36, %v3775_v34 }
 0xfb3   : > { %v3911_v23 = vpop.f32.mrf.mxu0 }
 0xfb4   : > { %v7028_v10 = vadd.f32 %v3911_v23, %v6303_v6  ;;  %v3777_v11 = vpop.f32.mrf.mxu3 }
 0xfb5   : > { %v3810_v12 = vmul.f32 %v5810_v7, %v3777_v11  ;;  %v3797_v44 = vpop.xlane.xlu1 %3796 }
 0xfb6   : > { %v3927_v40 = vsel %vm1779_vm10, %v7028_v10, -inf }
 0xfb7   : > { %v3816_v13 = vpack.c.bf16 %v3810_v12, %v3809_v42  ;;  %3928 = vmax.xlane.f32.xlu0 %v3927_v40 }
 0xfb9   : > { %5296 = vmatmul.msk.bf16.vlgmr.msrb.gmra.mxu2 %vm1737_vm8, %v3816_v13 }
 0xfbb   : > { %v3913_v2 = vpop.f32.mrf.mxu0 }
 0xfbf   : > { %3998 = vadd.xlane.f32.xlu0 %v3997_v50 }
 0xfc3   : > { %v3993_v6 = vpop.xlane.xlu2 %3992 }
 0xfcb   : > { %v3926_v21 = vpop.xlane.xlu2 %3925 }
 0xfcc   : > { %v3933_v9 = vsub.f32 %v3909_v59, %v3926_v21  ;;  %v5616_v21 = vld [vmem:[%s7307_s26] ss:$0 sm:$0xff] }
 0xfce   : > { %v3941_v43 = vmul.f32 1.442695, %v3933_v9  ;;  %v3780_v35 = vpop.f32.mrf.mxu3 }
 0xfd0   : > { %5813 = vpow2.f32 %v3941_v43  ;;  %v3977_v32 = vpop.f32.mrf.mxu1 }
 0xfd1   : > { %5815 = vrcp.f32 %v3996_v28 }
 0xfd2   : > { %5817 = vrcp.f32 %v3993_v6 }
 0xfd3   : > { %5819 = vrcp.f32 %v3797_v44  ;;  %v3800_v27 = vpop.xlane.xlu2 %3799 }
 0xfd4   : > { %5821 = vrcp.f32 %v3800_v27 }
 0xfd6   : > { %v5814_v37 = vpop.eup %5813  ;;  %v3782_v63 = vpop.f32.mrf.mxu3 }
 0xfd7   : > { %v5816_v31 = vpop.eup %5815  ;;  %v4000_v33 = vsel %vm1779_vm10, %v5814_v37, 0.0  ;;  %v3946_v20 = vpack.c.bf16 %v5814_v37, %v5812_v29 }
 0xfd8   : > { %v5818_v8 = vpop.eup %5817  ;;  %v3979_v30 = vpop.f32.mrf.mxu1  ;;  %4001 = vadd.xlane.f32.xlu1 %v4000_v33 }
 0xfd9   : > { %v5820_v59 = vpop.eup %5819  ;;  %v4011_v48 = vmul.f32 %v5818_v8, %v3977_v32  ;;  %v4012_v4 = vmul.f32 %v5816_v31, %v3979_v30  ;;  %5303 = vmatmul.msk.bf16.gmra.mxu1 %vm1779_vm10, %v3946_v20 }
 0xfda   : > { %v5822_v39 = vpop.eup %5821  ;;  %v3811_v62 = vmul.f32 %v5820_v59, %v3780_v35 }
 0xfdb   : > { %v3812_v54 = vmul.f32 %v5822_v39, %v3782_v63  ;;  %v4018_v18 = vpack.c.bf16 %v4012_v4, %v4011_v48  ;;  %v3803_v22 = vpop.xlane.xlu2 %3802 }
 0xfdc   : > { %5823 = vrcp.f32 %v3803_v22 }
 0xfdd   : > { %v3817_v53 = vpack.c.bf16 %v3812_v54, %v3811_v62  ;;  %5309 = vmatmul.msk.bf16.vlgmr.msra.gmra.mxu3 %vm1737_vm8, %v4018_v18 }
 0xfde   : > { %v3785_v57 = vpop.f32.mrf.mxu3 }
 0xfdf   : > { %5297 = vmatmul.msk.bf16.gmra.mxu2 %vm1737_vm8, %v3817_v53 }
 0xfe2   : > { %v5824_v60 = vpop.eup %5823 }
 0xfe3   : > { %v3813_v1 = vmul.f32 %v5824_v60, %v3785_v57 }
 0xfe5   : > { %v3818_v14 = vpack.c.bf16 %v3813_v1, %v3813_v1 }
 0xfe6   : > { %v3787_v61 = vpop.f32.mrf.mxu3 }
 0xfef   : > { %5298 = vmatmul.msk.bf16.gmra.mxu2 %vm1737_vm8, %v3818_v14  ;;  %v3608_v3 = vpop.f32.mrf.mxu2 }
 0xff7   : > { %v3610_v16 = vpop.f32.mrf.mxu2 }
 0xff8   : > { %v3649_v37 = vadd.f32 %v6917_v45, %v3610_v16 }
0x1013   : > { %v3613_v58 = vpop.f32.mrf.mxu2 }
0x1014   : > { %v3652_v28 = vadd.f32 %v6923_v52, %v3613_v58 }
0x101b   : > { %v3615_v47 = vpop.f32.mrf.mxu2 }
0x101c   : > { %v3654_v20 = vadd.f32 %v6926_v46, %v3615_v47 }
0x1023   : > { %v3618_v51 = vpop.f32.mrf.mxu2 }
0x1024   : > { %v3657_v45 = vadd.f32 %v6933_v26, %v3618_v51 }
0x102a   : > { %v3929_v15 = vpop.xlane.xlu0 %3928 }
0x102b   : > { %v3934_v5 = vsub.f32 %v7028_v10, %v3929_v15  ;;  %v3620_v34 = vpop.f32.mrf.mxu2  ;;  %v3647_v10 = vadd.f32 %v6915_v56, %v3608_v3 }
0x102d   : > { %v3943_v0 = vmul.f32 1.442695, %v3934_v5 }
0x102f   : > { %5825 = vpow2.f32 %v3943_v0 }
0x1032   : > { %v3999_v11 = vpop.xlane.xlu0 %3998 }
0x1033   : > { %5827 = vrcp.f32 %v3999_v11 }
0x1035   : > { %v5826_v38 = vpop.eup %5825 }
0x1036   : > { %v4003_v36 = vsel %vm1779_vm10, %v5826_v38, 0.0  ;;  %v3947_v23 = vpack.c.bf16 %v5826_v38, %v5826_v38 }
0x1037   : > { %4004 = vadd.xlane.f32.xlu0 %v4003_v36 }
0x1038   : > { %5304 = vmatmul.msk.bf16.gmra.mxu1 %vm1779_vm10, %v3947_v23 }
0x1039   : > { %v5828_v13 = vpop.eup %5827 }
0x103c   : > { %v3843_v7 = vpop.f32.mrf.mxu2 }
0x103d   : > { %v3857_v2 = vadd.f32 %v3843_v7, %v3647_v10 }
0x1044   : > { %v3845_v40 = vpop.f32.mrf.mxu2 }
0x1045   : > { %v3858_v63 = vadd.f32 %v3845_v40, %v3649_v37 }
0x104b   : > { %v4002_v42 = vpop.xlane.xlu1 %4001 }
0x104c   : > { %5829 = vrcp.f32 %v4002_v42 }
0x1052   : > { %v5830_v24 = vpop.eup %5829 }
0x1056   : > { %v3982_v12 = vpop.f32.mrf.mxu1 }
0x1057   : > { %v4013_v50 = vmul.f32 %v5828_v13, %v3982_v12 }
0x105e   : > { %v3984_v29 = vpop.f32.mrf.mxu1 }
0x105f   : > { %v4014_v6 = vmul.f32 %v5830_v24, %v3984_v29  ;;  %v5322_v24 = vld [vmem:[%s7308_s28 + $0x10] sm:$0xf]  ;;  %v5502_v29 = vld [vmem:[%s7308_s28 + $0x14] sm:$0xf] }
0x1060   : > { %v4045_v9 = vpop.f32.mrf.mxu3 }
0x1061   : > { %v4019_v43 = vpack.c.bf16 %v4014_v6, %v4013_v50  ;;  %v4059_v35 = vadd.f32 %v4045_v9, %v3857_v2  ;;  %v5324_v50 = vld [vmem:[%s7308_s28 + $0x18] sm:$0xf0] }
0x1062   : > { %v3848_v44 = vpop.f32.mrf.mxu2  ;;  %v5327_v9 = vor.u32 %v5502_v29, %v5324_v50 }
0x1063   : > { %v4068_v32 = vadd.f32 %v5616_v21, %v4059_v35  ;;  %v3859_v27 = vadd.f32 %v3848_v44, %v3652_v28  ;;  %5310 = vmatmul.msk.bf16.gmra.mxu3 %vm1737_vm8, %v4019_v43  ;;  %v5501_v28 = vld [vmem:[%s7308_s28 + $0x4] sm:$0xf0]  ;;  %v5500_v43 = vld [vmem:[%s7308_s28 + $0x4] sm:$0xf] }
0x1064   : > { %4277 = vmatpush.bf16.msrb.mxu0 %v5327_v9 }
0x1065   : > { %v4073_v56 = vadd.f32 %v4068_v32, %v6762_v49  ;;  %v5316_v32 = vld [vmem:[%s7308_s28 + $0x8] sm:$0xf0] }
0x1067   : > { %v4080_v31 = vsel %vm1076_vm0, %v4073_v56, 0.0 }
0x1068   : > { %v4047_v33 = vpop.f32.mrf.mxu3  ;;  %4081 = vadd.xlane.f32.xlu1 %v4080_v31 }
0x1069   : > { %v4060_v8 = vadd.f32 %v4047_v33, %v3858_v63 }
0x106a   : > { %v3850_v52 = vpop.f32.mrf.mxu2 }
0x106b   : > { %v4069_v30 = vadd.f32 %v5616_v21, %v4060_v8  ;;  %v3860_v59 = vadd.f32 %v3850_v52, %v3654_v20 }
0x106d   : > { %v4074_v48 = vadd.f32 %v4069_v30, %v6764_v55 }
0x106f   : > { %v4083_v4 = vsel %vm1076_vm0, %v4074_v48, 0.0 }
0x1070   : > { %4084 = vadd.xlane.f32.xlu2 %v4083_v4 }
0x1072   : > { %v3853_v39 = vpop.f32.mrf.mxu2 }
0x1073   : > { %v3861_v49 = vadd.f32 %v3853_v39, %v3657_v45 }
0x107a   : > { %v3855_v62 = vpop.f32.mrf.mxu2 }
0x10aa   : > { %v4005_v54 = vpop.xlane.xlu0 %4004 }
0x10ab   : > { %5831 = vrcp.f32 %v4005_v54 }
0x10b1   : > { %v5832_v18 = vpop.eup %5831 }
0x10b5   : > { %v3987_v53 = vpop.f32.mrf.mxu1 }
0x10b6   : > { %v4015_v22 = vmul.f32 %v5832_v18, %v3987_v53 }
0x10b8   : > { %v4020_v46 = vpack.c.bf16 %v4015_v22, %v4015_v22 }
0x10ba   : > { %5311 = vmatmul.msk.bf16.gmra.mxu3 %vm1737_vm8, %v4020_v46 }
0x10bd   : > { %v3989_v57 = vpop.f32.mrf.mxu1 }
0x10db   : > { %v4082_v60 = vpop.xlane.xlu1 %4081 }
0x10dc   : > { %v4095_v55 = vmul.f32 %v4082_v60, %v6169_v25 }
0x10de   : > { %v7056_v61 = vsub.f32 %v4073_v56, %v4095_v55 }
0x10e0   : > { %v4105_v26 = vmul.f32 %v7056_v61, %v7056_v61 }
0x10e2   : > { %v4110_v1 = vsel %vm1076_vm0, %v4105_v26, 0.0 }
0x10e3   : > { %4111 = vadd.xlane.f32.xlu0 %v4110_v1  ;;  %v4085_v14 = vpop.xlane.xlu2 %4084  ;;  %v7095_v1 = vld [vmem:[%s7309_s1] ss:$0 sm:$0xff] }
0x10e4   : > { %v4096_v3 = vmul.f32 %v4085_v14, %v6169_v25 }
0x10e6   : > { %v7062_v16 = vsub.f32 %v4074_v48, %v4096_v3  ;;  %v4050_v58 = vpop.f32.mrf.mxu3 }
0x10e7   : > { %v4061_v47 = vadd.f32 %v4050_v58, %v3859_v27  ;;  %v5319_v27 = vor.u32 %v5500_v43, %v5316_v32  ;;  %v7121_v43 = vld [vmem:[%s7311_s10] sm:$0x3] }
0x10e8   : > { %v4106_v51 = vmul.f32 %v7062_v16, %v7062_v16  ;;  %v7125_v32 = vperm.slane %v7121_v43, 1 }
0x10e9   : > { %v4070_v15 = vadd.f32 %v5616_v21, %v4061_v47  ;;  %4278 = vmatpush.bf16.msrb.mxu0 %v5319_v27  ;;  %v7099_v47 = vld [vmem:[%s7310_s2] ss:$0 sm:$0xff] }
0x10ea   : > { %v4113_v5 = vsel %vm1076_vm0, %v4106_v51, 0.0 }
0x10eb   : > { %4114 = vadd.xlane.f32.xlu1 %v4113_v5  ;;  %v4075_v34 = vadd.f32 %v4070_v15, %v6777_v41 }
0x10ed   : > { %v4086_v0 = vsel %vm1076_vm0, %v4075_v34, 0.0 }
0x10ee   : > { %v4052_v38 = vpop.f32.mrf.mxu3  ;;  %4087 = vadd.xlane.f32.xlu2 %v4086_v0 }
0x10ef   : > { %v4062_v36 = vadd.f32 %v4052_v38, %v3860_v59 }
0x10f1   : > { %v4071_v23 = vadd.f32 %v5616_v21, %v4062_v36 }
0x10f3   : > { %v4076_v7 = vadd.f32 %v4071_v23, %v6779_v17  ;;  %v5503_v17 = vld [vmem:[%s7308_s28 + $0x14] sm:$0xf0] }
0x10f4   : > { %v5323_v2 = vor.u32 %v5503_v17, %v5322_v24 }
0x10f5   : > { %v4089_v11 = vsel %vm1076_vm0, %v4076_v7, 0.0 }
0x10f6   : > { %4090 = vadd.xlane.f32.xlu0 %v4089_v11  ;;  %4254 = vmatpush.bf16.msra.mxu2 %v5323_v2 }
0x113d   : > { %v4055_v42 = vpop.f32.mrf.mxu3 }
0x113e   : > { %v4063_v12 = vadd.f32 %v4055_v42, %v3861_v49 }
0x1140   : > { %v4072_v40 = vadd.f32 %v5616_v21, %v4063_v12 }
0x1142   : > { %v7072_v41 = vadd.f32 %v4072_v40, %v6787_v19  ;;  %v5314_v19 = vld [vmem:[%s7308_s28] sm:$0xf] }
0x1143   : > { %v5315_v44 = vor.u32 %v5501_v28, %v5314_v19 }
0x1144   : > { %v4092_v13 = vsel %vm1076_vm0, %v7072_v41, 0.0 }
0x1145   : > { %v4057_v10 = vpop.f32.mrf.mxu3  ;;  %4093 = vadd.xlane.f32.xlu1 %v4092_v13  ;;  %4255 = vmatpush.bf16.msra.mxu2 %v5315_v44 }
0x1156   : > { %v4112_v6 = vpop.xlane.xlu0 %4111 }
0x1157   : > { %v4125_v21 = vmul.f32 %v4112_v6, %v6169_v25 }
0x1159   : > { %v4130_v35 = vadd.f32 1e-05, %v4125_v21 }
0x115b   : > { %5833 = vrsqrt.f32 %v4130_v35  ;;  %vm4141_vm8 = vweird.f32 %v4130_v35 }
0x115e   : > { %v4115_v37 = vpop.xlane.xlu1 %4114 }
0x115f   : > { %v4126_v56 = vmul.f32 %v4115_v37, %v6169_v25 }
0x1161   : > { %v5834_v63 = vpop.eup %5833  ;;  %v4131_v31 = vadd.f32 1e-05, %v4126_v56  ;;  %v4088_v33 = vpop.xlane.xlu2 %4087 }
0x1162   : > { %v4136_v20 = vmul.f32 %v5834_v63, %v4130_v35  ;;  %v4097_v8 = vmul.f32 %v4088_v33, %v6169_v25  ;;  %vm4142_vm7 = vweird.f32 %v5834_v63 }
0x1163   : > { %5835 = vrsqrt.f32 %v4131_v31  ;;  %vm4143_vm10 = vmor %vm4141_vm8, %vm4142_vm7  ;;  %vm4151_vm11 = vweird.f32 %v4131_v31 }
0x1164   : > { %v4137_v52 = vmul.f32 %v5834_v63, %v4136_v20  ;;  %v7087_v30 = vsub.f32 %v4075_v34, %v4097_v8 }
0x1166   : > { %v4138_v59 = vmul.f32 0.5, %v4137_v52  ;;  %v4107_v48 = vmul.f32 %v7087_v30, %v7087_v30 }
0x1168   : > { %v4139_v4 = vsub.f32 1.5, %v4138_v59  ;;  %v4116_v45 = vsel %vm1076_vm0, %v4107_v48, 0.0  ;;  %v5511_v48 = vld [vmem:[%s7312_s7 + $0x38] sm:$0xff] }
0x1169   : > { %v5836_v39 = vpop.eup %5835  ;;  %v4091_v49 = vpop.xlane.xlu0 %4090  ;;  %4117 = vadd.xlane.f32.xlu2 %v4116_v45  ;;  %4570 = vmatpush.bf16.msrb.mxu1 %v5511_v48 }
0x116a   : > { %v4140_v62 = vmul.f32 %v5834_v63, %v4139_v4  ;;  %v4146_v54 = vmul.f32 %v5836_v39, %v4131_v31  ;;  %v4098_v18 = vmul.f32 %v4091_v49, %v6169_v25  ;;  %vm4152_vm9 = vweird.f32 %v5836_v39 }
0x116b   : > { %vm4153_vm12 = vmor %vm4151_vm11, %vm4152_vm9 }
0x116c   : > { %v4147_v53 = vmul.f32 %v5836_v39, %v4146_v54  ;;  %v4103_v22 = vsub.f32 %v4076_v7, %v4098_v18  ;;  %v4144_v46 = vsel %vm4143_vm10, %v5834_v63, %v4140_v62  ;;  %v5510_v54 = vld [vmem:[%s7312_s7 + $0x30] sm:$0xff] }
0x116d   : > { %v4185_v14 = vmul.f32 %v4144_v46, %v7056_v61  ;;  %4571 = vmatpush.bf16.msrb.mxu1 %v5510_v54 }
0x116e   : > { %v4148_v57 = vmul.f32 0.5, %v4147_v53  ;;  %v4108_v60 = vmul.f32 %v4103_v22, %v4103_v22 }
0x116f   : > { %v4193_v51 = vmul.f32 %v7095_v1, %v4185_v14 }
0x1170   : > { %v4149_v55 = vsub.f32 1.5, %v4148_v57  ;;  %v4119_v26 = vsel %vm1076_vm0, %v4108_v60, 0.0 }
0x1171   : > { %4120 = vadd.xlane.f32.xlu0 %v4119_v26  ;;  %v7105_v34 = vadd.f32 %v7099_v47, %v4193_v51  ;;  %v5508_v26 = vld [vmem:[%s7312_s7 + $0x20] sm:$0xff] }
0x1172   : > { %v4150_v3 = vmul.f32 %v5836_v39, %v4149_v55 }
0x1174   : > { %v4154_v58 = vsel %vm4153_vm12, %v5836_v39, %v4150_v3 }
0x1175   : > { %v4186_v15 = vmul.f32 %v4154_v58, %v7062_v16 }
0x1177   : > { %v4194_v5 = vmul.f32 %v7095_v1, %v4186_v15  ;;  %v5507_v15 = vld [vmem:[%s7312_s7 + $0x18] sm:$0xff] }
0x1179   : > { %v4202_v0 = vadd.f32 %v7099_v47, %v4194_v5 }
0x117b   : > { %v4210_v61 = vpack.c.bf16 %v4202_v0, %v7105_v34 }
0x117d   : > { %5328 = vmatmul.msk.bf16.vlgmr.msra.gmra.mxu2 %vm1076_vm0, %v4210_v61  ;;  %5331 = vmatmul.msk.bf16.vlgmr.msrb.gmra.mxu0 %vm1076_vm0, %v4210_v61 }
0x11b8   : > { %v4094_v38 = vpop.xlane.xlu1 %4093 }
0x11b9   : > { %v4099_v36 = vmul.f32 %v4094_v38, %v6169_v25 }
0x11bb   : > { %v7113_v23 = vsub.f32 %v7072_v41, %v4099_v36  ;;  %v5506_v36 = vld [vmem:[%s7312_s7 + $0x10] sm:$0xff] }
0x11bd   : > { %v4109_v16 = vmul.f32 %v7113_v23, %v7113_v23 }
0x11bf   : > { %v4122_v7 = vsel %vm1076_vm0, %v4109_v16, 0.0 }
0x11c0   : > { %4123 = vadd.xlane.f32.xlu1 %v4122_v7 }
0x11dc   : > { %v4118_v11 = vpop.xlane.xlu2 %4117 }
0x11dd   : > { %v4127_v42 = vmul.f32 %v4118_v11, %v6169_v25 }
0x11df   : > { %v4132_v12 = vadd.f32 1e-05, %v4127_v42 }
0x11e1   : > { %5837 = vrsqrt.f32 %v4132_v12  ;;  %vm4161_vm14 = vweird.f32 %v4132_v12 }
0x11e4   : > { %v4121_v40 = vpop.xlane.xlu0 %4120 }
0x11e5   : > { %v4128_v13 = vmul.f32 %v4121_v40, %v6169_v25 }
0x11e7   : > { %v5838_v10 = vpop.eup %5837  ;;  %v4133_v24 = vadd.f32 1e-05, %v4128_v13 }
0x11e8   : > { %v4156_v17 = vmul.f32 %v5838_v10, %v4132_v12  ;;  %vm4162_vm13 = vweird.f32 %v5838_v10 }
0x11e9   : > { %5839 = vrsqrt.f32 %v4133_v24  ;;  %vm4163_vm15 = vmor %vm4161_vm14, %vm4162_vm13  ;;  %vm4171_vm2 = vweird.f32 %v4133_v24 }
0x11ea   : > { %v4157_v41 = vmul.f32 %v5838_v10, %v4156_v17 }
0x11ec   : > { %v4158_v29 = vmul.f32 0.5, %v4157_v41 }
0x11ee   : > { %v4159_v2 = vsub.f32 1.5, %v4158_v29 }
0x11ef   : > { %v5840_v50 = vpop.eup %5839 }
0x11f0   : > { %v4160_v6 = vmul.f32 %v5838_v10, %v4159_v2  ;;  %v4166_v9 = vmul.f32 %v5840_v50, %v4133_v24  ;;  %vm4172_vm1 = vweird.f32 %v5840_v50 }
0x11f1   : > { %vm4173_vm3 = vmor %vm4171_vm2, %vm4172_vm1 }
0x11f2   : > { %v4167_v21 = vmul.f32 %v5840_v50, %v4166_v9  ;;  %v4164_v19 = vsel %vm4163_vm15, %v5838_v10, %v4160_v6  ;;  %v5505_v10 = vld [vmem:[%s7312_s7 + $0x8] sm:$0xff]  ;;  %v5504_v9 = vld [vmem:[%s7312_s7] sm:$0xff] }
0x11f3   : > { %v4187_v44 = vmul.f32 %v4164_v19, %v7087_v30 }
0x11f4   : > { %v4168_v28 = vmul.f32 0.5, %v4167_v21 }
0x11f5   : > { %v4195_v33 = vmul.f32 %v7095_v1, %v4187_v44 }
0x11f6   : > { %v4169_v35 = vsub.f32 1.5, %v4168_v28 }
0x11f7   : > { %v4203_v30 = vadd.f32 %v7099_v47, %v4195_v33 }
0x11f8   : > { %v4170_v27 = vmul.f32 %v5840_v50, %v4169_v35 }
0x11fa   : > { %v4174_v37 = vsel %vm4173_vm3, %v5840_v50, %v4170_v27  ;;  %v4280_v56 = vpop.f32.mrf.mxu0 }
0x11fb   : > { %v4188_v63 = vmul.f32 %v4174_v37, %v4103_v22  ;;  %v7128_v31 = vadd.f32 %v4280_v56, %v7125_v32  ;;  %v5509_v22 = vld [vmem:[%s7312_s7 + $0x28] sm:$0xff] }
0x11fc   : > { %4572 = vmatpush.bf16.msrb.mxu1 %v5509_v22 }
0x11fd   : > { %v7132_v20 = vmul.f32 0.70710677, %v7128_v31  ;;  %v4196_v8 = vmul.f32 %v7095_v1, %v4188_v63 }
0x11ff   : > { %v4304_v52 = vand.u32 2147483647, %v7132_v20  ;;  %v4204_v59 = vadd.f32 %v7099_v47, %v4196_v8  ;;  %vm4469_vm12 = vcmp.ge.f32.partialorder %v7132_v20, 0.0 }
0x1200   : > { %4573 = vmatpush.bf16.msrb.mxu1 %v5508_v26 }
0x1201   : > { %v4309_v4 = vmul.f32 0.3275911, %v4304_v52  ;;  %v4211_v45 = vpack.c.bf16 %v4204_v59, %v4203_v30  ;;  %v4439_v16 = vsub.f32 0.0, %v4304_v52 }
0x1202   : > { %v4282_v39 = vpop.f32.mrf.mxu0 }
0x1203   : > { %v4314_v49 = vadd.f32 1.0, %v4309_v4  ;;  %v7140_v62 = vadd.f32 %v4282_v39, %v7125_v32  ;;  %5329 = vmatmul.msk.bf16.gmra.mxu2 %vm1076_vm0, %v4211_v45  ;;  %5332 = vmatmul.msk.bf16.gmra.mxu0 %vm1076_vm0, %v4211_v45  ;;  %v4444_v24 = vmul.f32 %v4439_v16, %v4304_v52 }
0x1204   : > { %4574 = vmatpush.bf16.msrb.mxu1 %v5507_v15 }
0x1205   : > { %5841 = vrcp.f32 %v4314_v49  ;;  %v7146_v18 = vmul.f32 0.70710677, %v7140_v62  ;;  %v4330_v3 = vand.u32 2147483648, %v4314_v49  ;;  %v4328_v51 = vand.u32 2147483647, %v4314_v49 }
0x1206   : > { %vm4324_vm5 = vweird.f32 %v4314_v49  ;;  %v4449_v21 = vmul.f32 1.442695, %v4444_v24  ;;  %v4295_v20 = vmul.f32 0.5, %v7140_v62 }
0x1207   : > { %v4305_v53 = vand.u32 2147483647, %v7146_v18  ;;  %v4331_v0 = vor.u32 1.1754944e-38, %v4330_v3  ;;  %vm4329_vm7 = vcmp.eq.f32.partialorder %v4328_v51, 8.507059e+37  ;;  %vm4470_vm13 = vcmp.ge.f32.partialorder %v7146_v18, 0.0 }
0x1208   : > { %4575 = vmatpush.bf16.msrb.mxu1 %v5506_v36 }
0x1209   : > { %v4310_v46 = vmul.f32 0.3275911, %v4305_v53  ;;  %v4440_v35 = vsub.f32 0.0, %v4305_v53 }
0x120b   : > { %v5842_v57 = vpop.eup %5841  ;;  %v4315_v55 = vadd.f32 1.0, %v4310_v46  ;;  %v4445_v33 = vmul.f32 %v4440_v35, %v4305_v53  ;;  %v4257_v46 = vpop.f32.mrf.mxu2 }
0x120c   : > { %v4320_v60 = vmul.f32 %v5842_v57, %v4314_v49  ;;  %vm4325_vm4 = vweird.f32 %v5842_v57  ;;  %4576 = vmatpush.bf16.msrb.mxu1 %v5505_v10 }
0x120d   : > { %5843 = vrcp.f32 %v4315_v55  ;;  %vm4326_vm6 = vmor %vm4324_vm5, %vm4325_vm4  ;;  %v4345_v13 = vand.u32 2147483648, %v4315_v55  ;;  %v4343_v41 = vand.u32 2147483647, %v4315_v55  ;;  %vm4339_vm10 = vweird.f32 %v4315_v55 }
0x120e   : > { %v4321_v14 = vsub.f32 1.0, %v4320_v60  ;;  %5845 = vpow2.f32 %v4449_v21  ;;  %v4451_v48 = vmul.f32 1.442695, %v4445_v33 }
0x120f   : > { %v4346_v6 = vor.u32 1.1754944e-38, %v4345_v13  ;;  %vm4344_vm11 = vcmp.eq.f32.partialorder %v4343_v41, 8.507059e+37 }
0x1210   : > { %v4322_v58 = vmul.f32 %v5842_v57, %v4321_v14  ;;  %4577 = vmatpush.bf16.msrb.mxu1 %v5504_v9  ;;  %5847 = vpow2.f32 %v4451_v48 }
0x1212   : > { %v4323_v5 = vadd.f32 %v5842_v57, %v4322_v58 }
0x1213   : > { %v5844_v61 = vpop.eup %5843  ;;  %v4259_v36 = vpop.f32.mrf.mxu2 }
0x1214   : > { %v4327_v38 = vsel %vm4326_vm6, %v5842_v57, %v4323_v5  ;;  %v4335_v11 = vmul.f32 %v5844_v61, %v4315_v55  ;;  %vm4340_vm8 = vweird.f32 %v5844_v61  ;;  %v5846_v4 = vpop.eup %5845 }
0x1215   : > { %v4332_v7 = vsel %vm4329_vm7, %v4331_v0, %v4327_v38  ;;  %vm4341_vm9 = vmor %vm4339_vm10, %vm4340_vm8  ;;  %v4294_v0 = vmul.f32 0.5, %v7128_v31 }
0x1216   : > { %v4394_v42 = vmul.f32 1.0614054, %v4332_v7  ;;  %v4336_v12 = vsub.f32 1.0, %v4335_v11  ;;  %v5848_v26 = vpop.eup %5847 }
0x1218   : > { %v4399_v40 = vadd.f32 -1.4531521, %v4394_v42  ;;  %v4337_v17 = vmul.f32 %v5844_v61, %v4336_v12 }
0x121a   : > { %v4404_v29 = vmul.f32 %v4399_v40, %v4332_v7  ;;  %v4338_v2 = vadd.f32 %v5844_v61, %v4337_v17 }
0x121c   : > { %v4409_v50 = vadd.f32 1.4214138, %v4404_v29  ;;  %v4342_v19 = vsel %vm4341_vm9, %v5844_v61, %v4338_v2  ;;  %v7159_v61 = vperm.slane %v7121_v43, 0 }
0x121d   : > { %v4347_v44 = vsel %vm4344_vm11, %v4346_v6, %v4342_v19 }
0x121e   : > { %v4414_v28 = vmul.f32 %v4409_v50, %v4332_v7  ;;  %v4395_v27 = vmul.f32 1.0614054, %v4347_v44  ;;  %v4258_v42 = vadd.f32 %v4257_v46, %v7159_v61  ;;  %v5400_v46 = vld [vmem:[%s7313_s22 + $0x40] sm:$0xf] }
0x1220   : > { %v4419_v37 = vadd.f32 -0.28449672, %v4414_v28  ;;  %v4400_v56 = vadd.f32 -1.4531521, %v4395_v27 }
0x1222   : > { %v4424_v63 = vmul.f32 %v4419_v37, %v4332_v7  ;;  %v4405_v8 = vmul.f32 %v4400_v56, %v4347_v44 }
0x1224   : > { %v4429_v52 = vadd.f32 0.2548296, %v4424_v63  ;;  %v4410_v30 = vadd.f32 1.4214138, %v4405_v8 }
0x1226   : > { %v4434_v59 = vmul.f32 %v4429_v52, %v4332_v7  ;;  %v4415_v45 = vmul.f32 %v4410_v30, %v4347_v44 }
0x1228   : > { %v4459_v39 = vmul.f32 %v5846_v4, %v4434_v59  ;;  %v4420_v49 = vadd.f32 -0.28449672, %v4415_v45 }
0x122a   : > { %v4464_v54 = vsub.f32 1.0, %v4459_v39  ;;  %v4425_v22 = vmul.f32 %v4420_v49, %v4347_v44 }
0x122c   : > { %v4474_v57 = vsub.f32 0.0, %v4464_v54  ;;  %v4430_v60 = vadd.f32 0.2548296, %v4425_v22 }
0x122e   : > { %v4435_v55 = vmul.f32 %v4430_v60, %v4347_v44  ;;  %v4479_v53 = vsel %vm4469_vm12, %v4464_v54, %v4474_v57  ;;  %v5524_v57 = vld [vmem:[%s7313_s22 + $0x5c] sm:$0xf0]  ;;  %v5520_v60 = vld [vmem:[%s7313_s22 + $0x44] sm:$0xf] }
0x122f   : > { %v4484_v51 = vadd.f32 1.0, %v4479_v53  ;;  %v5402_v53 = vld [vmem:[%s7313_s22 + $0x60] sm:$0xf0] }
0x1230   : > { %v4460_v14 = vmul.f32 %v5848_v26, %v4435_v55  ;;  %v5401_v26 = vor.u32 %v5524_v57, %v5400_v46  ;;  %v5517_v46 = vld [vmem:[%s7313_s22 + $0x24] sm:$0xf0] }
0x1231   : > { %v4489_v7 = vmul.f32 %v4484_v51, %v4294_v0  ;;  %v5527_v51 = vld [vmem:[%s7313_s22 + $0x74] sm:$0xf0] }
0x1232   : > { %v4465_v3 = vsub.f32 1.0, %v4460_v14  ;;  %v5424_v14 = vld [vmem:[%s7313_s22 + $0x58] sm:$0xf]  ;;  %4714 = vmatpush.bf16.msrb.mxu3 %v5401_v26 }
0x1233   : > { %v4124_v58 = vpop.xlane.xlu1 %4123  ;;  %v4494_v40 = vmul.f32 %v4489_v7, %v4258_v42  ;;  %v5368_v7 = vld [vmem:[%s7313_s22] sm:$0xf] }
0x1234   : > { %v4129_v15 = vmul.f32 %v4124_v58, %v6169_v25  ;;  %v4475_v5 = vsub.f32 0.0, %v4465_v3  ;;  %v4260_v25 = vadd.f32 %v4259_v36, %v7159_v61  ;;  %v5405_v58 = vor.u32 %v5520_v60, %v5402_v53  ;;  %v5513_v60 = vld [vmem:[%s7313_s22 + $0xc] sm:$0xf] }
0x1236   : > { %v4134_v38 = vadd.f32 1e-05, %v4129_v15  ;;  %v4480_v16 = vsel %vm4470_vm13, %v4465_v3, %v4475_v5  ;;  %4727 = vmatpush.bf16.msrb.mxu2 %v5405_v58 }
0x1237   : > { %v4485_v11 = vadd.f32 1.0, %v4480_v16 }
0x1238   : > { %5849 = vrsqrt.f32 %v4134_v38  ;;  %vm4181_vm15 = vweird.f32 %v4134_v38 }
0x1239   : > { %v4490_v12 = vmul.f32 %v4485_v11, %v4295_v20  ;;  %v5516_v20 = vld [vmem:[%s7313_s22 + $0x1c] sm:$0xf0]  ;;  %v5512_v11 = vld [vmem:[%s7313_s22 + $0x4] sm:$0xf] }
0x123b   : > { %v4495_v31 = vmul.f32 %v4490_v12, %v4260_v25  ;;  %v5369_v25 = vor.u32 %v5516_v20, %v5368_v7  ;;  %v5370_v12 = vld [vmem:[%s7313_s22 + $0x20] sm:$0xf0] }
0x123d   : > { %v4515_v43 = vpack.c.bf16 %v4495_v31, %v4494_v40  ;;  %v5392_v40 = vld [vmem:[%s7313_s22 + $0x18] sm:$0xf]  ;;  %4715 = vmatpush.bf16.msrb.mxu3 %v5369_v25 }
0x123e   : > { %v5850_v13 = vpop.eup %5849  ;;  %v5519_v31 = vld [vmem:[%s7313_s22 + $0x34] sm:$0xf0] }
0x123f   : > { %v4176_v10 = vmul.f32 %v5850_v13, %v4134_v38  ;;  %4578 = vmatmul.bf16.vlgmr.msrb.gmra.mxu1 %v4515_v43  ;;  %vm4182_vm14 = vweird.f32 %v5850_v13  ;;  %v5425_v38 = vor.u32 %v5527_v51, %v5424_v14  ;;  %v5373_v43 = vor.u32 %v5512_v11, %v5370_v12 }
0x1240   : > { %vm4183_vm1 = vmor %vm4181_vm15, %vm4182_vm14 }
0x1241   : > { %v4177_v18 = vmul.f32 %v5850_v13, %v4176_v10  ;;  %4792 = vmatpush.bf16.msra.mxu0 %v5425_v38  ;;  %v5393_v10 = vor.u32 %v5519_v31, %v5392_v40  ;;  %4728 = vmatpush.bf16.msrb.mxu2 %v5373_v43  ;;  %v5416_v31 = vld [vmem:[%s7313_s22 + $0x50] sm:$0xf]  ;;  %v5522_v43 = vld [vmem:[%s7313_s22 + $0x54] sm:$0xf] }
0x1243   : > { %v4178_v24 = vmul.f32 0.5, %v4177_v18 }
0x1245   : > { %v4179_v17 = vsub.f32 1.5, %v4178_v24  ;;  %4793 = vmatpush.bf16.msra.mxu0 %v5393_v10  ;;  %v5418_v10 = vld [vmem:[%s7313_s22 + $0x70] sm:$0xf0] }
0x1247   : > { %v4180_v41 = vmul.f32 %v5850_v13, %v4179_v17 }
0x1249   : > { %v4184_v62 = vsel %vm4183_vm1, %v5850_v13, %v4180_v41 }
0x124a   : > { %v4189_v29 = vmul.f32 %v4184_v62, %v7113_v23 }
0x124c   : > { %v4197_v2 = vmul.f32 %v7095_v1, %v4189_v29 }
0x124e   : > { %v4205_v50 = vadd.f32 %v7099_v47, %v4197_v2 }
0x1250   : > { %v4212_v6 = vpack.c.bf16 %v4205_v50, %v4205_v50 }
0x1252   : > { %5330 = vmatmul.msk.bf16.gmra.mxu2 %vm1076_vm0, %v4212_v6  ;;  %5333 = vmatmul.msk.bf16.gmra.mxu0 %vm1076_vm0, %v4212_v6 }
0x1280   : > { %v4285_v9 = vpop.f32.mrf.mxu0 }
0x1281   : > { %v7171_v21 = vadd.f32 %v4285_v9, %v7125_v32  ;;  %v5408_v9 = vld [vmem:[%s7313_s22 + $0x48] sm:$0xf] }
0x1283   : > { %v7174_v19 = vmul.f32 0.70710677, %v7171_v21  ;;  %v4296_v7 = vmul.f32 0.5, %v7171_v21 }
0x1285   : > { %v4306_v28 = vand.u32 2147483647, %v7174_v19  ;;  %vm4471_vm9 = vcmp.ge.f32.partialorder %v7174_v19, 0.0 }
0x1286   : > { %v4262_v14 = vpop.f32.mrf.mxu2 }
0x1287   : > { %v4311_v35 = vmul.f32 0.3275911, %v4306_v28  ;;  %v4441_v39 = vsub.f32 0.0, %v4306_v28  ;;  %v4263_v21 = vadd.f32 %v4262_v14, %v7159_v61 }
0x1288   : > { %v4287_v23 = vpop.f32.mrf.mxu0 }
0x1289   : > { %v4316_v44 = vadd.f32 1.0, %v4311_v35  ;;  %v7178_v1 = vadd.f32 %v4287_v23, %v7125_v32  ;;  %v4446_v36 = vmul.f32 %v4441_v39, %v4306_v28  ;;  %v5525_v28 = vld [vmem:[%s7313_s22 + $0x64] sm:$0xf0] }
0x128a   : > { %v5409_v23 = vor.u32 %v5525_v28, %v5408_v9  ;;  %v5386_v9 = vld [vmem:[%s7313_s22 + $0x30] sm:$0xf0] }
0x128b   : > { %5851 = vrcp.f32 %v4316_v44  ;;  %v7181_v47 = vmul.f32 0.70710677, %v7178_v1  ;;  %v4360_v52 = vand.u32 2147483648, %v4316_v44  ;;  %v4358_v59 = vand.u32 2147483647, %v4316_v44 }
0x128c   : > { %vm4354_vm3 = vweird.f32 %v4316_v44  ;;  %v4453_v17 = vmul.f32 1.442695, %v4446_v36  ;;  %4740 = vmatpush.bf16.msra.mxu3 %v5409_v23  ;;  %v5619_v36 = vld [vmem:[%s7314_s16] ss:$0 sm:$0xff]  ;;  %v4297_v19 = vmul.f32 0.5, %v7178_v1 }
0x128d   : > { %v7184_v27 = vand.u32 2147483647, %v7181_v47  ;;  %v4361_v4 = vor.u32 1.1754944e-38, %v4360_v52  ;;  %vm4359_vm5 = vcmp.eq.f32.partialorder %v4358_v59, 8.507059e+37  ;;  %vm4472_vm11 = vcmp.ge.f32.partialorder %v7181_v47, 0.0 }
0x128e   : > { %v4264_v20 = vpop.f32.mrf.mxu2 }
0x128f   : > { %v4312_v37 = vmul.f32 0.3275911, %v7184_v27  ;;  %v4442_v29 = vsub.f32 0.0, %v7184_v27  ;;  %v4265_v47 = vadd.f32 %v4264_v20, %v7159_v61 }
0x1291   : > { %v5852_v56 = vpop.eup %5851  ;;  %v4317_v33 = vadd.f32 1.0, %v4312_v37  ;;  %v5410_v37 = vld [vmem:[%s7313_s22 + $0x68] sm:$0xf0] }
0x1292   : > { %v4350_v63 = vmul.f32 %v5852_v56, %v4316_v44  ;;  %vm4355_vm2 = vweird.f32 %v5852_v56  ;;  %v5521_v44 = vld [vmem:[%s7313_s22 + $0x4c] sm:$0xf] }
0x1293   : > { %5853 = vrcp.f32 %v4317_v33  ;;  %vm4356_vm4 = vmor %vm4354_vm3, %vm4355_vm2  ;;  %v4373_v5 = vand.u32 2147483647, %v4317_v33  ;;  %v4375_v0 = vand.u32 2147483648, %v4317_v33  ;;  %vm4369_vm7 = vweird.f32 %v4317_v33 }
0x1294   : > { %v4351_v8 = vsub.f32 1.0, %v4350_v63  ;;  %5855 = vpow2.f32 %v4453_v17  ;;  %v4447_v63 = vmul.f32 %v4442_v29, %v7184_v27  ;;  %v5421_v29 = vor.u32 %v5522_v43, %v5418_v10 }
0x1295   : > { %v4376_v24 = vor.u32 1.1754944e-38, %v4375_v0  ;;  %vm4374_vm10 = vcmp.eq.f32.partialorder %v4373_v5, 8.507059e+37 }
0x1296   : > { %v4352_v30 = vmul.f32 %v5852_v56, %v4351_v8 }
0x1298   : > { %v4353_v48 = vadd.f32 %v5852_v56, %v4352_v30 }
0x1299   : > { %v5854_v45 = vpop.eup %5853 }
0x129a   : > { %v4357_v49 = vsel %vm4356_vm4, %v5852_v56, %v4353_v48  ;;  %v4365_v22 = vmul.f32 %v5854_v45, %v4317_v33  ;;  %vm4370_vm6 = vweird.f32 %v5854_v45  ;;  %v5413_v33 = vor.u32 %v5521_v44, %v5410_v37 }
0x129b   : > { %v7187_v54 = vsel %vm4359_vm5, %v4361_v4, %v4357_v49  ;;  %vm4371_vm8 = vmor %vm4369_vm7, %vm4370_vm6  ;;  %v4455_v48 = vmul.f32 1.442695, %v4447_v63  ;;  %v5856_v4 = vpop.eup %5855 }
0x129c   : > { %v4396_v55 = vmul.f32 1.0614054, %v7187_v54  ;;  %v4366_v3 = vsub.f32 1.0, %v4365_v22  ;;  %4753 = vmatpush.bf16.msra.mxu2 %v5413_v33  ;;  %v5376_v22 = vld [vmem:[%s7313_s22 + $0x8] sm:$0xf] }
0x129d   : > { %5857 = vpow2.f32 %v4455_v48  ;;  %v5377_v27 = vor.u32 %v5517_v46, %v5376_v22 }
0x129e   : > { %v4401_v15 = vadd.f32 -1.4531521, %v4396_v55  ;;  %v4367_v16 = vmul.f32 %v5854_v45, %v4366_v3  ;;  %v5378_v55 = vld [vmem:[%s7313_s22 + $0x28] sm:$0xf0] }
0x129f   : > { %v5381_v53 = vor.u32 %v5513_v60, %v5378_v55  ;;  %4741 = vmatpush.bf16.msra.mxu3 %v5377_v27  ;;  %v5523_v55 = vld [vmem:[%s7313_s22 + $0x5c] sm:$0xf] }
0x12a0   : > { %v4406_v42 = vmul.f32 %v4401_v15, %v7187_v54  ;;  %v4368_v13 = vadd.f32 %v5854_v45, %v4367_v16 }
0x12a1   : > { %4754 = vmatpush.bf16.msra.mxu2 %v5381_v53 }
0x12a2   : > { %v4411_v18 = vadd.f32 1.4214138, %v4406_v42  ;;  %v4372_v41 = vsel %vm4371_vm8, %v5854_v45, %v4368_v13  ;;  %v5526_v13 = vld [vmem:[%s7313_s22 + $0x6c] sm:$0xf0] }
0x12a3   : > { %v4377_v2 = vsel %vm4374_vm10, %v4376_v24, %v4372_v41  ;;  %v5858_v51 = vpop.eup %5857  ;;  %v5417_v17 = vor.u32 %v5526_v13, %v5416_v31 }
0x12a4   : > { %v4416_v62 = vmul.f32 %v4411_v18, %v7187_v54  ;;  %v4397_v50 = vmul.f32 1.0614054, %v4377_v2 }
0x12a6   : > { %v4421_v6 = vadd.f32 -0.28449672, %v4416_v62  ;;  %v4402_v35 = vadd.f32 -1.4531521, %v4397_v50  ;;  %v5518_v50 = vld [vmem:[%s7313_s22 + $0x2c] sm:$0xf0] }
0x12a8   : > { %v4426_v56 = vmul.f32 %v4421_v6, %v7187_v54  ;;  %v4407_v8 = vmul.f32 %v4402_v35, %v4377_v2  ;;  %v5514_v6 = vld [vmem:[%s7313_s22 + $0x14] sm:$0xf] }
0x12a9   : > { %v5389_v23 = vor.u32 %v5514_v6, %v5386_v9 }
0x12aa   : > { %v4431_v52 = vadd.f32 0.2548296, %v4426_v56  ;;  %v4412_v30 = vadd.f32 1.4214138, %v4407_v8 }
0x12ac   : > { %v4436_v59 = vmul.f32 %v4431_v52, %v7187_v54  ;;  %v4417_v45 = vmul.f32 %v4412_v30, %v4377_v2 }
0x12ae   : > { %v4461_v39 = vmul.f32 %v5856_v4, %v4436_v59  ;;  %v4422_v49 = vadd.f32 -0.28449672, %v4417_v45 }
0x12b0   : > { %v4466_v57 = vsub.f32 1.0, %v4461_v39  ;;  %v4427_v26 = vmul.f32 %v4422_v49, %v4377_v2 }
0x12b2   : > { %v4476_v3 = vsub.f32 0.0, %v4466_v57  ;;  %v4432_v58 = vadd.f32 0.2548296, %v4427_v26  ;;  %v5426_v26 = vld [vmem:[%s7313_s22 + $0x78] sm:$0xf0] }
0x12b3   : > { %v5429_v14 = vor.u32 %v5523_v55, %v5426_v26 }
0x12b4   : > { %v4437_v54 = vmul.f32 %v4432_v58, %v4377_v2  ;;  %v4481_v15 = vsel %vm4471_vm9, %v4466_v57, %v4476_v3  ;;  %v5384_v2 = vld [vmem:[%s7313_s22 + $0x10] sm:$0xf]  ;;  %v5515_v3 = vld [vmem:[%s7313_s22 + $0x1c] sm:$0xf] }
0x12b5   : > { %v4486_v38 = vadd.f32 1.0, %v4481_v15  ;;  %v5385_v35 = vor.u32 %v5518_v50, %v5384_v2  ;;  %v5394_v58 = vld [vmem:[%s7313_s22 + $0x38] sm:$0xf0]  ;;  %4805 = vmatpush.bf16.msra.mxu1 %v5429_v14 }
0x12b6   : > { %v4462_v5 = vmul.f32 %v5858_v51, %v4437_v54  ;;  %v5397_v51 = vor.u32 %v5515_v3, %v5394_v58 }
0x12b7   : > { %v4491_v25 = vmul.f32 %v4486_v38, %v4296_v7 }
0x12b8   : > { %v4467_v0 = vsub.f32 1.0, %v4462_v5 }
0x12b9   : > { %v4496_v41 = vmul.f32 %v4491_v25, %v4263_v21  ;;  %4806 = vmatpush.bf16.msra.mxu1 %v5397_v51 }
0x12ba   : > { %v4477_v16 = vsub.f32 0.0, %v4467_v0 }
0x12bc   : > { %v4482_v11 = vsel %vm4472_vm11, %v4467_v0, %v4477_v16  ;;  %v4579_v42 = vpop.f32.mrf.mxu1 }
0x12bd   : > { %v4487_v12 = vadd.f32 1.0, %v4482_v11  ;;  %v4580_v40 = vadd.f32 %v5619_v36, %v4579_v42 }
0x12bf   : > { %v4492_v18 = vmul.f32 %v4487_v12, %v4297_v19  ;;  %v4589_v24 = vadd.f32 %v4580_v40, %v7105_v34 }
0x12c1   : > { %v4497_v1 = vmul.f32 %v4492_v18, %v4265_v47  ;;  %v7229_v62 = vpack.c.bf16 %v4589_v24, %v4589_v24  ;;  %v7258_v24 = vld [vmem:[%s6081_s6] sm:$0xff] }
0x12c3   : > { %5430 = vmatmul.msk.bf16.vlgmr.msrb.gmra.mxu3 %vm1076_vm0, %v7229_v62  ;;  %5431 = vmatmul.msk.bf16.vlgmr.msrb.gmra.mxu2 %vm1076_vm0, %v7229_v62  ;;  %v4516_v28 = vpack.c.bf16 %v4497_v1, %v4496_v41  ;;  %v4609_v41 = vperm.slane %v7258_v24, 0  ;;  %v4610_v1 = vperm.slane %v7258_v24, 1 }
0x12c4   : > { %5436 = vmatmul.msk.bf16.vlgmr.msra.gmra.mxu0 %vm1076_vm0, %v7229_v62  ;;  %v4581_v34 = vpop.f32.mrf.mxu1  ;;  %4766 = vmatpush.bf16.msrb.mxu3 %v5417_v17 }
0x12c5   : > { %4582 = vmatmul.bf16.gmra.mxu1 %v4516_v28  ;;  %4779 = vmatpush.bf16.msrb.mxu2 %v5421_v29  ;;  %v4820_v29 = vld [vmem:[%s6086_s27] sm:$0xff] }
0x12c6   : > { %v4823_v28 = vperm.slane %v4820_v29, 1  ;;  %v4825_v55 = vperm.slane %v4820_v29, 3 }
0x12c8   : > { %4767 = vmatpush.bf16.msrb.mxu3 %v5385_v35 }
0x12c9   : > { %4780 = vmatpush.bf16.msrb.mxu2 %v5389_v23 }
0x12cf   : > { %v4290_v44 = vpop.f32.mrf.mxu0 }
0x12d0   : > { %v4291_v37 = vadd.f32 %v4290_v44, %v7125_v32 }
0x12d2   : > { %v4303_v56 = vmul.f32 0.70710677, %v4291_v37  ;;  %v4298_v31 = vmul.f32 0.5, %v4291_v37 }
0x12d3   : > { %5432 = vmatmul.msk.bf16.vlgmr.msra.gmra.mxu3 %vm1076_vm0, %v7229_v62  ;;  %5433 = vmatmul.msk.bf16.vlgmr.msra.gmra.mxu2 %vm1076_vm0, %v7229_v62 }
0x12d4   : > { %v4308_v63 = vand.u32 2147483647, %v4303_v56  ;;  %vm4473_vm1 = vcmp.ge.f32.partialorder %v4303_v56, 0.0 }
0x12d5   : > { %v4267_v33 = vpop.f32.mrf.mxu2 }
0x12d6   : > { %v4313_v8 = vmul.f32 0.3275911, %v4308_v63  ;;  %v4443_v27 = vsub.f32 0.0, %v4308_v63  ;;  %v4268_v43 = vadd.f32 %v4267_v33, %v7159_v61  ;;  %v4822_v61 = vperm.slane %v4820_v29, 0 }
0x12d7   : > { %v4292_v52 = vpop.f32.mrf.mxu0 }
0x12d8   : > { %v4318_v30 = vadd.f32 1.0, %v4313_v8  ;;  %v4448_v15 = vmul.f32 %v4443_v27, %v4308_v63  ;;  %v4614_v27 = vperm.slane %v7258_v24, 5 }
0x12da   : > { %5859 = vrcp.f32 %v4318_v30  ;;  %v4390_v32 = vand.u32 2147483648, %v4318_v30  ;;  %v4388_v49 = vand.u32 2147483647, %v4318_v30  ;;  %vm4384_vm13 = vweird.f32 %v4318_v30 }
0x12db   : > { %v4457_v38 = vmul.f32 1.442695, %v4448_v15 }
0x12dc   : > { %v4391_v46 = vor.u32 1.1754944e-38, %v4390_v32  ;;  %vm4389_vm15 = vcmp.eq.f32.partialorder %v4388_v49, 8.507059e+37 }
0x12dd   : > { %v4269_v59 = vpop.f32.mrf.mxu2  ;;  %5861 = vpow2.f32 %v4457_v38  ;;  %v4827_v38 = vperm.slane %v4820_v29, 5 }
0x12e0   : > { %v5860_v48 = vpop.eup %5859 }
0x12e1   : > { %v4380_v4 = vmul.f32 %v5860_v48, %v4318_v30  ;;  %vm4385_vm12 = vweird.f32 %v5860_v48  ;;  %v4611_v30 = vperm.slane %v7258_v24, 2 }
0x12e2   : > { %vm4386_vm14 = vmor %vm4384_vm13, %vm4385_vm12 }
0x12e3   : > { %v4381_v45 = vsub.f32 1.0, %v4380_v4  ;;  %5434 = vmatmul.msk.bf16.vlgmr.msrb.gmra.mxu3 %vm1076_vm0, %v7229_v62  ;;  %5435 = vmatmul.msk.bf16.vlgmr.msrb.gmra.mxu2 %vm1076_vm0, %v7229_v62  ;;  %v5862_v42 = vpop.eup %5861 }
0x12e5   : > { %v4382_v39 = vmul.f32 %v5860_v48, %v4381_v45 }
0x12e7   : > { %v4383_v22 = vadd.f32 %v5860_v48, %v4382_v39  ;;  %v4824_v39 = vperm.slane %v4820_v29, 2 }
0x12e9   : > { %v4387_v57 = vsel %vm4386_vm14, %v5860_v48, %v4383_v22  ;;  %v4612_v48 = vperm.slane %v7258_v24, 3  ;;  %v4615_v22 = vperm.slane %v7258_v24, 6 }
0x12ea   : > { %v4392_v60 = vsel %vm4389_vm15, %v4391_v46, %v4387_v57  ;;  %v4613_v57 = vperm.slane %v7258_v24, 4 }
0x12eb   : > { %v4398_v53 = vmul.f32 1.0614054, %v4392_v60 }
0x12ed   : > { %v4403_v54 = vadd.f32 -1.4531521, %v4398_v53 }
0x12ef   : > { %v4408_v5 = vmul.f32 %v4403_v54, %v4392_v60  ;;  %v4826_v54 = vperm.slane %v4820_v29, 4 }
0x12f1   : > { %v4413_v0 = vadd.f32 1.4214138, %v4408_v5 }
0x12f3   : > { %v4418_v36 = vmul.f32 %v4413_v0, %v4392_v60 }
0x12f5   : > { %v4423_v16 = vadd.f32 -0.28449672, %v4418_v36 }
0x12f7   : > { %v4428_v7 = vmul.f32 %v4423_v16, %v4392_v60  ;;  %v4828_v16 = vperm.slane %v4820_v29, 6 }
0x12f9   : > { %v4433_v20 = vadd.f32 0.2548296, %v4428_v7 }
0x12fb   : > { %v4438_v11 = vmul.f32 %v4433_v20, %v4392_v60 }
0x12fd   : > { %v4463_v25 = vmul.f32 %v5862_v42, %v4438_v11 }
0x12ff   : > { %v4468_v19 = vsub.f32 1.0, %v4463_v25 }
0x1301   : > { %v4478_v12 = vsub.f32 0.0, %v4468_v19 }
0x1303   : > { %v4483_v40 = vsel %vm4473_vm1, %v4468_v19, %v4478_v12 }
0x1304   : > { %v4488_v13 = vadd.f32 1.0, %v4483_v40 }
0x1306   : > { %v4493_v10 = vmul.f32 %v4488_v13, %v4298_v31 }
0x1308   : > { %v4498_v21 = vmul.f32 %v4493_v10, %v4268_v43  ;;  %v4616_v10 = vperm.slane %v7258_v24, 7 }
0x130a   : > { %v4517_v47 = vpack.c.bf16 %v4498_v21, %v4498_v21 }
0x130c   : > { %4585 = vmatmul.bf16.gmra.mxu1 %v4517_v47 }
0x131c   : > { %5437 = vmatmul.msk.bf16.vlgmr.msra.gmra.mxu1 %vm1076_vm0, %v7229_v62  ;;  %vm4860_vm0 = vcmask 7168  }
0x1341   : > { %v4795_v18 = vpop.f32.mrf.mxu0 }
0x1342   : > { %v4583_v17 = vpop.f32.mrf.mxu1  ;;  %v4796_v26 = vadd.f32 %v4795_v18, %v4615_v22  ;;  %v4829_v18 = vperm.slane %v4820_v29, 7 }
0x1344   : > { %v4818_v36 = vmax.f32 %v4796_v26, 0.0 }
0x1346   : > { %v4717_v2 = vpop.f32.mrf.mxu3  ;;  %v4730_v50 = vpop.f32.mrf.mxu2  ;;  %v4844_v12 = vmul.f32 %v4828_v16, %v4818_v36 }
0x1347   : > { %v4718_v6 = vadd.f32 %v4717_v2, %v4609_v41  ;;  %v4731_v9 = vadd.f32 %v4730_v50, %v4610_v1  ;;  %v5620_v50 = vld [vmem:[#allocation3] ss:$0 sm:$0xff] }
0x1349   : > { %v4812_v34 = vmax.f32 %v4718_v6, 0.0  ;;  %v4813_v35 = vmax.f32 %v4731_v9, 0.0  ;;  %v4797_v23 = vpop.f32.mrf.mxu0 }
0x134a   : > { %v4584_v44 = vpop.f32.mrf.mxu1 }
0x134b   : > { %v4838_v62 = vmul.f32 %v4822_v61, %v4812_v34  ;;  %v4839_v37 = vmul.f32 %v4823_v28, %v4813_v35 }
0x134d   : > { %v4846_v56 = vadd.f32 %v4839_v37, %v4838_v62 }
0x134e   : > { %v4719_v63 = vpop.f32.mrf.mxu3  ;;  %v4732_v33 = vpop.f32.mrf.mxu2 }
0x1356   : > { %v4743_v8 = vpop.f32.mrf.mxu3  ;;  %v4756_v52 = vpop.f32.mrf.mxu2 }
0x1357   : > { %v4744_v59 = vadd.f32 %v4743_v8, %v4611_v30  ;;  %v4757_v49 = vadd.f32 %v4756_v52, %v4612_v48 }
0x1359   : > { %v4814_v32 = vmax.f32 %v4744_v59, 0.0  ;;  %v4815_v60 = vmax.f32 %v4757_v49, 0.0 }
0x135b   : > { %v4840_v46 = vmul.f32 %v4824_v39, %v4814_v32  ;;  %v4841_v15 = vmul.f32 %v4825_v55, %v4815_v60 }
0x135d   : > { %v4847_v3 = vadd.f32 %v4846_v56, %v4840_v46 }
0x135e   : > { %v4745_v4 = vpop.f32.mrf.mxu3  ;;  %v4758_v45 = vpop.f32.mrf.mxu2 }
0x135f   : > { %v4848_v7 = vadd.f32 %v4847_v3, %v4841_v15 }
0x1366   : > { %v4769_v53 = vpop.f32.mrf.mxu3  ;;  %v4782_v14 = vpop.f32.mrf.mxu2 }
0x1367   : > { %v4770_v58 = vadd.f32 %v4769_v53, %v4613_v57  ;;  %v4783_v51 = vadd.f32 %v4782_v14, %v4614_v27 }
0x1369   : > { %v4816_v5 = vmax.f32 %v4770_v58, 0.0  ;;  %v4817_v0 = vmax.f32 %v4783_v51, 0.0 }
0x136b   : > { %v4842_v20 = vmul.f32 %v4826_v54, %v4816_v5  ;;  %v4843_v42 = vmul.f32 %v4827_v38, %v4817_v0 }
0x136d   : > { %v4849_v11 = vadd.f32 %v4848_v7, %v4842_v20 }
0x136e   : > { %v4771_v25 = vpop.f32.mrf.mxu3  ;;  %v4784_v19 = vpop.f32.mrf.mxu2 }
0x136f   : > { %v4850_v40 = vadd.f32 %v4849_v11, %v4843_v42 }
0x1371   : > { %v4851_v31 = vadd.f32 %v4850_v40, %v4844_v12 }
0x1389   : > { %v4586_v13 = vpop.f32.mrf.mxu1 }
0x1391   : > { %v4587_v43 = vpop.f32.mrf.mxu1 }
0x1399   : > { %v4808_v21 = vpop.f32.mrf.mxu1 }
0x139a   : > { %v4809_v47 = vadd.f32 %v4808_v21, %v4616_v10 }
0x139c   : > { %v4819_v17 = vmax.f32 %v4809_v47, 0.0 }
0x139e   : > { %v4845_v41 = vmul.f32 %v4829_v18, %v4819_v17 }
0x13a0   : > { %v4852_v1 = vadd.f32 %v4851_v31, %v4845_v41 }
0x13a1   : > { %v4810_v2 = vpop.f32.mrf.mxu1 }
0x13a2   : > { %4853 = vadd.xlane.f32.xlu2 %v4852_v1 }
0x1415   : > { %v4854_v6 = vpop.xlane.xlu2 %4853 }
0x1416   : > { %v4859_v61 = vadd.f32 %v5620_v50, %v4854_v6 }
0x1418   : > { %4861 = vst.msk [vmem:[%s1073_s4] sm:$0xff] %vm4860_vm0, %v4859_v61 }
0x1419 PF: > { %s81_s15 = sadd.s32 1, %s5869_s15  }
0x141a   : > { %p78_p4 = scmp.ge.s32.totalorder %s81_s15, 4  }
0x141c   :  { %80 = sbr.rel (!%p78_p4) target bundleno = 63 (0x3f), region = 226 }

</bundles_post_ra>
